<compile_context>
chip_gen: v7x
topology: tpu7x:2x2x1
jax: 0.10.0
libtpu: 0.0.40
codegen_flags: <defaults>
</compile_context>

<pallas_src>
import math
import jax
import jax.numpy as jnp
from jax.experimental import pallas as pl
from jax.experimental.pallas import tpu as pltpu


def _round_up(x, m):
    return (x + m - 1) // m * m


def _pick_ff_tile(d_ff, tk_max):
    """Largest tile of the feed-forward dim that divides d_ff.

    Prefers multiples of 128 (lane width); falls back to the whole dim."""
    if d_ff <= tk_max:
        return d_ff
    t = (tk_max // 128) * 128
    while t >= 128:
        if d_ff % t == 0:
            return t
        t -= 128
    return d_ff


def boom_kernel(x_ref, w1_ref, b1_ref, w2_ref, b2_ref, o_ref, acc_ref):
    # x_ref:  (tm, d_model)    tile of input rows (constant across k)
    # w1_ref: (d_model, tk)    k-th column chunk of W1
    # b1_ref: (1, tk)          k-th chunk of b1
    # w2_ref: (tk, d_model)    k-th row chunk of W2
    # b2_ref: (1, d_model)
    # o_ref:  (tm, d_model)    output tile (resident across the k axis)
    # acc_ref:(tm, d_model)    f32 accumulator scratch
    k = pl.program_id(1)

    @pl.when(k == 0)
    def _():
        acc_ref[...] = jnp.zeros_like(acc_ref)

    # linear1 chunk (MXU, f32 accumulation) + bias in f32
    h = jnp.dot(x_ref[...], w1_ref[...], preferred_element_type=jnp.float32)
    h = h + b1_ref[...].astype(jnp.float32)

    # GELU (sigmoid approximation used by the reference module), kept in f32
    h = h * jax.nn.sigmoid(1.702 * h)

    # TODO(synk): training-mode dropout (pltpu.prng_random_bits mask) not
    # implemented; kernel implements eval/inference semantics (identity).

    # linear2 chunk, accumulated over the d_ff reduction axis
    acc_ref[...] += jnp.dot(h.astype(w2_ref.dtype), w2_ref[...],
                            preferred_element_type=jnp.float32)

    @pl.when(k == pl.num_programs(1) - 1)
    def _():
        o_ref[...] = (acc_ref[...] +
                      b2_ref[...].astype(jnp.float32)).astype(o_ref.dtype)


def boom_forward(x, w1, b1, w2, b2, *, tm=256, tk=512):
    """x: (..., d_model) -> (..., d_model). Weights stored as (in, out)."""
    d_model = x.shape[-1]
    d_ff = w1.shape[-1]
    lead = x.shape[:-1]
    x2d = x.reshape(-1, d_model)
    M = x2d.shape[0]

    # Row tile: as large as requested but not larger than the (padded) row
    # count; always a multiple of 8 (sublane).
    tm_eff = min(tm, _round_up(M, 8))
    M_pad = _round_up(M, tm_eff)
    if M_pad != M:
        x2d = jnp.pad(x2d, ((0, M_pad - M), (0, 0)))

    tk_eff = _pick_ff_tile(d_ff, tk)
    grid = (M_pad // tm_eff, d_ff // tk_eff)

    b1_2d = b1.reshape(1, d_ff)
    b2_2d = b2.reshape(1, d_model)

    x_bytes = jnp.dtype(x.dtype).itemsize
    w_bytes = jnp.dtype(w1.dtype).itemsize
    # double-buffered in/out tiles + weight tiles + f32 accumulator + GELU tile
    vmem_need = (
        2 * tm_eff * d_model * x_bytes                    # x tiles
        + 2 * tm_eff * d_model * x_bytes                  # out tiles
        + 2 * (d_model * tk_eff + tk_eff) * w_bytes       # W1 + b1 tiles
        + 2 * (tk_eff * d_model + d_model) * w_bytes      # W2 + b2 tiles
        + tm_eff * d_model * 4                            # accumulator scratch
        + tm_eff * tk_eff * 4                             # GELU intermediate
    )
    vmem_limit = min(max(int(vmem_need * 1.5) + (4 << 20), 32 << 20), 64 << 20)

    cost = pl.CostEstimate(
        flops=4 * M_pad * d_model * d_ff,
        transcendentals=M_pad * d_ff,
        bytes_accessed=int(x2d.size * x_bytes + M_pad * d_model * x_bytes +
                           (w1.size + b1.size + w2.size + b2.size) * w_bytes),
    )

    out = pl.pallas_call(
        boom_kernel,
        out_shape=jax.ShapeDtypeStruct((M_pad, d_model), x.dtype),
        grid_spec=pltpu.PrefetchScalarGridSpec(
            num_scalar_prefetch=0,
            grid=grid,
            in_specs=[
                pl.BlockSpec((tm_eff, d_model), lambda i, k: (i, 0)),  # x rows
                pl.BlockSpec((d_model, tk_eff), lambda i, k: (0, k)),  # W1 chunk
                pl.BlockSpec((1, tk_eff), lambda i, k: (0, k)),        # b1 chunk
                pl.BlockSpec((tk_eff, d_model), lambda i, k: (k, 0)),  # W2 chunk
                pl.BlockSpec((1, d_model), lambda i, k: (0, 0)),       # b2
            ],
            out_specs=pl.BlockSpec((tm_eff, d_model), lambda i, k: (i, 0)),
            scratch_shapes=[pltpu.VMEM((tm_eff, d_model), jnp.float32)],
        ),
        compiler_params=pltpu.CompilerParams(
            dimension_semantics=("parallel", "arbitrary"),
            vmem_limit_bytes=vmem_limit,
        ),
        cost_estimate=cost,
    )(x2d, w1, b1_2d, w2, b2_2d)

    if M_pad != M:
        out = out[:M]
    return out.reshape(*lead, d_model)


def init_boom_params(key, d_model, dim_feedforward):
    """Deterministic init matching nn.Linear's uniform(-1/sqrt(fan_in), ...)."""
    k1, k2, k3, k4 = jax.random.split(key, 4)
    bound1 = 1.0 / math.sqrt(d_model)
    bound2 = 1.0 / math.sqrt(dim_feedforward)
    # stored as (in, out) — i.e. PyTorch weight transposed
    w1 = jax.random.uniform(k1, (d_model, dim_feedforward), jnp.float32,
                            -bound1, bound1)
    b1 = jax.random.uniform(k2, (dim_feedforward,), jnp.float32, -bound1, bound1)
    w2 = jax.random.uniform(k3, (dim_feedforward, d_model), jnp.float32,
                            -bound2, bound2)
    b2 = jax.random.uniform(k4, (d_model,), jnp.float32, -bound2, bound2)
    return w1, b1, w2, b2


def boom_reference(x, w1, b1, w2, b2):
    h = jnp.dot(x, w1) + b1
    h = h * jax.nn.sigmoid(1.702 * h)
    return jnp.dot(h, w2) + b2


if __name__ == "__main__":
    key = jax.random.PRNGKey(0)
    kx, kp = jax.random.split(key)

    # --- main test: f32, lane-dense d_model, exercises row padding and the
    #     d_ff reduction grid axis (grid = (2, 2)) ---
    batch, seq, d_model, d_ff = 2, 192, 128, 1024
    x = jax.random.normal(kx, (batch, seq, d_model), jnp.float32)
    w1, b1, w2, b2 = init_boom_params(kp, d_model, d_ff)

    out = jax.block_until_ready(boom_forward(x, w1, b1, w2, b2))
    ref = boom_reference(x, w1, b1, w2, b2)
    assert out.shape == (batch, seq, d_model)
    assert jnp.allclose(out, ref, atol=1e-4, rtol=1e-4), "f32 mismatch vs reference"

    # --- toy original shape (d_model < 128) still runs correctly ---
    x_s = jax.random.normal(kx, (2, 8, 32), jnp.float32)
    w1s, b1s, w2s, b2s = init_boom_params(kp, 32, 128)
    out_s = jax.block_until_ready(boom_forward(x_s, w1s, b1s, w2s, b2s))
    ref_s = boom_reference(x_s, w1s, b1s, w2s, b2s)
    assert jnp.allclose(out_s, ref_s, atol=1e-5, rtol=1e-5), "toy-shape mismatch"

    # --- bf16 MXU path (f32 bias/GELU/accumulation inside the kernel) ---
    out_bf = jax.block_until_ready(
        boom_forward(x.astype(jnp.bfloat16), w1.astype(jnp.bfloat16),
                     b1.astype(jnp.bfloat16), w2.astype(jnp.bfloat16),
                     b2.astype(jnp.bfloat16)))
    err = jnp.max(jnp.abs(out_bf.astype(jnp.float32) - ref))
    assert err < 0.1, f"bf16 path error too large: {err}"

    print("KERNEL_OK")
</pallas_src>

<mosaic_0001>
module attributes {stable_mosaic.version = 11 : i64} {
  func.func @boom_kernel(%arg0: i32, %arg1: i32, %arg2: memref<256x128xf32, #tpu.memory_space<vmem>>, %arg3: memref<128x512xf32, #tpu.memory_space<vmem>>, %arg4: memref<1x512xf32, #tpu.memory_space<vmem>>, %arg5: memref<512x128xf32, #tpu.memory_space<vmem>>, %arg6: memref<1x128xf32, #tpu.memory_space<vmem>>, %arg7: memref<256x128xf32, #tpu.memory_space<vmem>>, %arg8: memref<256x128xf32, #tpu.memory_space<vmem>>) attributes {dimension_semantics = [#tpu.dimension_semantics<parallel>, #tpu.dimension_semantics<arbitrary>], iteration_bounds = array<i64: 2, 2>, scalar_prefetch = 0 : i64, scratch_operands = 1 : i64, tpu.core_type = #tpu.core_type<tc>, window_params = [{transform_indices = @transform_0, window_bounds = array<i64: 256, 128>}, {transform_indices = @transform_1, window_bounds = array<i64: 128, 512>}, {transform_indices = @transform_2, window_bounds = array<i64: 1, 512>}, {transform_indices = @transform_3, window_bounds = array<i64: 512, 128>}, {pipeline_mode = #tpu.pipeline_mode<synchronous>, transform_indices = @transform_4, window_bounds = array<i64: 1, 128>}, {transform_indices = @transform_5, window_bounds = array<i64: 256, 128>}]} {
    %c0_i32 = arith.constant 0 : i32
    %0 = arith.cmpi eq, %arg1, %c0_i32 : i32
    %1 = arith.extui %0 : i1 to i32
    %c0_i32_0 = arith.constant 0 : i32
    %2 = arith.cmpi ne, %1, %c0_i32_0 : i32
    scf.if %2 {
      %cst_16 = arith.constant 0.000000e+00 : f32
      %25 = vector.broadcast %cst_16 : f32 to vector<256x128xf32>
      %c0_17 = arith.constant 0 : index
      %c0_18 = arith.constant 0 : index
      %26 = vector.load %arg8[%c0_17, %c0_18] : memref<256x128xf32, #tpu.memory_space<vmem>>, vector<256x128xf32>
      tpu.vector_store %arg8[%c0_17, %c0_18], %25 {strides = array<i32>} : memref<256x128xf32, #tpu.memory_space<vmem>>, vector<256x128xf32>,
    } else {
    }
    %c0 = arith.constant 0 : index
    %c0_1 = arith.constant 0 : index
    %3 = vector.load %arg2[%c0, %c0_1] : memref<256x128xf32, #tpu.memory_space<vmem>>, vector<256x128xf32>
    %c0_2 = arith.constant 0 : index
    %c0_3 = arith.constant 0 : index
    %4 = vector.load %arg3[%c0_2, %c0_3] : memref<128x512xf32, #tpu.memory_space<vmem>>, vector<128x512xf32>
    %cst = arith.constant dense<0.000000e+00> : vector<256x512xf32>
    %5 = tpu.matmul %3, %4, %cst {dimension_numbers = #tpu.dot_dimension_numbers<[1], [0], [0], [1], [0, 0, 1, 1], [], []>} : vector<256x128xf32>, vector<128x512xf32>, vector<256x512xf32> -> vector<256x512xf32>
    %c0_4 = arith.constant 0 : index
    %c0_5 = arith.constant 0 : index
    %6 = vector.load %arg4[%c0_4, %c0_5] : memref<1x512xf32, #tpu.memory_space<vmem>>, vector<1x512xf32>
    %7 = vector.broadcast %6 : vector<1x512xf32> to vector<256x512xf32>
    %8 = arith.addf %5, %7 : vector<256x512xf32>
    %cst_6 = arith.constant 1.702000e+00 : f32
    %9 = vector.broadcast %cst_6 : f32 to vector<256x512xf32>
    %10 = arith.mulf %9, %8 : vector<256x512xf32>
    %11 = arith.negf %10 : vector<256x512xf32>
    %12 = math.exp %11 : vector<256x512xf32>
    %cst_7 = arith.constant 1.000000e+00 : f32
    %13 = vector.broadcast %cst_7 : f32 to vector<256x512xf32>
    %14 = arith.addf %13, %12 : vector<256x512xf32>
    %15 = arith.divf %13, %14 : vector<256x512xf32>
    %16 = arith.mulf %8, %15 : vector<256x512xf32>
    %c0_8 = arith.constant 0 : index
    %c0_9 = arith.constant 0 : index
    %17 = vector.load %arg8[%c0_8, %c0_9] : memref<256x128xf32, #tpu.memory_space<vmem>>, vector<256x128xf32>
    %c0_10 = arith.constant 0 : index
    %c0_11 = arith.constant 0 : index
    %18 = vector.load %arg5[%c0_10, %c0_11] : memref<512x128xf32, #tpu.memory_space<vmem>>, vector<512x128xf32>
    %cst_12 = arith.constant dense<0.000000e+00> : vector<256x128xf32>
    %19 = tpu.matmul %16, %18, %cst_12 {dimension_numbers = #tpu.dot_dimension_numbers<[1], [0], [0], [1], [0, 0, 1, 1], [], []>} : vector<256x512xf32>, vector<512x128xf32>, vector<256x128xf32> -> vector<256x128xf32>
    %20 = arith.addf %17, %19 : vector<256x128xf32>
    %c0_13 = arith.constant 0 : index
    %c0_14 = arith.constant 0 : index
    %21 = vector.load %arg8[%c0_13, %c0_14] : memref<256x128xf32, #tpu.memory_space<vmem>>, vector<256x128xf32>
    tpu.vector_store %arg8[%c0_13, %c0_14], %20 {strides = array<i32>} : memref<256x128xf32, #tpu.memory_space<vmem>>, vector<256x128xf32>,
    %c1_i32 = arith.constant 1 : i32
    %22 = arith.cmpi eq, %arg1, %c1_i32 : i32
    %23 = arith.extui %22 : i1 to i32
    %c0_i32_15 = arith.constant 0 : i32
    %24 = arith.cmpi ne, %23, %c0_i32_15 : i32
    scf.if %24 {
      %c0_16 = arith.constant 0 : index
      %c0_17 = arith.constant 0 : index
      %25 = vector.load %arg8[%c0_16, %c0_17] : memref<256x128xf32, #tpu.memory_space<vmem>>, vector<256x128xf32>
      %c0_18 = arith.constant 0 : index
      %c0_19 = arith.constant 0 : index
      %26 = vector.load %arg6[%c0_18, %c0_19] : memref<1x128xf32, #tpu.memory_space<vmem>>, vector<1x128xf32>
      %27 = vector.broadcast %26 : vector<1x128xf32> to vector<256x128xf32>
      %28 = arith.addf %25, %27 : vector<256x128xf32>
      %c0_20 = arith.constant 0 : index
      %c0_21 = arith.constant 0 : index
      %29 = vector.load %arg7[%c0_20, %c0_21] : memref<256x128xf32, #tpu.memory_space<vmem>>, vector<256x128xf32>
      tpu.vector_store %arg7[%c0_20, %c0_21], %28 {strides = array<i32>} : memref<256x128xf32, #tpu.memory_space<vmem>>, vector<256x128xf32>,
    } else {
    }
    return
  }
  func.func @transform_0(%arg0: i32, %arg1: i32) -> (i32, i32) {
    %c0_i32 = arith.constant 0 : i32
    %c0_i32_0 = arith.constant 0 : i32
    return %arg0, %c0_i32 : i32, i32
  }
  func.func @transform_1(%arg0: i32, %arg1: i32) -> (i32, i32) {
    %c0_i32 = arith.constant 0 : i32
    %c0_i32_0 = arith.constant 0 : i32
    return %c0_i32, %arg1 : i32, i32
  }
  func.func @transform_2(%arg0: i32, %arg1: i32) -> (i32, i32) {
    %c0_i32 = arith.constant 0 : i32
    %c0_i32_0 = arith.constant 0 : i32
    return %c0_i32, %arg1 : i32, i32
  }
  func.func @transform_3(%arg0: i32, %arg1: i32) -> (i32, i32) {
    %c0_i32 = arith.constant 0 : i32
    %c0_i32_0 = arith.constant 0 : i32
    return %arg1, %c0_i32 : i32, i32
  }
  func.func @transform_4(%arg0: i32, %arg1: i32) -> (i32, i32) {
    %c0_i32 = arith.constant 0 : i32
    %c0_i32_0 = arith.constant 0 : i32
    %c0_i32_1 = arith.constant 0 : i32
    return %c0_i32, %c0_i32_0 : i32, i32
  }
  func.func @transform_5(%arg0: i32, %arg1: i32) -> (i32, i32) {
    %c0_i32 = arith.constant 0 : i32
    %c0_i32_0 = arith.constant 0 : i32
    return %arg0, %c0_i32 : i32, i32
  }
}

</mosaic_0001>

<bundles_post_ra>
// kernel: tpu_custom_call.1
= control target key start
LH: loop header
LB: loop body
LE: loop exit
PB: predicated region body
PF: predicated region fallthrough
CT: control target
= control target key end

     0   :  { %s5919_s0 = inlined_call_operand.hbm [shape: f32[512,128], index: 0, kind: input, shape index: {}]   ;;  %s5920_s1 = inlined_call_operand.hbm [shape: f32[128,1024], index: 1, kind: input, shape index: {}]   ;;  %s5921_s2 = inlined_call_operand.hbm [shape: f32[1,1024], index: 2, kind: input, shape index: {}]   ;;  %s5922_s3 = inlined_call_operand.hbm [shape: f32[1024,128], index: 3, kind: input, shape index: {}]   ;;  %s5923_s4 = inlined_call_operand.vmem [shape: f32[1,128], index: 4, kind: input, shape index: {}]   ;;  %s5924_s5 = inlined_call_operand.hbm [shape: f32[512,128], index: 5, kind: output, shape index: {}]  }
   0x1   :  { %5943 = sst [smem:[#allocation71_spill]] %s5919_s0 }
   0x2   :  { %5944 = sst [smem:[#allocation72_spill]] %s5920_s1 }
   0x3   :  { %5945 = sst [smem:[#allocation73_spill]] %s5923_s4 }
   0x4   :  { %5946 = sst [smem:[#allocation74_spill]] %s5924_s5 }
   0x5   :  { %10 = vsyncpa [#allocation4], 0 }
   0x6   :  { %12 = vsyncpa [#allocation4 + $0x1], 0 }
   0x7   :  { %13 = vsyncpa [#allocation7], 0 }
   0x8   :  { %15 = vsyncpa [#allocation7 + $0x1], 0 }
   0x9   :  { %16 = vsyncpa [#allocation10], 0 }
   0xa   :  { %18 = vsyncpa [#allocation10 + $0x1], 0 }
   0xb   :  { %19 = vsyncpa [#allocation5], 0 }
   0xc   :  { %21 = vsyncpa [#allocation5 + $0x1], 0  ;;  %s4207_s18 = smov 0   ;;  %s4209_s19 = smov 0  }
   0xd   :  { %s4211_s20 = smov 0   ;;  %s4213_s21 = smov 0  }
   0xe   :  { %s4215_s22 = smov 0   ;;  %s4217_s23 = smov 0  }
   0xf   :  { %s4219_s24 = smov 0   ;;  %s4221_s25 = smov 0  }
  0x10   :  { %s4223_s26 = smov 0   ;;  %s4225_s27 = smov 0  }
  0x11   :  { %s4227_s28 = smov 0  }
  0x12 LB: > { %5947 = sst [smem:[#allocation16_spill]] %s4128_s20  ;;  %p5927_p0 = scmp.eq.s32.totalorder %s4160_s28, 0  ;;  %s4160_s28 = sphi %s4227_s28, %s27_s28   ;;  %s4156_s27 = sphi %s4225_s27, %s6102_s27   ;;  %s4152_s26 = sphi %s4223_s26, %s6108_s26   ;;  %s4148_s25 = sphi %s4221_s25, %s6100_s25   ;;  %s4144_s24 = sphi %s4219_s24, %s6107_s24   ;;  %s4140_s23 = sphi %s4217_s23, %s6099_s23   ;;  %s4136_s22 = sphi %s4215_s22, %s6106_s22   ;;  %s4132_s21 = sphi %s4213_s21, %s6105_s21   ;;  %s4128_s20 = sphi %s4211_s20, %s6097_s20   ;;  %s4124_s19 = sphi %s4209_s19, %s6104_s19   ;;  %s4120_s18 = sphi %s4207_s18, %s6103_s18  }
  0x13   : > { %5948 = sst [smem:[#allocation17_spill]] %s4140_s23  ;;  %p79_p1 = scmp.ne.s32.totalorder %s4128_s20, %s4124_s19 }
  0x14   : > { %5949 = sst [smem:[#allocation18_spill]] %s4148_s25  ;;  %p5926_p3 = scmp.lt.s32.totalorder %s4160_s28, 4 }
  0x15   : > { %5950 = sst [smem:[#allocation19_spill]] %s4156_s27  ;;  %p81_p4 = por %p79_p1, %p5927_p0 }
  0x16   : > { %s232_s30 = sand.u32 1, %s4160_s28   ;;  %s4273_s6 = sand.u32 1, %s4128_s20  }
  0x17   : > { %s5925_s7 = sshll.u32 %s4273_s6, 9  ;;  %s3107_s8 = sshll.u32 %s4152_s26, 9 }
  0x18   : > { %s5951_s1 = sld [smem:[#allocation72_spill]]  ;;  %s236_s12 = scalar_lea.vmem [#allocation6], %s5925_s7 }
  0x19   : > { %s243_s13 = sshll.u32 %s236_s12, 4  ;;  %p4286_p5 = pnand %p5926_p3, %p81_p4  ;;  %s4290_s13 = int_to_ptr.vmem [resolvable:$true] %s243_s13 }
  0x1a   : > { %s4293_s15 = scalar_lea.sflag [#allocation7], %s232_s30 }
  0x1b   : > { %s5952_s14 = scalar_select %p4286_p5, 1, 0 }
  0x1c   : > { %p4299_p8 = pneg %p4286_p5 }
  0x1e   : > { %s4280_s11 = scalar_lea.hbm %s5951_s1, %s3107_s8  ;;  %s3915_s10 = scalar_lea.hbm %s5951_s1, 16384 }
  0x1f   : > { %s3910_s16 = scalar_lea.hbm %s4280_s11, 8192  ;;  %p3916_p11 = scmp.lt.u32.totalorder %s4280_s11, %s5951_s1 }
  0x20   : > { %p3911_p7 = scmp.ne.s32.totalorder %s4280_s11, %s3910_s16  ;;  %p3917_p12 = scmp.lt.u32.totalorder %s3915_s10, %s3910_s16 }
  0x21   : > { %p3919_p1 = scmp.lt.u32.totalorder %s3910_s16, %s4280_s11 }
  0x22   : > { %p3913_p9 = pnand %p4299_p8, %p3911_p7  ;;  %p3918_p13 = por %p3917_p12, %p3916_p11 }
  0x24   : > { %p3914_p10 = pneg %p3913_p9  ;;  %p3920_p4 = por %p3919_p1, %p3918_p13 }
  0x26   : > { %p3921_p3 = pnand %p3920_p4, %p3914_p10 }
  0x28   : > { %3924 = shalt.err (!%p3921_p3)
}
  0x29   : > { %s3925_s30 = scalar_lea.vmem %s4290_s13, 8192  ;;  %s4162_s8 = smov [#allocation6]  }
  0x2a   : > { %p3926_p7 = scmp.ne.s32.totalorder %s4290_s13, %s3925_s30  ;;  %s3930_s9 = sshll.u32 %s4162_s8, 4  ;;  %s3931_s9 = int_to_ptr.vmem [resolvable:$false] %s3930_s9 }
  0x2b   : > { %s3932_s7 = scalar_lea.vmem %s3931_s9, 16384  ;;  %p3933_p0 = scmp.lt.s32.totalorder %s4290_s13, %s3931_s9 }
  0x2c   : > { %p3928_p9 = pnand %p3926_p7, %p4299_p8  ;;  %p3934_p6 = scmp.lt.s32.totalorder %s3932_s7, %s3925_s30 }
  0x2e   : > { %p3929_p2 = pneg %p3928_p9  ;;  %p3935_p11 = por %p3934_p6, %p3933_p0 }
  0x30   : > { %p3936_p12 = pnand %p3935_p11, %p3929_p2 }
  0x32   : > { %3939 = shalt.err (!%p3936_p12)
}
  0x33   : > { %s4163_s16 = smov 1024   ;;  %s4164_s10 = smov 512  }
  0x34   : > { %s4165_s12 = smov 32   ;;  %p291_p0 = scmp.lt.s32.totalorder %s4160_s28, 5 }
  0x35   : > { %3287 = dma.hbm_to_vmem [thread:$0]  (!%p4286_p5), %s4280_s11, 8192, %s4290_s13, %s4293_s15, %s4163_s16, %s4164_s10, %s4165_s12  }
  0x36   : > { %p5954_p2 = scmp.ge.s32.totalorder %s4160_s28, 1  ;;  %s4331_s8 = sadd.s32 4294967295, %s4160_s28  }
  0x37   : > { %s2949_s9 = sadd.s32 4294967294, %s4160_s28   ;;  %s36_s7 = sadd.s32 1, %s4152_s26 }
  0x38   : > { %p4326_p3 = pnand %p5954_p2, %p291_p0  ;;  %s39_s29 = sadd.s32 1, %s4156_s27 }
  0x39   : > { %p37_p6 = scmp.ge.s32.totalorder %s36_s7, 2  ;;  %s46_s11 = sadd.s32 1, %s4140_s23 }
  0x3a   : > { %s5955_s30 = scalar_select %p4326_p3, 1, 0 }
  0x3b   : > { %p53_p10 = scmp.ne.s32.totalorder %s4140_s23, %s4136_s22  ;;  %p5929_p13 = scmp.ne.s32.totalorder %s4136_s22, %s4132_s21 }
  0x3c   : > { %s6110_s7 = smov (%p37_p6, %s36_s7), 0  ;;  %s6112_s29 = smov (!%p37_p6, %s39_s29), %s4156_s27 }
  0x3d   : > { %5956 = sst [smem:[#allocation20_spill]] %s6110_s7  ;;  %p5957_p1 = scmp.eq.s32.totalorder %s4160_s28, 0 }
  0x3e   : > { %p60_p7 = scmp.eq.s32.totalorder %s4331_s8, 0  ;;  %p41_p9 = scmp.ge.s32.totalorder %s6112_s29, 2 }
  0x3f   : > { %p4349_p4 = por %p5957_p1, %p53_p10  ;;  %s69_s16 = ssub.s32 %s4152_s26, %s6110_s7 }
  0x40   : > { %p4359_p11 = por %p60_p7, %p5929_p13  ;;  %p70_p12 = scmp.eq.s32.totalorder %s69_s16, 0 }
  0x41   : > { %s6114_s29 = smov (%p41_p9, %s6112_s29), 0  ;;  %s5961_s12 = sadd.s32 1, %s4128_s20 }
  0x42   : > { %s5959_s10 = scalar_select %p4359_p11, 1, 0 }
  0x43   : > { %5960 = sst [smem:[#allocation21_spill]] %s6114_s29  ;;  %s43_s5 = ssub.s32 %s4156_s27, %s6114_s29 }
  0x44   : > { %s4368_s1 = scalar_select %p70_p12, %s4128_s20, %s5961_s12  }
  0x45   : > { %p5963_p0 = scmp.ne.s32.totalorder %s4124_s19, %s4120_s18  ;;  %p44_p6 = scmp.eq.s32.totalorder %s43_s5, 0 }
  0x46   : > { %5962 = sst [smem:[#allocation22_spill]] %s4368_s1  ;;  %p182_p1 = scmp.eq.s32.totalorder %s4331_s8, 3 }
  0x47   : > { %p4375_p2 = por %p5963_p0, %p60_p7  ;;  %p188_p13 = scmp.eq.s32.totalorder %s2949_s9, 3 }
  0x48   : > { %s211_s7 = sand.u32 1, %s4140_s23   ;;  %p4387_p9 = por %p182_p1, %p53_p10 }
  0x49   : > { %s5964_s25 = scalar_select %p4375_p2, 1, 0 }
  0x4a   : > { %s4382_s16 = scalar_select %p44_p6, %s4140_s23, %s46_s11  }
  0x4b   : > { %s5966_s4 = scalar_select %p4387_p9, 1, 0 }
  0x4c   : > { %5965 = sst [smem:[#allocation23_spill]] %s4382_s16  ;;  %p5967_p12 = scmp.ne.s32.totalorder %s4136_s22, %s4132_s21 }
  0x4d   : > { %s2952_s18 = sshll.u32 %s211_s7, 8  ;;  %s3106_s29 = sshll.u32 %s4156_s27, 12 }
  0x4e   : > { %p4394_p11 = por %p188_p13, %p5967_p12  ;;  %s5970_s0 = sld [smem:[#allocation71_spill]] }
  0x4f   : > { %s215_s9 = scalar_lea.vmem [#allocation3], %s2952_s18  ;;  %p5971_p10 = scmp.lt.s32.totalorder %s4160_s28, 4 }
  0x50   : > { %s5968_s12 = scalar_select %p4394_p11, 1, 0 }
  0x51   : > { %s222_s11 = sshll.u32 %s215_s9, 4  ;;  %p4410_p13 = pnand %p5971_p10, %p4349_p4  ;;  %s4404_s11 = int_to_ptr.vmem [resolvable:$true] %s222_s11 }
  0x52   : > { %5969 = sst [smem:[#allocation24_spill]] %s5968_s12  ;;  %s2958_s27 = sshll.u32 %s4273_s6, 2 }
  0x53   : > { %s4415_s1 = scalar_lea.sflag [#allocation4], %s211_s7  ;;  %p3942_p0 = pneg %p4410_p13 }
  0x54   : > { %s4402_s5 = scalar_lea.hbm %s5970_s0, %s3106_s29  ;;  %s3945_s18 = scalar_lea.hbm %s5970_s0, 8192 }
  0x55   : > { %s3940_s20 = scalar_lea.hbm %s4402_s5, 4096  ;;  %p3946_p4 = scmp.lt.u32.totalorder %s4402_s5, %s5970_s0 }
  0x56   : > { %p3941_p7 = scmp.ne.s32.totalorder %s4402_s5, %s3940_s20  ;;  %p3947_p12 = scmp.lt.u32.totalorder %s3945_s18, %s3940_s20 }
  0x57   : > { %p3949_p11 = scmp.lt.u32.totalorder %s3940_s20, %s4402_s5 }
  0x58   : > { %p3943_p6 = pnand %p3942_p0, %p3941_p7  ;;  %p3948_p10 = por %p3947_p12, %p3946_p4 }
  0x5a   : > { %p3944_p1 = pneg %p3943_p6  ;;  %p3950_p9 = por %p3949_p11, %p3948_p10 }
  0x5c   : > { %p3951_p2 = pnand %p3950_p9, %p3944_p1 }
  0x5e   : > { %3954 = shalt.err (!%p3951_p2)
}
  0x5f   : > { %s3955_s7 = scalar_lea.vmem %s4404_s11, 4096  ;;  %s4166_s29 = smov [#allocation3]  }
  0x60   : > { %p3956_p7 = scmp.ne.s32.totalorder %s4404_s11, %s3955_s7  ;;  %s3960_s13 = sshll.u32 %s4166_s29, 4  ;;  %s3961_s13 = int_to_ptr.vmem [resolvable:$false] %s3960_s13 }
  0x61   : > { %s3962_s23 = scalar_lea.vmem %s3961_s13, 8192  ;;  %p3963_p5 = scmp.lt.s32.totalorder %s4404_s11, %s3961_s13 }
  0x62   : > { %p3958_p6 = pnand %p3956_p7, %p3942_p0  ;;  %p3964_p4 = scmp.lt.s32.totalorder %s3962_s23, %s3955_s7 }
  0x64   : > { %p3959_p3 = pneg %p3958_p6  ;;  %p3965_p12 = por %p3964_p4, %p3963_p5 }
  0x66   : > { %p3966_p11 = pnand %p3965_p12, %p3959_p3 }
  0x68   : > { %3969 = shalt.err (!%p3966_p11)
}
  0x69   : > { %s4167_s20 = smov 128   ;;  %s4168_s18 = smov 8  }
  0x6a   : > { %3284 = dma.hbm_to_vmem [thread:$0]  (!%p4410_p13), %s4402_s5, 4096, %s4404_s11, %s4415_s1, %s4167_s20, %s4167_s20, %s4168_s18  }
  0x6b   : > { %s3108_s9 = sshll.u32 %s4152_s26, 6  ;;  %s257_s23 = scalar_lea.vmem [#allocation8], %s2958_s27 }
  0x6c   : > { %s4450_s13 = scalar_lea.hbm %s5921_s2, %s3108_s9  ;;  %s265_s0 = sshll.u32 %s257_s23, 4  ;;  %s266_s0 = int_to_ptr.vmem [resolvable:$true] %s265_s0 }
  0x6d   : > { %s3970_s12 = scalar_lea.hbm %s4450_s13, 64  ;;  %s3975_s11 = scalar_lea.hbm %s5921_s2, 128 }
  0x6e   : > { %p3971_p5 = scmp.ne.s32.totalorder %s4450_s13, %s3970_s12  ;;  %p3976_p9 = scmp.lt.u32.totalorder %s4450_s13, %s5921_s2 }
  0x6f   : > { %p3977_p13 = scmp.lt.u32.totalorder %s3975_s11, %s3970_s12  ;;  %p3979_p1 = scmp.lt.u32.totalorder %s3970_s12, %s4450_s13 }
  0x70   : > { %p3973_p3 = pnand %p3971_p5, %p4299_p8 }
  0x71   : > { %p3978_p0 = por %p3977_p13, %p3976_p9 }
  0x72   : > { %p3974_p2 = pneg %p3973_p3 }
  0x73   : > { %p3980_p10 = por %p3979_p1, %p3978_p0 }
  0x75   : > { %p3981_p7 = pnand %p3980_p10, %p3974_p2 }
  0x77   : > { %3984 = shalt.err (!%p3981_p7)
}
  0x78   : > { %s3985_s27 = scalar_lea.vmem %s266_s0, 64  ;;  %s4169_s29 = smov [#allocation8]  }
  0x79   : > { %p3986_p6 = scmp.ne.s32.totalorder %s266_s0, %s3985_s27  ;;  %s3990_s7 = sshll.u32 %s4169_s29, 4  ;;  %s3991_s7 = int_to_ptr.vmem [resolvable:$false] %s3990_s7 }
  0x7a   : > { %s3992_s23 = scalar_lea.vmem %s3991_s7, 128  ;;  %p3993_p11 = scmp.lt.s32.totalorder %s266_s0, %s3991_s7 }
  0x7b   : > { %p3988_p4 = pnand %p3986_p6, %p4299_p8  ;;  %p3994_p5 = scmp.lt.s32.totalorder %s3992_s23, %s3985_s27 }
  0x7d   : > { %p3989_p12 = pneg %p3988_p4  ;;  %p3995_p3 = por %p3994_p5, %p3993_p11 }
  0x7f   : > { %p3996_p9 = pnand %p3995_p3, %p3989_p12 }
  0x81   : > { %3999 = shalt.err (!%p3996_p9)
}
  0x82   : > { %p5973_p13 = scmp.ne.s32.totalorder %s5952_s14, 0  ;;  %s3109_s12 = sshll.u32 %s4152_s26, 13 }
  0x83   : > { %s4476_s11 = scalar_lea.hbm %s5922_s3, %s3109_s12  ;;  %s5974_s1 = sshll.u32 %s4273_s6, 9 }
  0x84   : > { %3290 = dma.hbm_to_vmem [thread:$0]  (!%p5973_p13), %s4450_s13, 64, %s266_s0, %s4293_s15  }
  0x85   : > { %s276_s9 = scalar_lea.vmem [#allocation9], %s5974_s1  ;;  %s273_s29 = scalar_lea.sflag [#allocation10], %s4273_s6 }
  0x86   : > { %s283_s27 = sshll.u32 %s276_s9, 4  ;;  %s4000_s7 = scalar_lea.hbm %s4476_s11, 8192  ;;  %s4480_s27 = int_to_ptr.vmem [resolvable:$true] %s283_s27 }
  0x87   : > { %p4001_p2 = scmp.ne.s32.totalorder %s4476_s11, %s4000_s7  ;;  %s4005_s13 = scalar_lea.hbm %s5922_s3, 16384 }
  0x88   : > { %p4006_p10 = scmp.lt.u32.totalorder %s4476_s11, %s5922_s3  ;;  %p4007_p7 = scmp.lt.u32.totalorder %s4005_s13, %s4000_s7 }
  0x89   : > { %p4003_p0 = pnand %p4001_p2, %p4299_p8  ;;  %p4009_p4 = scmp.lt.u32.totalorder %s4000_s7, %s4476_s11 }
  0x8a   : > { %p4008_p6 = por %p4007_p7, %p4006_p10 }
  0x8b   : > { %p4004_p1 = pneg %p4003_p0 }
  0x8c   : > { %p4010_p12 = por %p4009_p4, %p4008_p6 }
  0x8e   : > { %p4011_p11 = pnand %p4010_p12, %p4004_p1 }
  0x90   : > { %4014 = shalt.err (!%p4011_p11)
}
  0x91   : > { %s4015_s16 = scalar_lea.vmem %s4480_s27, 8192  ;;  %s4170_s5 = smov [#allocation9]  }
  0x92   : > { %p4016_p5 = scmp.ne.s32.totalorder %s4480_s27, %s4015_s16  ;;  %s4020_s1 = sshll.u32 %s4170_s5, 4  ;;  %s4021_s1 = int_to_ptr.vmem [resolvable:$false] %s4020_s1 }
  0x93   : > { %s4022_s9 = scalar_lea.vmem %s4021_s1, 16384  ;;  %p4023_p2 = scmp.lt.s32.totalorder %s4480_s27, %s4021_s1 }
  0x94   : > { %p4018_p3 = pnand %p4016_p5, %p4299_p8  ;;  %p4024_p0 = scmp.lt.s32.totalorder %s4022_s9, %s4015_s16 }
  0x96   : > { %p4019_p9 = pneg %p4018_p3  ;;  %p4025_p10 = por %p4024_p0, %p4023_p2 }
  0x98   : > { %p4026_p7 = pnand %p4025_p10, %p4019_p9 }
  0x9a   : > { %4029 = shalt.err (!%p4026_p7)
}
  0x9b   : > { %3293 = dma.hbm_to_vmem [thread:$0]  (!%p5973_p13), %s4476_s11, 8192, %s4480_s27, %s273_s29, %s4167_s20, %s4167_s20, %s4168_s18  }
  0x9c   : > { %p5975_p8 = scmp.ne.s32.totalorder %s5955_s30, 0 }
  0x9e   : > { %295 = sbr.rel (%p5975_p8) target bundleno = 975 (0x3cf), region = 40 }
  0xa5   : > { %s4512_s17 = sand.u32 1, %s4136_s22   ;;  %p5976_p1 = scmp.ne.s32.totalorder %s5959_s10, 0 }
  0xa6   : > { %s2965_s7 = sshll.u32 %s4512_s17, 8  ;;  %s298_s0 = scalar_lea.sflag [#allocation4], %s4512_s17 }
  0xa7   : > { %s4516_s14 = scalar_lea.vmem [#allocation3], %s2965_s7 }
  0xa8   : > { %4103 = dma.done.wait (%p5976_p1), %s298_s0, 4096  }
  0xa9   : > { %4105 = vsyncadd (%p5976_p1), %s298_s0, 4294963200  ;;  %s306_s6 = sand.u32 1, %s4331_s8   ;;  %s308_s30 = sand.u32 1, %s4124_s19  }
  0xaa   : > { %s2966_s20 = sshll.u32 %s308_s30, 9  ;;  %s307_s18 = scalar_lea.sflag [#allocation7], %s306_s6 }
  0xab   : > { %s4524_s11 = scalar_lea.vmem [#allocation6], %s2966_s20  ;;  %p5977_p13 = scmp.ne.s32.totalorder %s5964_s25, 0 }
  0xad   : > { %4107 = dma.done.wait (%p5977_p13), %s307_s18, 8256  }
  0xae   : > { %4109 = vsyncadd (%p5977_p13), %s307_s18, 4294959040  ;;  %s2967_s27 = sshll.u32 %s308_s30, 2  ;;  %s325_s10 = scalar_lea.sflag [#allocation10], %s308_s30 }
  0xaf   : > { %s4530_s29 = scalar_lea.vmem [#allocation8], %s2967_s27  ;;  %s4532_s15 = scalar_lea.vmem [#allocation9], %s2966_s20 }
  0xb0   : > { %4111 = dma.done.wait (%p5977_p13), %s325_s10, 8192  }
  0xb1   : > { %4113 = vsyncadd (%p5977_p13), %s325_s10, 4294959104  ;;  %s4538_s8 = scalar_lea.vmem [#allocation11], %s2965_s7  ;;  %p2970_p6 = scmp.ne.s32.totalorder %s4144_s24, 0 }
  0xb2   : > { %v4171_v0 = vmov (!%p2970_p6), 0.0  }
  0xb3   : > { %378 = sbr.rel (%p2970_p6) target bundleno = 195 (0xc3), region = 60  ;;  %379 = vst [vmem:[#allocation2] sm:$0xff] (!%p2970_p6), %v4171_v0  ;;  %380 = vst [vmem:[#allocation2 + $0x8] sm:$0xff] (!%p2970_p6), %v4171_v0 }
  0xb4   : > { %381 = vst [vmem:[#allocation2 + $0x10] sm:$0xff] (!%p2970_p6), %v4171_v0  ;;  %382 = vst [vmem:[#allocation2 + $0x18] sm:$0xff] (!%p2970_p6), %v4171_v0 }
  0xb5   : > { %383 = vst [vmem:[#allocation2 + $0x20] sm:$0xff] (!%p2970_p6), %v4171_v0  ;;  %384 = vst [vmem:[#allocation2 + $0x28] sm:$0xff] (!%p2970_p6), %v4171_v0 }
  0xb6   : > { %385 = vst [vmem:[#allocation2 + $0x30] sm:$0xff] (!%p2970_p6), %v4171_v0  ;;  %386 = vst [vmem:[#allocation2 + $0x38] sm:$0xff] (!%p2970_p6), %v4171_v0 }
  0xb7   : > { %387 = vst [vmem:[#allocation2 + $0x40] sm:$0xff] (!%p2970_p6), %v4171_v0  ;;  %388 = vst [vmem:[#allocation2 + $0x48] sm:$0xff] (!%p2970_p6), %v4171_v0 }
  0xb8   : > { %389 = vst [vmem:[#allocation2 + $0x50] sm:$0xff] (!%p2970_p6), %v4171_v0  ;;  %390 = vst [vmem:[#allocation2 + $0x58] sm:$0xff] (!%p2970_p6), %v4171_v0 }
  0xb9   : > { %391 = vst [vmem:[#allocation2 + $0x60] sm:$0xff] (!%p2970_p6), %v4171_v0  ;;  %392 = vst [vmem:[#allocation2 + $0x68] sm:$0xff] (!%p2970_p6), %v4171_v0 }
  0xba   : > { %393 = vst [vmem:[#allocation2 + $0x70] sm:$0xff] %v4171_v0  ;;  %394 = vst [vmem:[#allocation2 + $0x78] sm:$0xff] %v4171_v0 }
  0xbb   : > { %395 = vst [vmem:[#allocation2 + $0x80] sm:$0xff] %v4171_v0  ;;  %396 = vst [vmem:[#allocation2 + $0x88] sm:$0xff] %v4171_v0 }
  0xbc   : > { %397 = vst [vmem:[#allocation2 + $0x90] sm:$0xff] %v4171_v0  ;;  %398 = vst [vmem:[#allocation2 + $0x98] sm:$0xff] %v4171_v0 }
  0xbd   : > { %399 = vst [vmem:[#allocation2 + $0xa0] sm:$0xff] %v4171_v0  ;;  %400 = vst [vmem:[#allocation2 + $0xa8] sm:$0xff] %v4171_v0 }
  0xbe   : > { %401 = vst [vmem:[#allocation2 + $0xb0] sm:$0xff] %v4171_v0  ;;  %402 = vst [vmem:[#allocation2 + $0xb8] sm:$0xff] %v4171_v0 }
  0xbf   : > { %403 = vst [vmem:[#allocation2 + $0xc0] sm:$0xff] %v4171_v0  ;;  %404 = vst [vmem:[#allocation2 + $0xc8] sm:$0xff] %v4171_v0 }
  0xc0   : > { %405 = vst [vmem:[#allocation2 + $0xd0] sm:$0xff] %v4171_v0  ;;  %406 = vst [vmem:[#allocation2 + $0xd8] sm:$0xff] %v4171_v0 }
  0xc1   : > { %407 = vst [vmem:[#allocation2 + $0xe0] sm:$0xff] %v4171_v0  ;;  %408 = vst [vmem:[#allocation2 + $0xe8] sm:$0xff] %v4171_v0 }
  0xc2   : > { %409 = vst [vmem:[#allocation2 + $0xf0] sm:$0xff] %v4171_v0  ;;  %410 = vst [vmem:[#allocation2 + $0xf8] sm:$0xff] %v4171_v0 }
  0xc3 PF: > { %v444_v1 = vld [vmem:[%s4524_s11 + $0x8] sm:$0xff]  ;;  %v446_v3 = vld [vmem:[%s4524_s11 + $0x18] sm:$0xff]  ;;  %v443_v6 = vld [vmem:[%s4524_s11] sm:$0xff]  ;;  %v4172_v8 = vmov 0.0   ;;  %p3099_p4 = scmp.ne.s32.totalorder %s4144_s24, 1 }
  0xc4   : > { %v448_v2 = vld [vmem:[%s4524_s11 + $0x28] sm:$0xff]  ;;  %v450_v5 = vld [vmem:[%s4524_s11 + $0x38] sm:$0xff]  ;;  %v447_v7 = vld [vmem:[%s4524_s11 + $0x20] sm:$0xff]  ;;  %593 = vmatprep.mubr.f32.mxu0 %v4172_v8  ;;  %850 = vmatprep.mubr.f32.mxu1 %v4172_v8  ;;  %s6090_s23 = sld [smem:[#allocation73_spill]] (!%p3099_p4) }
  0xc5   : > { %v3111_v4 = vpack.c.bf16 %v448_v2, %v444_v1  ;;  %v3143_v9 = vpack.c.bf16 %v450_v5, %v446_v3  ;;  %v3113_v10 = vpack.c.bf16 %v447_v7, %v443_v6  ;;  %v445_v11 = vld [vmem:[%s4524_s11 + $0x10] sm:$0xff]  ;;  %v452_v13 = vld [vmem:[%s4524_s11 + $0x48] sm:$0xff]  ;;  %v454_v16 = vld [vmem:[%s4524_s11 + $0x58] sm:$0xff] }
  0xc6   : > { %v449_v12 = vld [vmem:[%s4524_s11 + $0x30] sm:$0xff]  ;;  %v456_v15 = vld [vmem:[%s4524_s11 + $0x68] sm:$0xff]  ;;  %v458_v17 = vld [vmem:[%s4524_s11 + $0x78] sm:$0xff] }
  0xc7   : > { %3112 = vmatprep.subr.bf16.mxu0 %v3111_v4  ;;  %v3145_v14 = vpack.c.bf16 %v449_v12, %v445_v11  ;;  %3144 = vmatprep.subr.bf16.mxu1 %v3143_v9  ;;  %v3115_v18 = vpack.c.bf16 %v456_v15, %v452_v13  ;;  %v3147_v19 = vpack.c.bf16 %v458_v17, %v454_v16  ;;  %v451_v20 = vld [vmem:[%s4524_s11 + $0x40] sm:$0xff]  ;;  %v453_v22 = vld [vmem:[%s4524_s11 + $0x50] sm:$0xff]  ;;  %v460_v25 = vld [vmem:[%s4524_s11 + $0x88] sm:$0xff] }
  0xc8   : > { %3114 = vmatpush1.bf16.msra.mxu0 %v3113_v10  ;;  %v455_v21 = vld [vmem:[%s4524_s11 + $0x60] sm:$0xff]  ;;  %v457_v24 = vld [vmem:[%s4524_s11 + $0x70] sm:$0xff]  ;;  %v464_v26 = vld [vmem:[%s4524_s11 + $0xa8] sm:$0xff] }
  0xc9   : > { %3146 = vmatpush1.bf16.msra.mxu1 %v3145_v14  ;;  %v3117_v23 = vpack.c.bf16 %v455_v21, %v451_v20  ;;  %3116 = vmatprep.subr.bf16.mxu0 %v3115_v18  ;;  %v3149_v27 = vpack.c.bf16 %v457_v24, %v453_v22  ;;  %v3119_v28 = vpack.c.bf16 %v464_v26, %v460_v25  ;;  %v462_v29 = vld [vmem:[%s4524_s11 + $0x98] sm:$0xff]  ;;  %v459_v31 = vld [vmem:[%s4524_s11 + $0x80] sm:$0xff]  ;;  %v461_v34 = vld [vmem:[%s4524_s11 + $0x90] sm:$0xff] }
  0xca   : > { %3148 = vmatprep.subr.bf16.mxu1 %v3147_v19  ;;  %v466_v30 = vld [vmem:[%s4524_s11 + $0xb8] sm:$0xff]  ;;  %v463_v33 = vld [vmem:[%s4524_s11 + $0xa0] sm:$0xff]  ;;  %v465_v35 = vld [vmem:[%s4524_s11 + $0xb0] sm:$0xff] }
  0xcb   : > { %v3151_v32 = vpack.c.bf16 %v466_v30, %v462_v29  ;;  %v3121_v36 = vpack.c.bf16 %v463_v33, %v459_v31  ;;  %v468_v37 = vld [vmem:[%s4524_s11 + $0xc8] sm:$0xff]  ;;  %v470_v39 = vld [vmem:[%s4524_s11 + $0xd8] sm:$0xff]  ;;  %v3153_v40 = vpack.c.bf16 %v465_v35, %v461_v34  ;;  %v467_v43 = vld [vmem:[%s4524_s11 + $0xc0] sm:$0xff] }
  0xcc   : > { %3118 = vmatpush1.bf16.msra.mxu0 %v3117_v23  ;;  %v472_v38 = vld [vmem:[%s4524_s11 + $0xe8] sm:$0xff]  ;;  %v474_v42 = vld [vmem:[%s4524_s11 + $0xf8] sm:$0xff]  ;;  %v471_v44 = vld [vmem:[%s4524_s11 + $0xe0] sm:$0xff] }
  0xcd   : > { %3150 = vmatpush1.bf16.msra.mxu1 %v3149_v27  ;;  %3120 = vmatprep.subr.bf16.mxu0 %v3119_v28  ;;  %v3123_v41 = vpack.c.bf16 %v472_v38, %v468_v37  ;;  %v3155_v45 = vpack.c.bf16 %v474_v42, %v470_v39  ;;  %v469_v46 = vld [vmem:[%s4524_s11 + $0xd0] sm:$0xff]  ;;  %v476_v48 = vld [vmem:[%s4524_s11 + $0x108] sm:$0xff]  ;;  %v478_v50 = vld [vmem:[%s4524_s11 + $0x118] sm:$0xff]  ;;  %v3125_v52 = vpack.c.bf16 %v471_v44, %v467_v43 }
  0xce   : > { %3152 = vmatprep.subr.bf16.mxu1 %v3151_v32  ;;  %v473_v47 = vld [vmem:[%s4524_s11 + $0xf0] sm:$0xff]  ;;  %v480_v49 = vld [vmem:[%s4524_s11 + $0x128] sm:$0xff]  ;;  %v482_v51 = vld [vmem:[%s4524_s11 + $0x138] sm:$0xff] }
  0xcf   : > { %v3157_v53 = vpack.c.bf16 %v473_v47, %v469_v46  ;;  %v3127_v54 = vpack.c.bf16 %v480_v49, %v476_v48  ;;  %v475_v55 = vld [vmem:[%s4524_s11 + $0x100] sm:$0xff]  ;;  %v477_v57 = vld [vmem:[%s4524_s11 + $0x110] sm:$0xff]  ;;  %v3159_v58 = vpack.c.bf16 %v482_v51, %v478_v50  ;;  %v484_v60 = vld [vmem:[%s4524_s11 + $0x148] sm:$0xff] }
  0xd0   : > { %3122 = vmatpush1.bf16.msra.mxu0 %v3121_v36  ;;  %v479_v56 = vld [vmem:[%s4524_s11 + $0x120] sm:$0xff]  ;;  %v481_v59 = vld [vmem:[%s4524_s11 + $0x130] sm:$0xff]  ;;  %v488_v61 = vld [vmem:[%s4524_s11 + $0x168] sm:$0xff] }
  0xd1   : > { %3154 = vmatpush1.bf16.msra.mxu1 %v3153_v40  ;;  %3124 = vmatprep.subr.bf16.mxu0 %v3123_v41  ;;  %v486_v62 = vld [vmem:[%s4524_s11 + $0x158] sm:$0xff]  ;;  %v3129_v0 = vpack.c.bf16 %v479_v56, %v475_v55  ;;  %v3161_v1 = vpack.c.bf16 %v481_v59, %v477_v57  ;;  %v3131_v2 = vpack.c.bf16 %v488_v61, %v484_v60  ;;  %v483_v3 = vld [vmem:[%s4524_s11 + $0x140] sm:$0xff]  ;;  %v485_v5 = vld [vmem:[%s4524_s11 + $0x150] sm:$0xff]  ;;  %v4173_v40 = vmov 0.0|0.0  }
  0xd2   : > { %3156 = vmatprep.subr.bf16.mxu1 %v3155_v45  ;;  %v490_v63 = vld [vmem:[%s4524_s11 + $0x178] sm:$0xff]  ;;  %v487_v4 = vld [vmem:[%s4524_s11 + $0x160] sm:$0xff]  ;;  %v489_v7 = vld [vmem:[%s4524_s11 + $0x170] sm:$0xff] }
  0xd3   : > { %v3163_v6 = vpack.c.bf16 %v490_v63, %v486_v62  ;;  %v492_v9 = vld [vmem:[%s4524_s11 + $0x188] sm:$0xff]  ;;  %v494_v11 = vld [vmem:[%s4524_s11 + $0x198] sm:$0xff]  ;;  %v3133_v13 = vpack.c.bf16 %v487_v4, %v483_v3  ;;  %v3165_v14 = vpack.c.bf16 %v489_v7, %v485_v5  ;;  %v491_v16 = vld [vmem:[%s4524_s11 + $0x180] sm:$0xff] }
  0xd4   : > { %3126 = vmatpush1.bf16.msra.mxu0 %v3125_v52  ;;  %v496_v10 = vld [vmem:[%s4524_s11 + $0x1a8] sm:$0xff]  ;;  %v498_v12 = vld [vmem:[%s4524_s11 + $0x1b8] sm:$0xff]  ;;  %v495_v17 = vld [vmem:[%s4524_s11 + $0x1a0] sm:$0xff] }
  0xd5   : > { %3158 = vmatpush1.bf16.msra.mxu1 %v3157_v53  ;;  %3128 = vmatprep.subr.bf16.mxu0 %v3127_v54  ;;  %v3135_v15 = vpack.c.bf16 %v496_v10, %v492_v9  ;;  %v493_v18 = vld [vmem:[%s4524_s11 + $0x190] sm:$0xff]  ;;  %v3167_v19 = vpack.c.bf16 %v498_v12, %v494_v11  ;;  %v500_v21 = vld [vmem:[%s4524_s11 + $0x1c8] sm:$0xff]  ;;  %v502_v23 = vld [vmem:[%s4524_s11 + $0x1d8] sm:$0xff]  ;;  %v3137_v25 = vpack.c.bf16 %v495_v17, %v491_v16 }
  0xd6   : > { %3160 = vmatprep.subr.bf16.mxu1 %v3159_v58  ;;  %v497_v20 = vld [vmem:[%s4524_s11 + $0x1b0] sm:$0xff]  ;;  %v504_v22 = vld [vmem:[%s4524_s11 + $0x1e8] sm:$0xff]  ;;  %v506_v24 = vld [vmem:[%s4524_s11 + $0x1f8] sm:$0xff] }
  0xd7   : > { %v3169_v26 = vpack.c.bf16 %v497_v20, %v493_v18  ;;  %v3139_v27 = vpack.c.bf16 %v504_v22, %v500_v21  ;;  %v499_v28 = vld [vmem:[%s4524_s11 + $0x1c0] sm:$0xff]  ;;  %v3171_v30 = vpack.c.bf16 %v506_v24, %v502_v23  ;;  %v501_v31 = vld [vmem:[%s4524_s11 + $0x1d0] sm:$0xff]  ;;  %v2099_v35 = vld [vmem:[%s4532_s15] sm:$0xff] }
  0xd8   : > { %3130 = vmatpush1.bf16.msra.mxu0 %v3129_v0  ;;  %v503_v29 = vld [vmem:[%s4524_s11 + $0x1e0] sm:$0xff]  ;;  %v505_v32 = vld [vmem:[%s4524_s11 + $0x1f0] sm:$0xff]  ;;  %v2131_v38 = vld [vmem:[%s4532_s15 + $0x100] sm:$0xff] }
  0xd9   : > { %3162 = vmatpush1.bf16.msra.mxu1 %v3161_v1  ;;  %3132 = vmatprep.subr.bf16.mxu0 %v3131_v2  ;;  %v3141_v33 = vpack.c.bf16 %v503_v29, %v499_v28  ;;  %v3173_v34 = vpack.c.bf16 %v505_v32, %v501_v31  ;;  %v2100_v36 = vld [vmem:[%s4532_s15 + $0x8] sm:$0xff]  ;;  %v411_v37 = vld [vmem:[%s4516_s14] sm:$0xff]  ;;  %v2101_v43 = vld [vmem:[%s4532_s15 + $0x10] sm:$0xff] }
  0xda   : > { %3164 = vmatprep.subr.bf16.mxu1 %v3163_v6  ;;  %v2132_v39 = vld [vmem:[%s4532_s15 + $0x108] sm:$0xff]  ;;  %v3176_v41 = vpack.c.bf16 %v2100_v36, %v2099_v35  ;;  %v2102_v44 = vld [vmem:[%s4532_s15 + $0x18] sm:$0xff]  ;;  %v2133_v45 = vld [vmem:[%s4532_s15 + $0x110] sm:$0xff] }
  0xdb   : > { %v3224_v42 = vpack.c.bf16 %v2132_v39, %v2131_v38  ;;  %v2134_v46 = vld [vmem:[%s4532_s15 + $0x118] sm:$0xff]  ;;  %v412_v47 = vld [vmem:[%s4516_s14 + $0x8] sm:$0xff]  ;;  %v3179_v48 = vpack.c.bf16 %v2102_v44, %v2101_v43  ;;  %v2104_v51 = vld [vmem:[%s4532_s15 + $0x28] sm:$0xff] }
  0xdc   : > { %3134 = vmatpush1.bf16.msra.mxu0 %v3133_v13  ;;  %v3227_v49 = vpack.c.bf16 %v2134_v46, %v2133_v45  ;;  %v2103_v50 = vld [vmem:[%s4532_s15 + $0x20] sm:$0xff]  ;;  %v2136_v53 = vld [vmem:[%s4532_s15 + $0x128] sm:$0xff]  ;;  %v2105_v57 = vld [vmem:[%s4532_s15 + $0x30] sm:$0xff] }
  0xdd   : > { %3166 = vmatpush1.bf16.msra.mxu1 %v3165_v14  ;;  %3136 = vmatprep.subr.bf16.mxu0 %v3135_v15  ;;  %v2135_v52 = vld [vmem:[%s4532_s15 + $0x120] sm:$0xff]  ;;  %v413_v54 = vld [vmem:[%s4516_s14 + $0x10] sm:$0xff]  ;;  %v3182_v55 = vpack.c.bf16 %v2104_v51, %v2103_v50  ;;  %v2106_v58 = vld [vmem:[%s4532_s15 + $0x38] sm:$0xff] }
  0xde   : > { %3168 = vmatprep.subr.bf16.mxu1 %v3167_v19  ;;  %v3230_v56 = vpack.c.bf16 %v2136_v53, %v2135_v52  ;;  %v2137_v59 = vld [vmem:[%s4532_s15 + $0x130] sm:$0xff]  ;;  %v2138_v60 = vld [vmem:[%s4532_s15 + $0x138] sm:$0xff]  ;;  %v3185_v62 = vpack.c.bf16 %v2106_v58, %v2105_v57  ;;  %v2107_v0 = vld [vmem:[%s4532_s15 + $0x40] sm:$0xff] }
  0xdf   : > { %v414_v61 = vld [vmem:[%s4516_s14 + $0x18] sm:$0xff]  ;;  %v3233_v63 = vpack.c.bf16 %v2138_v60, %v2137_v59  ;;  %v2108_v1 = vld [vmem:[%s4532_s15 + $0x48] sm:$0xff]  ;;  %v2139_v2 = vld [vmem:[%s4532_s15 + $0x140] sm:$0xff] }
  0xe0   : > { %3138 = vmatpush1.bf16.msra.mxu0 %v3137_v25  ;;  %v2140_v3 = vld [vmem:[%s4532_s15 + $0x148] sm:$0xff]  ;;  %v415_v4 = vld [vmem:[%s4516_s14 + $0x20] sm:$0xff]  ;;  %v3188_v5 = vpack.c.bf16 %v2108_v1, %v2107_v0  ;;  %v2109_v7 = vld [vmem:[%s4532_s15 + $0x50] sm:$0xff] }
  0xe1   : > { %3170 = vmatpush1.bf16.msra.mxu1 %v3169_v26  ;;  %3140 = vmatprep.subr.bf16.mxu0 %v3139_v27  ;;  %v3236_v6 = vpack.c.bf16 %v2140_v3, %v2139_v2  ;;  %v2110_v9 = vld [vmem:[%s4532_s15 + $0x58] sm:$0xff]  ;;  %v2141_v10 = vld [vmem:[%s4532_s15 + $0x150] sm:$0xff]  ;;  %v416_v12 = vld [vmem:[%s4516_s14 + $0x28] sm:$0xff] }
  0xe2   : > { %3172 = vmatprep.subr.bf16.mxu1 %v3171_v30  ;;  %v2142_v11 = vld [vmem:[%s4532_s15 + $0x158] sm:$0xff]  ;;  %v3191_v13 = vpack.c.bf16 %v2110_v9, %v2109_v7  ;;  %v2111_v15 = vld [vmem:[%s4532_s15 + $0x60] sm:$0xff]  ;;  %v2112_v16 = vld [vmem:[%s4532_s15 + $0x68] sm:$0xff] }
  0xe3   : > { %v3239_v14 = vpack.c.bf16 %v2142_v11, %v2141_v10  ;;  %v2143_v17 = vld [vmem:[%s4532_s15 + $0x160] sm:$0xff]  ;;  %v2144_v18 = vld [vmem:[%s4532_s15 + $0x168] sm:$0xff]  ;;  %v3194_v20 = vpack.c.bf16 %v2112_v16, %v2111_v15  ;;  %v2113_v22 = vld [vmem:[%s4532_s15 + $0x70] sm:$0xff] }
  0xe4   : > { %3142 = vmatpush1.bf16.msra.mxu0 %v3141_v33  ;;  %v417_v19 = vld [vmem:[%s4516_s14 + $0x30] sm:$0xff]  ;;  %v3242_v21 = vpack.c.bf16 %v2144_v18, %v2143_v17  ;;  %v2114_v23 = vld [vmem:[%s4532_s15 + $0x78] sm:$0xff]  ;;  %v2145_v24 = vld [vmem:[%s4532_s15 + $0x170] sm:$0xff] }
  0xe5   : > { %3174 = vmatpush1.bf16.msra.mxu1 %v3173_v34  ;;  %3175 = vmatprep.subr.bf16.mxu0 %v4173_v40  ;;  %v2146_v25 = vld [vmem:[%s4532_s15 + $0x178] sm:$0xff]  ;;  %v418_v26 = vld [vmem:[%s4516_s14 + $0x38] sm:$0xff]  ;;  %v3197_v27 = vpack.c.bf16 %v2114_v23, %v2113_v22  ;;  %v2115_v29 = vld [vmem:[%s4532_s15 + $0x80] sm:$0xff] }
  0xe6   : > { %3223 = vmatprep.subr.bf16.mxu1 %v4173_v40  ;;  %v3245_v28 = vpack.c.bf16 %v2146_v25, %v2145_v24  ;;  %v2116_v30 = vld [vmem:[%s4532_s15 + $0x88] sm:$0xff]  ;;  %v2147_v31 = vld [vmem:[%s4532_s15 + $0x180] sm:$0xff]  ;;  %v419_v33 = vld [vmem:[%s4516_s14 + $0x40] sm:$0xff] }
  0xe7   : > { %594 = vmatmul.mubr.f32.vlgmr.msra.gmra.mrb[0].mxu0 %v411_v37  ;;  %v2148_v32 = vld [vmem:[%s4532_s15 + $0x188] sm:$0xff]  ;;  %v3200_v34 = vpack.c.bf16 %v2116_v30, %v2115_v29  ;;  %v2117_v36 = vld [vmem:[%s4532_s15 + $0x90] sm:$0xff]  ;;  %v2150_v39 = vld [vmem:[%s4532_s15 + $0x198] sm:$0xff] }
  0xe8   : > { %851 = vmatmul.mubr.f32.vlgmr.msra.gmra.mrb[0].mxu1 %v411_v37  ;;  %599 = vmatprep.mubr.f32.mxu0 %v4172_v8  ;;  %v3248_v35 = vpack.c.bf16 %v2148_v32, %v2147_v31  ;;  %v2118_v37 = vld [vmem:[%s4532_s15 + $0x98] sm:$0xff]  ;;  %v2149_v38 = vld [vmem:[%s4532_s15 + $0x190] sm:$0xff]  ;;  %v2119_v44 = vld [vmem:[%s4532_s15 + $0xa0] sm:$0xff] }
  0xe9   : > { %856 = vmatprep.mubr.f32.mxu1 %v4172_v8  ;;  %3177 = vmatpush1.bf16.msra.mxu0 %v3176_v41  ;;  %v420_v41 = vld [vmem:[%s4516_s14 + $0x48] sm:$0xff]  ;;  %v3251_v43 = vpack.c.bf16 %v2150_v39, %v2149_v38  ;;  %v2120_v45 = vld [vmem:[%s4532_s15 + $0xa8] sm:$0xff]  ;;  %v2121_v51 = vld [vmem:[%s4532_s15 + $0xb0] sm:$0xff]  ;;  %v509_v38 = vlaneseq }
  0xea   : > { %3225 = vmatpush1.bf16.msra.mxu1 %v3224_v42  ;;  %3178 = vmatprep.subr.bf16.mxu0 %v4173_v40  ;;  %v3203_v42 = vpack.c.bf16 %v2118_v37, %v2117_v36  ;;  %v2151_v46 = vld [vmem:[%s4532_s15 + $0x1a0] sm:$0xff]  ;;  %v2122_v52 = vld [vmem:[%s4532_s15 + $0xb8] sm:$0xff]  ;;  %v2153_v53 = vld [vmem:[%s4532_s15 + $0x1b0] sm:$0xff] }
  0xeb   : > { %600 = vmatmul.mubr.f32.gmra.mrb[2].mxu0 %v412_v47  ;;  %3226 = vmatprep.subr.bf16.mxu1 %v4173_v40  ;;  %v423_v58 = vld [vmem:[%s4516_s14 + $0x60] sm:$0xff]  ;;  %v424_v59 = vld [vmem:[%s4516_s14 + $0x68] sm:$0xff]  ;;  %v425_v60 = vld [vmem:[%s4516_s14 + $0x70] sm:$0xff]  ;;  %v510_v39 = vshrl.u32 %v509_v38, 7 }
  0xec   : > { %857 = vmatmul.mubr.f32.gmra.mrb[2].mxu1 %v412_v47  ;;  %605 = vmatprep.mubr.f32.mxu0 %v4172_v8  ;;  %v2152_v47 = vld [vmem:[%s4532_s15 + $0x1a8] sm:$0xff]  ;;  %v430_v1 = vld [vmem:[%s4516_s14 + $0x98] sm:$0xff]  ;;  %v431_v2 = vld [vmem:[%s4516_s14 + $0xa0] sm:$0xff] }
  0xed   : > { %862 = vmatprep.mubr.f32.mxu1 %v4172_v8  ;;  %3180 = vmatpush1.bf16.msra.mxu0 %v3179_v48  ;;  %v421_v48 = vld [vmem:[%s4516_s14 + $0x50] sm:$0xff]  ;;  %v3254_v50 = vpack.c.bf16 %v2152_v47, %v2151_v46  ;;  %v432_v3 = vld [vmem:[%s4516_s14 + $0xa8] sm:$0xff]  ;;  %v438_v16 = vld [vmem:[%s4516_s14 + $0xd8] sm:$0xff] }
  0xee   : > { %3228 = vmatpush1.bf16.msra.mxu1 %v3227_v49  ;;  %3181 = vmatprep.subr.bf16.mxu0 %v4173_v40  ;;  %v3206_v49 = vpack.c.bf16 %v2120_v45, %v2119_v44  ;;  %v429_v0 = vld [vmem:[%s4516_s14 + $0x90] sm:$0xff]  ;;  %v436_v7 = vld [vmem:[%s4516_s14 + $0xc8] sm:$0xff]  ;;  %v2125_v17 = vld [vmem:[%s4532_s15 + $0xd0] sm:$0xff]  ;;  %v515_v44 = vsub.s32 1, %v510_v39  ;;  %v523_v45 = vsub.s32 3, %v510_v39 }
  0xef   : > { %606 = vmatmul.mubr.f32.gmra.mrb[4].mxu0 %v413_v54  ;;  %3229 = vmatprep.subr.bf16.mxu1 %v4173_v40  ;;  %v437_v9 = vld [vmem:[%s4516_s14 + $0xd0] sm:$0xff]  ;;  %v2123_v10 = vld [vmem:[%s4532_s15 + $0xc0] sm:$0xff]  ;;  %v2126_v18 = vld [vmem:[%s4532_s15 + $0xd8] sm:$0xff] }
  0xf0   : > { %863 = vmatmul.mubr.f32.gmra.mrb[4].mxu1 %v413_v54  ;;  %611 = vmatprep.mubr.f32.mxu0 %v4172_v8  ;;  %v2154_v54 = vld [vmem:[%s4532_s15 + $0x1b8] sm:$0xff]  ;;  %v2124_v11 = vld [vmem:[%s4532_s15 + $0xc8] sm:$0xff]  ;;  %v440_v24 = vld [vmem:[%s4516_s14 + $0xe8] sm:$0xff] }
  0xf1   : > { %868 = vmatprep.mubr.f32.mxu1 %v4172_v8  ;;  %3183 = vmatpush1.bf16.msra.mxu0 %v3182_v55  ;;  %v422_v55 = vld [vmem:[%s4516_s14 + $0x58] sm:$0xff]  ;;  %v3257_v57 = vpack.c.bf16 %v2154_v54, %v2153_v53  ;;  %v439_v23 = vld [vmem:[%s4516_s14 + $0xe0] sm:$0xff]  ;;  %v441_v25 = vld [vmem:[%s4516_s14 + $0xf0] sm:$0xff] }
  0xf2   : > { %3231 = vmatpush1.bf16.msra.mxu1 %v3230_v56  ;;  %3184 = vmatprep.subr.bf16.mxu0 %v4173_v40  ;;  %v3209_v56 = vpack.c.bf16 %v2122_v52, %v2121_v51  ;;  %v2159_v29 = vld [vmem:[%s4532_s15 + $0x1e0] sm:$0xff]  ;;  %v2160_v31 = vld [vmem:[%s4532_s15 + $0x1e8] sm:$0xff]  ;;  %v2162_v36 = vld [vmem:[%s4532_s15 + $0x1f8] sm:$0xff] }
  0xf3   : > { %612 = vmatmul.mubr.f32.gmra.mrb[6].mxu0 %v414_v61  ;;  %3232 = vmatprep.subr.bf16.mxu1 %v4173_v40  ;;  %v3266_v32 = vpack.c.bf16 %v2160_v31, %v2159_v29 }
  0xf4   : > { %869 = vmatmul.mubr.f32.gmra.mrb[6].mxu1 %v414_v61  ;;  %617 = vmatprep.mubr.f32.mxu0 %v4172_v8  ;;  %v426_v61 = vld [vmem:[%s4516_s14 + $0x78] sm:$0xff] }
  0xf5   : > { %874 = vmatprep.mubr.f32.mxu1 %v4172_v8  ;;  %3186 = vmatpush1.bf16.msra.mxu0 %v3185_v62  ;;  %v427_v62 = vld [vmem:[%s4516_s14 + $0x80] sm:$0xff] }
  0xf6   : > { %3234 = vmatpush1.bf16.msra.mxu1 %v3233_v63  ;;  %3187 = vmatprep.subr.bf16.mxu0 %v4173_v40  ;;  %v428_v63 = vld [vmem:[%s4516_s14 + $0x88] sm:$0xff] }
  0xf7   : > { %618 = vmatmul.mubr.f32.gmra.mrb[8].mxu0 %v415_v4  ;;  %3235 = vmatprep.subr.bf16.mxu1 %v4173_v40 }
  0xf8   : > { %875 = vmatmul.mubr.f32.gmra.mrb[8].mxu1 %v415_v4  ;;  %623 = vmatprep.mubr.f32.mxu0 %v4172_v8  ;;  %v433_v4 = vld [vmem:[%s4516_s14 + $0xb0] sm:$0xff] }
  0xf9   : > { %880 = vmatprep.mubr.f32.mxu1 %v4172_v8  ;;  %3189 = vmatpush1.bf16.msra.mxu0 %v3188_v5  ;;  %v434_v5 = vld [vmem:[%s4516_s14 + $0xb8] sm:$0xff] }
  0xfa   : > { %3237 = vmatpush1.bf16.msra.mxu1 %v3236_v6  ;;  %3190 = vmatprep.subr.bf16.mxu0 %v4173_v40  ;;  %v435_v6 = vld [vmem:[%s4516_s14 + $0xc0] sm:$0xff] }
  0xfb   : > { %624 = vmatmul.mubr.f32.gmra.mrb[10].mxu0 %v416_v12  ;;  %3238 = vmatprep.subr.bf16.mxu1 %v4173_v40 }
  0xfc   : > { %881 = vmatmul.mubr.f32.gmra.mrb[10].mxu1 %v416_v12  ;;  %629 = vmatprep.mubr.f32.mxu0 %v4172_v8  ;;  %v2155_v12 = vld [vmem:[%s4532_s15 + $0x1c0] sm:$0xff] }
  0xfd   : > { %886 = vmatprep.mubr.f32.mxu1 %v4172_v8  ;;  %3192 = vmatpush1.bf16.msra.mxu0 %v3191_v13  ;;  %v3212_v13 = vpack.c.bf16 %v2124_v11, %v2123_v10 }
  0xfe   : > { %3240 = vmatpush1.bf16.msra.mxu1 %v3239_v14  ;;  %3193 = vmatprep.subr.bf16.mxu0 %v4173_v40  ;;  %v2156_v14 = vld [vmem:[%s4532_s15 + $0x1c8] sm:$0xff] }
  0xff   : > { %630 = vmatmul.mubr.f32.gmra.mrb[12].mxu0 %v417_v19  ;;  %3241 = vmatprep.subr.bf16.mxu1 %v4173_v40  ;;  %v3260_v15 = vpack.c.bf16 %v2156_v14, %v2155_v12 }
 0x100   : > { %887 = vmatmul.mubr.f32.gmra.mrb[12].mxu1 %v417_v19  ;;  %635 = vmatprep.mubr.f32.mxu0 %v4172_v8  ;;  %v2157_v19 = vld [vmem:[%s4532_s15 + $0x1d0] sm:$0xff] }
 0x101   : > { %892 = vmatprep.mubr.f32.mxu1 %v4172_v8  ;;  %3195 = vmatpush1.bf16.msra.mxu0 %v3194_v20  ;;  %v3215_v20 = vpack.c.bf16 %v2126_v18, %v2125_v17 }
 0x102   : > { %3243 = vmatpush1.bf16.msra.mxu1 %v3242_v21  ;;  %3196 = vmatprep.subr.bf16.mxu0 %v4173_v40  ;;  %v2158_v21 = vld [vmem:[%s4532_s15 + $0x1d8] sm:$0xff] }
 0x103   : > { %636 = vmatmul.mubr.f32.gmra.mrb[14].mxu0 %v418_v26  ;;  %3244 = vmatprep.subr.bf16.mxu1 %v4173_v40  ;;  %v3263_v22 = vpack.c.bf16 %v2158_v21, %v2157_v19 }
 0x104   : > { %893 = vmatmul.mubr.f32.gmra.mrb[14].mxu1 %v418_v26  ;;  %641 = vmatprep.mubr.f32.mxu0 %v4172_v8  ;;  %v442_v26 = vld [vmem:[%s4516_s14 + $0xf8] sm:$0xff] }
 0x105   : > { %898 = vmatprep.mubr.f32.mxu1 %v4172_v8  ;;  %3198 = vmatpush1.bf16.msra.mxu0 %v3197_v27  ;;  %v2127_v27 = vld [vmem:[%s4532_s15 + $0xe0] sm:$0xff] }
 0x106   : > { %3246 = vmatpush1.bf16.msra.mxu1 %v3245_v28  ;;  %3199 = vmatprep.subr.bf16.mxu0 %v4173_v40  ;;  %v2128_v28 = vld [vmem:[%s4532_s15 + $0xe8] sm:$0xff] }
 0x107   : > { %642 = vmatmul.mubr.f32.gmra.mrb[16].mxu0 %v419_v33  ;;  %3247 = vmatprep.subr.bf16.mxu1 %v4173_v40  ;;  %v3218_v30 = vpack.c.bf16 %v2128_v28, %v2127_v27 }
 0x108   : > { %899 = vmatmul.mubr.f32.gmra.mrb[16].mxu1 %v419_v33  ;;  %647 = vmatprep.mubr.f32.mxu0 %v4172_v8  ;;  %v2129_v33 = vld [vmem:[%s4532_s15 + $0xf0] sm:$0xff] }
 0x109   : > { %904 = vmatprep.mubr.f32.mxu1 %v4172_v8  ;;  %3201 = vmatpush1.bf16.msra.mxu0 %v3200_v34  ;;  %v2130_v34 = vld [vmem:[%s4532_s15 + $0xf8] sm:$0xff] }
 0x10a   : > { %3249 = vmatpush1.bf16.msra.mxu1 %v3248_v35  ;;  %3202 = vmatprep.subr.bf16.mxu0 %v4173_v40  ;;  %v2161_v35 = vld [vmem:[%s4532_s15 + $0x1f0] sm:$0xff] }
 0x10b   : > { %648 = vmatmul.mubr.f32.gmra.mrb[18].mxu0 %v420_v41  ;;  %3250 = vmatprep.subr.bf16.mxu1 %v4173_v40  ;;  %v3269_v37 = vpack.c.bf16 %v2162_v36, %v2161_v35 }
 0x10c   : > { %905 = vmatmul.mubr.f32.gmra.mrb[18].mxu1 %v420_v41  ;;  %653 = vmatprep.mubr.f32.mxu0 %v4172_v8  ;;  %v511_v41 = vsub.s32 0, %v510_v39 }
 0x10d   : > { %910 = vmatprep.mubr.f32.mxu1 %v4172_v8  ;;  %3204 = vmatpush1.bf16.msra.mxu0 %v3203_v42  ;;  %v507_v42 = vld [vmem:[%s4530_s29] sm:$0xf] }
 0x10e   : > { %3252 = vmatpush1.bf16.msra.mxu1 %v3251_v43  ;;  %3205 = vmatprep.subr.bf16.mxu0 %v4173_v40  ;;  %v519_v43 = vsub.s32 2, %v510_v39  ;;  %v4798_v46 = vrot.slane %v507_v42, %v511_v41 }
 0x10f   : > { %654 = vmatmul.mubr.f32.gmra.mrb[20].mxu0 %v421_v48  ;;  %3253 = vmatprep.subr.bf16.mxu1 %v4173_v40 }
 0x110   : > { %911 = vmatmul.mubr.f32.gmra.mrb[20].mxu1 %v421_v48  ;;  %659 = vmatprep.mubr.f32.mxu0 %v4172_v8  ;;  %v4800_v47 = vrot.slane %v507_v42, %v519_v43  ;;  %v4804_v48 = vrot.slane %v507_v42, %v523_v45 }
 0x111   : > { %916 = vmatprep.mubr.f32.mxu1 %v4172_v8  ;;  %3207 = vmatpush1.bf16.msra.mxu0 %v3206_v49 }
 0x112   : > { %3255 = vmatpush1.bf16.msra.mxu1 %v3254_v50  ;;  %3208 = vmatprep.subr.bf16.mxu0 %v4173_v40 }
 0x113   : > { %660 = vmatmul.mubr.f32.gmra.mrb[22].mxu0 %v422_v55  ;;  %3256 = vmatprep.subr.bf16.mxu1 %v4173_v40 }
 0x114   : > { %917 = vmatmul.mubr.f32.gmra.mrb[22].mxu1 %v422_v55  ;;  %665 = vmatprep.mubr.f32.mxu0 %v4172_v8 }
 0x115   : > { %922 = vmatprep.mubr.f32.mxu1 %v4172_v8  ;;  %3210 = vmatpush1.bf16.msra.mxu0 %v3209_v56 }
 0x116   : > { %3258 = vmatpush1.bf16.msra.mxu1 %v3257_v57  ;;  %3211 = vmatprep.subr.bf16.mxu0 %v4173_v40 }
 0x117   : > { %666 = vmatmul.mubr.f32.gmra.mrb[24].mxu0 %v423_v58  ;;  %3259 = vmatprep.subr.bf16.mxu1 %v4173_v40 }
 0x118   : > { %923 = vmatmul.mubr.f32.gmra.mrb[24].mxu1 %v423_v58  ;;  %671 = vmatprep.mubr.f32.mxu0 %v4172_v8 }
 0x119   : > { %928 = vmatprep.mubr.f32.mxu1 %v4172_v8  ;;  %3213 = vmatpush1.bf16.msra.mxu0 %v3212_v13 }
 0x11a   : > { %3261 = vmatpush1.bf16.msra.mxu1 %v3260_v15  ;;  %3214 = vmatprep.subr.bf16.mxu0 %v4173_v40 }
 0x11b   : > { %672 = vmatmul.mubr.f32.gmra.mrb[26].mxu0 %v424_v59  ;;  %3262 = vmatprep.subr.bf16.mxu1 %v4173_v40 }
 0x11c   : > { %929 = vmatmul.mubr.f32.gmra.mrb[26].mxu1 %v424_v59  ;;  %677 = vmatprep.mubr.f32.mxu0 %v4172_v8 }
 0x11d   : > { %934 = vmatprep.mubr.f32.mxu1 %v4172_v8  ;;  %3216 = vmatpush1.bf16.msra.mxu0 %v3215_v20 }
 0x11e   : > { %3264 = vmatpush1.bf16.msra.mxu1 %v3263_v22  ;;  %3217 = vmatprep.subr.bf16.mxu0 %v4173_v40 }
 0x11f   : > { %678 = vmatmul.mubr.f32.gmra.mrb[28].mxu0 %v425_v60  ;;  %3265 = vmatprep.subr.bf16.mxu1 %v4173_v40 }
 0x120   : > { %935 = vmatmul.mubr.f32.gmra.mrb[28].mxu1 %v425_v60  ;;  %683 = vmatprep.mubr.f32.mxu0 %v4172_v8 }
 0x121   : > { %940 = vmatprep.mubr.f32.mxu1 %v4172_v8  ;;  %3219 = vmatpush1.bf16.msra.mxu0 %v3218_v30 }
 0x122   : > { %3267 = vmatpush1.bf16.msra.mxu1 %v3266_v32  ;;  %3220 = vmatprep.subr.bf16.mxu0 %v4173_v40 }
 0x123   : > { %684 = vmatmul.mubr.f32.gmra.mrb[30].mxu0 %v426_v61  ;;  %3268 = vmatprep.subr.bf16.mxu1 %v4173_v40  ;;  %v4802_v40 = vrot.slane %v507_v42, %v515_v44 }
 0x124   : > { %941 = vmatmul.mubr.f32.gmra.mrb[30].mxu1 %v426_v61  ;;  %689 = vmatprep.mubr.f32.mxu0 %v4172_v8 }
 0x125   : > { %946 = vmatprep.mubr.f32.mxu1 %v4172_v8 }
 0x126   : > { %3270 = vmatpush1.bf16.msra.mxu1 %v3269_v37 }
 0x127   : > { %690 = vmatmul.mubr.f32.gmra.mrb[32].mxu0 %v427_v62 }
 0x128   : > { %947 = vmatmul.mubr.f32.gmra.mrb[32].mxu1 %v427_v62  ;;  %695 = vmatprep.mubr.f32.mxu0 %v4172_v8 }
 0x129   : > { %952 = vmatprep.mubr.f32.mxu1 %v4172_v8 }
 0x12b   : > { %696 = vmatmul.mubr.f32.gmra.mrb[34].mxu0 %v428_v63 }
 0x12c   : > { %953 = vmatmul.mubr.f32.gmra.mrb[34].mxu1 %v428_v63  ;;  %701 = vmatprep.mubr.f32.mxu0 %v4172_v8 }
 0x12d   : > { %958 = vmatprep.mubr.f32.mxu1 %v4172_v8 }
 0x12f   : > { %702 = vmatmul.mubr.f32.gmra.mrb[36].mxu0 %v429_v0 }
 0x130   : > { %959 = vmatmul.mubr.f32.gmra.mrb[36].mxu1 %v429_v0  ;;  %707 = vmatprep.mubr.f32.mxu0 %v4172_v8 }
 0x131   : > { %964 = vmatprep.mubr.f32.mxu1 %v4172_v8 }
 0x133   : > { %708 = vmatmul.mubr.f32.gmra.mrb[38].mxu0 %v430_v1 }
 0x134   : > { %965 = vmatmul.mubr.f32.gmra.mrb[38].mxu1 %v430_v1  ;;  %713 = vmatprep.mubr.f32.mxu0 %v4172_v8 }
 0x135   : > { %970 = vmatprep.mubr.f32.mxu1 %v4172_v8 }
 0x137   : > { %714 = vmatmul.mubr.f32.gmra.mrb[40].mxu0 %v431_v2 }
 0x138   : > { %971 = vmatmul.mubr.f32.gmra.mrb[40].mxu1 %v431_v2  ;;  %719 = vmatprep.mubr.f32.mxu0 %v4172_v8 }
 0x139   : > { %976 = vmatprep.mubr.f32.mxu1 %v4172_v8 }
 0x13b   : > { %720 = vmatmul.mubr.f32.gmra.mrb[42].mxu0 %v432_v3 }
 0x13c   : > { %977 = vmatmul.mubr.f32.gmra.mrb[42].mxu1 %v432_v3  ;;  %725 = vmatprep.mubr.f32.mxu0 %v4172_v8 }
 0x13d   : > { %982 = vmatprep.mubr.f32.mxu1 %v4172_v8 }
 0x13f   : > { %726 = vmatmul.mubr.f32.gmra.mrb[44].mxu0 %v433_v4 }
 0x140   : > { %983 = vmatmul.mubr.f32.gmra.mrb[44].mxu1 %v433_v4  ;;  %731 = vmatprep.mubr.f32.mxu0 %v4172_v8 }
 0x141   : > { %988 = vmatprep.mubr.f32.mxu1 %v4172_v8 }
 0x143   : > { %732 = vmatmul.mubr.f32.gmra.mrb[46].mxu0 %v434_v5 }
 0x144   : > { %989 = vmatmul.mubr.f32.gmra.mrb[46].mxu1 %v434_v5  ;;  %737 = vmatprep.mubr.f32.mxu0 %v4172_v8 }
 0x145   : > { %994 = vmatprep.mubr.f32.mxu1 %v4172_v8 }
 0x147   : > { %738 = vmatmul.mubr.f32.gmra.mrb[48].mxu0 %v435_v6 }
 0x148   : > { %995 = vmatmul.mubr.f32.gmra.mrb[48].mxu1 %v435_v6  ;;  %743 = vmatprep.mubr.f32.mxu0 %v4172_v8 }
 0x149   : > { %1000 = vmatprep.mubr.f32.mxu1 %v4172_v8 }
 0x14b   : > { %744 = vmatmul.mubr.f32.gmra.mrb[50].mxu0 %v436_v7 }
 0x14c   : > { %1001 = vmatmul.mubr.f32.gmra.mrb[50].mxu1 %v436_v7  ;;  %749 = vmatprep.mubr.f32.mxu0 %v4172_v8 }
 0x14d   : > { %1006 = vmatprep.mubr.f32.mxu1 %v4172_v8 }
 0x14f   : > { %750 = vmatmul.mubr.f32.gmra.mrb[52].mxu0 %v437_v9 }
 0x150   : > { %1007 = vmatmul.mubr.f32.gmra.mrb[52].mxu1 %v437_v9  ;;  %755 = vmatprep.mubr.f32.mxu0 %v4172_v8 }
 0x151   : > { %1012 = vmatprep.mubr.f32.mxu1 %v4172_v8 }
 0x153   : > { %756 = vmatmul.mubr.f32.gmra.mrb[54].mxu0 %v438_v16 }
 0x154   : > { %1013 = vmatmul.mubr.f32.gmra.mrb[54].mxu1 %v438_v16  ;;  %761 = vmatprep.mubr.f32.mxu0 %v4172_v8 }
 0x155   : > { %1018 = vmatprep.mubr.f32.mxu1 %v4172_v8 }
 0x157   : > { %762 = vmatmul.mubr.f32.gmra.mrb[56].mxu0 %v439_v23 }
 0x158   : > { %1019 = vmatmul.mubr.f32.gmra.mrb[56].mxu1 %v439_v23  ;;  %767 = vmatprep.mubr.f32.mxu0 %v4172_v8 }
 0x159   : > { %1024 = vmatprep.mubr.f32.mxu1 %v4172_v8 }
 0x15b   : > { %768 = vmatmul.mubr.f32.gmra.mrb[58].mxu0 %v440_v24 }
 0x15c   : > { %1025 = vmatmul.mubr.f32.gmra.mrb[58].mxu1 %v440_v24  ;;  %773 = vmatprep.mubr.f32.mxu0 %v4172_v8 }
 0x15d   : > { %1030 = vmatprep.mubr.f32.mxu1 %v4172_v8 }
 0x15f   : > { %774 = vmatmul.mubr.f32.gmra.mrb[60].mxu0 %v441_v25 }
 0x160   : > { %1031 = vmatmul.mubr.f32.gmra.mrb[60].mxu1 %v441_v25  ;;  %779 = vmatprep.mubr.f32.mxu0 %v4172_v8 }
 0x161   : > { %1036 = vmatprep.mubr.f32.mxu1 %v4172_v8  ;;  %v3221_v8 = vpack.c.bf16 %v2130_v34, %v2129_v33 }
 0x163   : > { %780 = vmatmul.mubr.f32.gmra.mrb[62].mxu0 %v442_v26 }
 0x164   : > { %1037 = vmatmul.mubr.f32.gmra.mrb[62].mxu1 %v442_v26  ;;  %3222 = vmatpush1.bf16.msra.mxu0 %v3221_v8 }
 0x1ba   : > { %v595_v49 = vpop.f32.mrb[0].mxu0 }
 0x1bb   : > { %v4807_v50 = vadd.f32 %v595_v49, %v4798_v46  ;;  %v852_v51 = vpop.f32.mrb[0].mxu1  ;;  %v597_v52 = vpop.f32.mrb[1].mxu0 }
 0x1bc   : > { %v4810_v53 = vadd.f32 %v852_v51, %v4800_v47  ;;  %v4813_v54 = vadd.f32 %v597_v52, %v4802_v40  ;;  %v854_v55 = vpop.f32.mrb[1].mxu1 }
 0x1bd   : > { %v2971_v56 = vmul.f32 -1.702, %v4807_v50  ;;  %v4817_v57 = vadd.f32 %v854_v55, %v4804_v48 }
 0x1be   : > { %v2973_v58 = vmul.f32 -1.702, %v4810_v53  ;;  %v2972_v59 = vmul.f32 -1.702, %v4813_v54  ;;  %v601_v60 = vpop.f32.mrb[2].mxu0 }
 0x1bf   : > { %v1299_v61 = vmul.f32 1.442695, %v2971_v56  ;;  %v2974_v62 = vmul.f32 -1.702, %v4817_v57  ;;  %v4823_v63 = vadd.f32 %v601_v60, %v4798_v46  ;;  %v858_v0 = vpop.f32.mrb[2].mxu1  ;;  %v603_v1 = vpop.f32.mrb[3].mxu0 }
 0x1c0   : > { %v1303_v2 = vmul.f32 1.442695, %v2973_v58  ;;  %v1301_v3 = vmul.f32 1.442695, %v2972_v59  ;;  %v4826_v4 = vadd.f32 %v858_v0, %v4800_v47  ;;  %v4829_v5 = vadd.f32 %v603_v1, %v4802_v40  ;;  %v860_v6 = vpop.f32.mrb[3].mxu1 }
 0x1c1   : > { %3398 = vpow2.f32 %v1299_v61  ;;  %v1305_v7 = vmul.f32 1.442695, %v2974_v62  ;;  %v2975_v9 = vmul.f32 -1.702, %v4823_v63  ;;  %v4833_v10 = vadd.f32 %v860_v6, %v4804_v48 }
 0x1c2   : > { %3400 = vpow2.f32 %v1303_v2  ;;  %v2977_v11 = vmul.f32 -1.702, %v4826_v4  ;;  %v2976_v12 = vmul.f32 -1.702, %v4829_v5  ;;  %v607_v13 = vpop.f32.mrb[4].mxu0 }
 0x1c3   : > { %3402 = vpow2.f32 %v1301_v3  ;;  %v1307_v14 = vmul.f32 1.442695, %v2975_v9  ;;  %v2978_v15 = vmul.f32 -1.702, %v4833_v10  ;;  %v4839_v16 = vadd.f32 %v607_v13, %v4798_v46  ;;  %v864_v17 = vpop.f32.mrb[4].mxu1  ;;  %v609_v18 = vpop.f32.mrb[5].mxu0 }
 0x1c4   : > { %3404 = vpow2.f32 %v1305_v7  ;;  %v1311_v19 = vmul.f32 1.442695, %v2977_v11  ;;  %v1309_v20 = vmul.f32 1.442695, %v2976_v12  ;;  %v4842_v21 = vadd.f32 %v864_v17, %v4800_v47  ;;  %v866_v22 = vpop.f32.mrb[5].mxu1 }
 0x1c5   : > { %3406 = vpow2.f32 %v1307_v14  ;;  %v1313_v23 = vmul.f32 1.442695, %v2978_v15  ;;  %v2979_v24 = vmul.f32 -1.702, %v4839_v16  ;;  %v4846_v25 = vadd.f32 %v609_v18, %v4802_v40 }
 0x1c6   : > { %3408 = vpow2.f32 %v1311_v19  ;;  %v2981_v26 = vmul.f32 -1.702, %v4842_v21  ;;  %v4850_v27 = vadd.f32 %v866_v22, %v4804_v48  ;;  %v613_v28 = vpop.f32.mrb[6].mxu0 }
 0x1c7   : > { %3410 = vpow2.f32 %v1309_v20  ;;  %v1315_v29 = vmul.f32 1.442695, %v2979_v24  ;;  %v2980_v30 = vmul.f32 -1.702, %v4846_v25  ;;  %v4854_v31 = vadd.f32 %v613_v28, %v4798_v46  ;;  %v870_v32 = vpop.f32.mrb[6].mxu1  ;;  %v615_v33 = vpop.f32.mrb[7].mxu0 }
 0x1c8   : > { %3412 = vpow2.f32 %v1313_v23  ;;  %v1319_v34 = vmul.f32 1.442695, %v2981_v26  ;;  %v2982_v35 = vmul.f32 -1.702, %v4850_v27  ;;  %v872_v8 = vpop.f32.mrb[7].mxu1  ;;  %v4859_v39 = vadd.f32 %v870_v32, %v4800_v47 }
 0x1c9   : > { %3414 = vpow2.f32 %v1315_v29  ;;  %v1317_v36 = vmul.f32 1.442695, %v2980_v30  ;;  %v2983_v37 = vmul.f32 -1.702, %v4854_v31  ;;  %v4862_v44 = vadd.f32 %v615_v33, %v4802_v40 }
 0x1ca   : > { %3416 = vpow2.f32 %v1319_v34  ;;  %v1321_v38 = vmul.f32 1.442695, %v2982_v35  ;;  %v619_v41 = vpop.f32.mrb[8].mxu0  ;;  %v2985_v61 = vmul.f32 -1.702, %v4859_v39  ;;  %v4867_v3 = vadd.f32 %v872_v8, %v4804_v48 }
 0x1cb   : > { %v3399_v42 = vpop.eup %3398  ;;  %3418 = vpow2.f32 %v1317_v36  ;;  %v1323_v43 = vmul.f32 1.442695, %v2983_v37  ;;  %v876_v45 = vpop.f32.mrb[8].mxu1  ;;  %v2984_v2 = vmul.f32 -1.702, %v4862_v44  ;;  %v4870_v12 = vadd.f32 %v619_v41, %v4798_v46 }
 0x1cc   : > { %v621_v49 = vpop.f32.mrb[9].mxu0  ;;  %v3401_v51 = vpop.eup %3400  ;;  %v1555_v52 = vadd.f32 1.0, %v3399_v42  ;;  %3420 = vpow2.f32 %v1321_v38  ;;  %v4873_v17 = vadd.f32 %v876_v45, %v4800_v47  ;;  %v1327_v20 = vmul.f32 1.442695, %v2985_v61 }
 0x1cd   : > { %v878_v55 = vpop.f32.mrb[9].mxu1  ;;  %v3403_v56 = vpop.eup %3402  ;;  %v1557_v58 = vadd.f32 1.0, %v3401_v51  ;;  %3422 = vpow2.f32 %v1323_v43  ;;  %v4876_v22 = vadd.f32 %v621_v49, %v4802_v40  ;;  %v1325_v28 = vmul.f32 1.442695, %v2984_v2 }
 0x1ce   : > { %v3405_v59 = vpop.eup %3404  ;;  %3424 = vrcp.f32 %v1555_v52  ;;  %v1556_v60 = vadd.f32 1.0, %v3403_v56  ;;  %v625_v62 = vpop.f32.mrb[10].mxu0  ;;  %v2986_v29 = vmul.f32 -1.702, %v4867_v3  ;;  %v2987_v34 = vmul.f32 -1.702, %v4870_v12 }
 0x1cf   : > { %v3407_v0 = vpop.eup %3406  ;;  %3426 = vrcp.f32 %v1557_v58  ;;  %v1558_v1 = vadd.f32 1.0, %v3405_v59  ;;  %v882_v6 = vpop.f32.mrb[10].mxu1  ;;  %v2989_v38 = vmul.f32 -1.702, %v4873_v17  ;;  %v4886_v41 = vadd.f32 %v878_v55, %v4804_v48 }
 0x1d0   : > { %v627_v7 = vpop.f32.mrb[11].mxu0  ;;  %v3409_v9 = vpop.eup %3408  ;;  %3428 = vrcp.f32 %v1556_v60  ;;  %v1559_v11 = vadd.f32 1.0, %v3407_v0  ;;  %v2988_v45 = vmul.f32 -1.702, %v4876_v22  ;;  %v4890_v49 = vadd.f32 %v625_v62, %v4798_v46 }
 0x1d1   : > { %v884_v13 = vpop.f32.mrb[11].mxu1  ;;  %v3411_v14 = vpop.eup %3410  ;;  %3430 = vrcp.f32 %v1558_v1  ;;  %v1561_v15 = vadd.f32 1.0, %v3409_v9  ;;  %v1329_v58 = vmul.f32 1.442695, %v2986_v29  ;;  %v4895_v59 = vadd.f32 %v882_v6, %v4800_v47 }
 0x1d2   : > { %v3413_v18 = vpop.eup %3412  ;;  %3432 = vrcp.f32 %v1559_v11  ;;  %v1560_v19 = vadd.f32 1.0, %v3411_v14  ;;  %v631_v23 = vpop.f32.mrb[12].mxu0  ;;  %v1331_v1 = vmul.f32 1.442695, %v2987_v34  ;;  %v4902_v62 = vadd.f32 %v627_v7, %v4802_v40 }
 0x1d3   : > { %v3415_v24 = vpop.eup %3414  ;;  %3434 = vrcp.f32 %v1561_v15  ;;  %v1562_v26 = vadd.f32 1.0, %v3413_v18  ;;  %v888_v30 = vpop.f32.mrb[12].mxu1  ;;  %v1335_v11 = vmul.f32 1.442695, %v2989_v38  ;;  %v2990_v14 = vmul.f32 -1.702, %v4886_v41 }
 0x1d4   : > { %v3417_v32 = vpop.eup %3416  ;;  %3436 = vrcp.f32 %v1560_v19  ;;  %v1563_v33 = vadd.f32 1.0, %v3415_v24  ;;  %v4880_v35 = vpop.f32.mrb[13].mxu0  ;;  %v4908_v6 = vadd.f32 %v884_v13, %v4804_v48  ;;  %v1333_v18 = vmul.f32 1.442695, %v2988_v45 }
 0x1d5   : > { %v4882_v8 = vpop.f32.mrb[13].mxu1  ;;  %v3419_v36 = vpop.eup %3418  ;;  %3438 = vrcp.f32 %v1562_v26  ;;  %v1565_v37 = vadd.f32 1.0, %v3417_v32  ;;  %v2991_v19 = vmul.f32 -1.702, %v4890_v49  ;;  %v4912_v24 = vadd.f32 %v631_v23, %v4798_v46 }
 0x1d6   : > { %v3421_v42 = vpop.eup %3420  ;;  %3440 = vrcp.f32 %v1563_v33  ;;  %v1564_v43 = vadd.f32 1.0, %v3419_v36  ;;  %v4892_v51 = vpop.f32.mrb[14].mxu0  ;;  %v2993_v32 = vmul.f32 -1.702, %v4895_v59  ;;  %v4919_v33 = vadd.f32 %v888_v30, %v4800_v47 }
 0x1d7   : > { %v3423_v52 = vpop.eup %3422  ;;  %3442 = vrcp.f32 %v1565_v37  ;;  %v1566_v56 = vadd.f32 1.0, %v3421_v42  ;;  %v4897_v60 = vpop.f32.mrb[14].mxu1  ;;  %v2992_v38 = vmul.f32 -1.702, %v4902_v62  ;;  %v1337_v30 = vmul.f32 1.442695, %v2990_v14 }
 0x1d8   : > { %v4899_v55 = vpop.f32.mrb[15].mxu0  ;;  %v3425_v61 = vpop.eup %3424  ;;  %3444 = vrcp.f32 %v1564_v43  ;;  %v1567_v0 = vadd.f32 1.0, %v3423_v52  ;;  %v2994_v43 = vmul.f32 -1.702, %v4908_v6  ;;  %v1339_v52 = vmul.f32 1.442695, %v2991_v19 }
 0x1d9   : > { %v4904_v2 = vpop.f32.mrb[15].mxu1  ;;  %v3427_v9 = vpop.eup %3426  ;;  %3446 = vrcp.f32 %v1566_v56  ;;  %v1939_v37 = vmul.f32 %v3425_v61, %v4807_v50  ;;  %v2995_v50 = vmul.f32 -1.702, %v4912_v24  ;;  %v1343_v61 = vmul.f32 1.442695, %v2993_v32 }
 0x1da   : > { %v3429_v15 = vpop.eup %3428  ;;  %3448 = vrcp.f32 %v1567_v0  ;;  %v4914_v7 = vpop.f32.mrb[16].mxu0 }
 0x1db   : > { %v3431_v26 = vpop.eup %3430  ;;  %v1940_v29 = vmul.f32 %v3429_v15, %v4813_v54  ;;  %3450 = vpow2.f32 %v1327_v20  ;;  %v4921_v13 = vpop.f32.mrb[16].mxu1  ;;  %v1941_v20 = vmul.f32 %v3427_v9, %v4810_v53  ;;  %v2997_v53 = vmul.f32 -1.702, %v4919_v33 }
 0x1dc   : > { %v4923_v34 = vpop.f32.mrb[17].mxu0  ;;  %v3433_v36 = vpop.eup %3432  ;;  %v1942_v23 = vmul.f32 %v3431_v26, %v4817_v57  ;;  %3452 = vpow2.f32 %v1325_v28  ;;  %v1341_v15 = vmul.f32 1.442695, %v2992_v38  ;;  %v1347_v32 = vmul.f32 1.442695, %v2995_v50 }
 0x1dd   : > { %v4928_v42 = vpop.f32.mrb[17].mxu1  ;;  %v3435_v54 = vpop.eup %3434  ;;  %3454 = vpow2.f32 %v1329_v58  ;;  %2227 = vmatprep.mubr.f32.mxu0 %v1940_v29  ;;  %v1943_v9 = vmul.f32 %v3433_v36, %v4823_v63  ;;  %v4951_v36 = vadd.f32 %v4880_v35, %v4802_v40  ;;  %v4966_v35 = vadd.f32 %v4882_v8, %v4804_v48 }
 0x1de   : > { %v3437_v45 = vpop.eup %3436  ;;  %3456 = vpow2.f32 %v1331_v1  ;;  %2452 = vmatprep.mubr.f32.mxu1 %v1942_v23  ;;  %2228 = vmatmul.mubr.f32.vlgmr.msra.gmra.mrb[64].mxu0 %v1939_v37  ;;  %v4933_v57 = vpop.f32.mrb[18].mxu0 }
 0x1df   : > { %v3439_v28 = vpop.eup %3438  ;;  %v1944_v56 = vmul.f32 %v3437_v45, %v4829_v5  ;;  %3458 = vpow2.f32 %v1335_v11  ;;  %2453 = vmatmul.mubr.f32.vlgmr.msra.gmra.mrb[64].mxu1 %v1941_v20  ;;  %v4937_v58 = vpop.f32.mrb[18].mxu1  ;;  %v1945_v5 = vmul.f32 %v3435_v54, %v4826_v4  ;;  %v1345_v11 = vmul.f32 1.442695, %v2994_v43 }
 0x1e0   : > { %v4939_v0 = vpop.f32.mrb[19].mxu0  ;;  %v3441_v1 = vpop.eup %3440  ;;  %v1946_v14 = vmul.f32 %v3439_v28, %v4833_v10  ;;  %3460 = vpow2.f32 %v1333_v18  ;;  %v1351_v18 = vmul.f32 1.442695, %v2997_v53 }
 0x1e1   : > { %v4943_v19 = vpop.f32.mrb[19].mxu1  ;;  %v3443_v26 = vpop.eup %3442  ;;  %3462 = vpow2.f32 %v1337_v30  ;;  %2232 = vmatprep.mubr.f32.mxu0 %v1944_v56  ;;  %v1947_v54 = vmul.f32 %v3441_v1, %v4839_v16  ;;  %v4970_v16 = vadd.f32 %v4892_v51, %v4798_v46  ;;  %v4981_v51 = vadd.f32 %v4897_v60, %v4800_v47 }
 0x1e2   : > { %v3445_v29 = vpop.eup %3444  ;;  %3464 = vpow2.f32 %v1339_v52  ;;  %2457 = vmatprep.mubr.f32.mxu1 %v1946_v14  ;;  %2233 = vmatmul.mubr.f32.gmra.mrb[66].mxu0 %v1943_v9  ;;  %v4946_v37 = vpop.f32.mrb[20].mxu0  ;;  %v1949_v43 = vmul.f32 %v3443_v26, %v4842_v21  ;;  %v2996_v21 = vmul.f32 -1.702, %v4951_v36  ;;  %v4991_v60 = vadd.f32 %v4899_v55, %v4802_v40 }
 0x1e3   : > { %v3447_v63 = vpop.eup %3446  ;;  %v1948_v10 = vmul.f32 %v3445_v29, %v4846_v25  ;;  %3466 = vpow2.f32 %v1343_v61  ;;  %2458 = vmatmul.mubr.f32.gmra.mrb[66].mxu1 %v1945_v5  ;;  %v4953_v4 = vpop.f32.mrb[20].mxu1 }
 0x1e4   : > { %v4955_v23 = vpop.f32.mrb[21].mxu0  ;;  %v4957_v38 = vpop.eup %3448  ;;  %v1950_v20 = vmul.f32 %v3447_v63, %v4850_v27  ;;  %3468 = vpow2.f32 %v1341_v15  ;;  %v2998_v15 = vmul.f32 -1.702, %v4966_v35 }
 0x1e5   : > { %v4961_v30 = vpop.f32.mrb[21].mxu1  ;;  %v3451_v25 = vpop.eup %3450  ;;  %3470 = vpow2.f32 %v1345_v11  ;;  %2237 = vmatprep.mubr.f32.mxu0 %v1948_v10  ;;  %v2999_v11 = vmul.f32 -1.702, %v4970_v16  ;;  %v1349_v10 = vmul.f32 1.442695, %v2996_v21  ;;  %v5002_v21 = vadd.f32 %v4904_v2, %v4804_v48 }
 0x1e6   : > { %v3453_v45 = vpop.eup %3452  ;;  %v1569_v52 = vadd.f32 1.0, %v3451_v25  ;;  %3472 = vpow2.f32 %v1347_v32  ;;  %2462 = vmatprep.mubr.f32.mxu1 %v1950_v20  ;;  %2238 = vmatmul.mubr.f32.gmra.mrb[68].mxu0 %v1947_v54  ;;  %v4972_v27 = vpop.f32.mrb[22].mxu0  ;;  %v3001_v25 = vmul.f32 -1.702, %v4981_v51 }
 0x1e7   : > { %v3455_v50 = vpop.eup %3454  ;;  %v1568_v28 = vadd.f32 1.0, %v3453_v45  ;;  %3474 = vpow2.f32 %v1351_v18  ;;  %2463 = vmatmul.mubr.f32.gmra.mrb[68].mxu1 %v1949_v43  ;;  %v4975_v8 = vpop.f32.mrb[22].mxu1 }
 0x1e8   : > { %v4977_v56 = vpop.f32.mrb[23].mxu0  ;;  %v3457_v61 = vpop.eup %3456  ;;  %3476 = vrcp.f32 %v1569_v52  ;;  %v1570_v53 = vadd.f32 1.0, %v3455_v50 }
 0x1e9   : > { %v4983_v1 = vpop.f32.mrb[23].mxu1  ;;  %v3459_v9 = vpop.eup %3458  ;;  %3478 = vrcp.f32 %v1568_v28  ;;  %v1571_v14 = vadd.f32 1.0, %v3457_v61  ;;  %v1353_v28 = vmul.f32 1.442695, %v2998_v15  ;;  %v5013_v15 = vadd.f32 %v4921_v13, %v4800_v47 }
 0x1ea   : > { %v3461_v26 = vpop.eup %3460  ;;  %3480 = vrcp.f32 %v1570_v53  ;;  %v1573_v5 = vadd.f32 1.0, %v3459_v9  ;;  %v4987_v29 = vpop.f32.mrb[24].mxu0  ;;  %v1355_v53 = vmul.f32 1.442695, %v2999_v11  ;;  %v5006_v9 = vadd.f32 %v4914_v7, %v4798_v46 }
 0x1eb   : > { %v3463_v32 = vpop.eup %3462  ;;  %3482 = vrcp.f32 %v1571_v14  ;;  %v1572_v63 = vadd.f32 1.0, %v3461_v26  ;;  %v4993_v18 = vpop.f32.mrb[24].mxu1  ;;  %5980 = vst [vmem:[#allocation27_spill] sm:$0xff] %v5013_v15  ;;  %v1359_v7 = vmul.f32 1.442695, %v3001_v25  ;;  %v5031_v25 = vadd.f32 %v4928_v42, %v4804_v48 }
 0x1ec   : > { %v3465_v54 = vpop.eup %3464  ;;  %3484 = vrcp.f32 %v1573_v5  ;;  %v1574_v20 = vadd.f32 1.0, %v3463_v32  ;;  %v4996_v43 = vpop.f32.mrb[25].mxu0  ;;  %5978 = vst [vmem:[#allocation25_spill] sm:$0xff] %v5006_v9  ;;  %v3000_v32 = vmul.f32 -1.702, %v4991_v60 }
 0x1ed   : > { %v4998_v45 = vpop.f32.mrb[25].mxu1  ;;  %v3467_v52 = vpop.eup %3466  ;;  %3486 = vrcp.f32 %v1572_v63  ;;  %v1575_v50 = vadd.f32 1.0, %v3465_v54 }
 0x1ee   : > { %v3469_v55 = vpop.eup %3468  ;;  %3488 = vrcp.f32 %v1574_v20  ;;  %v1577_v61 = vadd.f32 1.0, %v3467_v52  ;;  %v5008_v14 = vpop.f32.mrb[26].mxu0  ;;  %v5021_v20 = vadd.f32 %v4923_v34, %v4802_v40 }
 0x1ef   : > { %5979 = vst [vmem:[#allocation26_spill] sm:$0xff] %v5008_v14  ;;  %v3471_v26 = vpop.eup %3470  ;;  %3490 = vrcp.f32 %v1575_v50  ;;  %v1576_v5 = vadd.f32 1.0, %v3469_v55  ;;  %v5015_v2 = vpop.f32.mrb[26].mxu1  ;;  %v1951_v55 = vmul.f32 %v4957_v38, %v4854_v31  ;;  %v3005_v31 = vmul.f32 -1.702, %v5013_v15 }
 0x1f0   : > { %5981 = vst [vmem:[#allocation28_spill] sm:$0xff] %v5015_v2  ;;  %v5017_v63 = vpop.f32.mrb[27].mxu0  ;;  %v3473_v11 = vpop.eup %3472  ;;  %3492 = vrcp.f32 %v1577_v61  ;;  %v1578_v54 = vadd.f32 1.0, %v3471_v26  ;;  %v3002_v2 = vmul.f32 -1.702, %v5002_v21  ;;  %v5038_v38 = vadd.f32 %v4933_v57, %v4798_v46 }
 0x1f1   : > { %5982 = vst [vmem:[#allocation29_spill] sm:$0xff] %v5017_v63  ;;  %v5023_v52 = vpop.f32.mrb[27].mxu1  ;;  %v3475_v50 = vpop.eup %3474  ;;  %3494 = vrcp.f32 %v1576_v5  ;;  %v1579_v13 = vadd.f32 1.0, %v3473_v11  ;;  %v3003_v61 = vmul.f32 -1.702, %v5006_v9 }
 0x1f2   : > { %5983 = vst [vmem:[#allocation30_spill] sm:$0xff] %v5023_v52  ;;  %v3477_v14 = vpop.eup %3476  ;;  %3496 = vrcp.f32 %v1578_v54  ;;  %v1581_v63 = vadd.f32 1.0, %v3475_v50  ;;  %v5033_v34 = vpop.f32.mrb[28].mxu0  ;;  %v1357_v52 = vmul.f32 1.442695, %v3000_v32 }
 0x1f3   : > { %5984 = vst [vmem:[#allocation31_spill] sm:$0xff] %v5033_v34  ;;  %v3479_v26 = vpop.eup %3478  ;;  %3498 = vrcp.f32 %v1579_v13  ;;  %v5040_v5 = vpop.f32.mrb[28].mxu1  ;;  %v3004_v42 = vmul.f32 -1.702, %v5021_v20  ;;  %v5048_v13 = vadd.f32 %v4937_v58, %v4800_v47  ;;  %v1361_v15 = vmul.f32 1.442695, %v3002_v2 }
 0x1f4   : > { %5985 = vst [vmem:[#allocation32_spill] sm:$0xff] %v5040_v5  ;;  %v5042_v11 = vpop.f32.mrb[29].mxu0  ;;  %v3481_v54 = vpop.eup %3480  ;;  %v1952_v50 = vmul.f32 %v3479_v26, %v4862_v44  ;;  %3500 = vrcp.f32 %v1581_v63  ;;  %v1953_v44 = vmul.f32 %v3477_v14, %v4859_v39  ;;  %v1363_v63 = vmul.f32 1.442695, %v3003_v61 }
 0x1f5   : > { %5986 = vst [vmem:[#allocation33_spill] sm:$0xff] %v5042_v11  ;;  %v5050_v32 = vpop.f32.mrb[29].mxu1  ;;  %v3483_v34 = vpop.eup %3482  ;;  %v1954_v57 = vmul.f32 %v3481_v54, %v4867_v3  ;;  %3502 = vpow2.f32 %v1349_v10  ;;  %v5055_v11 = vadd.f32 %v4939_v0, %v4802_v40  ;;  %v3006_v26 = vmul.f32 -1.702, %v5031_v25 }
 0x1f6   : > { %5987 = vst [vmem:[#allocation34_spill] sm:$0xff] %v5050_v32  ;;  %v3485_v5 = vpop.eup %3484  ;;  %3504 = vpow2.f32 %v1353_v28  ;;  %2242 = vmatprep.mubr.f32.mxu0 %v1952_v50  ;;  %v5059_v58 = vpop.f32.mrb[30].mxu0  ;;  %v1367_v9 = vmul.f32 1.442695, %v3005_v31  ;;  %v3007_v3 = vmul.f32 -1.702, %v5038_v38  ;;  %v1955_v31 = vmul.f32 %v3483_v34, %v4870_v12 }
 0x1f7   : > { %v3487_v32 = vpop.eup %3486  ;;  %3506 = vpow2.f32 %v1355_v53  ;;  %2467 = vmatprep.mubr.f32.mxu1 %v1954_v57  ;;  %2243 = vmatmul.mubr.f32.gmra.mrb[70].mxu0 %v1951_v55  ;;  %v5062_v10 = vpop.f32.mrb[30].mxu1  ;;  %v1365_v28 = vmul.f32 1.442695, %v3004_v42  ;;  %v3009_v14 = vmul.f32 -1.702, %v5048_v13  ;;  %v1957_v57 = vmul.f32 %v3485_v5, %v4873_v17 }
 0x1f8   : > { %v5064_v0 = vpop.f32.mrb[31].mxu0  ;;  %v3489_v2 = vpop.eup %3488  ;;  %v1956_v39 = vmul.f32 %v3487_v32, %v4876_v22  ;;  %3508 = vpow2.f32 %v1359_v7  ;;  %2468 = vmatmul.mubr.f32.gmra.mrb[70].mxu1 %v1953_v44  ;;  %v3008_v55 = vmul.f32 -1.702, %v5055_v11  ;;  %v1369_v22 = vmul.f32 1.442695, %v3006_v26 }
 0x1f9   : > { %v5068_v61 = vpop.f32.mrb[31].mxu1  ;;  %v3491_v53 = vpop.eup %3490  ;;  %v1958_v54 = vmul.f32 %v3489_v2, %v4886_v41  ;;  %3510 = vpow2.f32 %v1357_v52  ;;  %v1371_v32 = vmul.f32 1.442695, %v3007_v3  ;;  %v1375_v34 = vmul.f32 1.442695, %v3009_v14 }
 0x1fa   : > { %v3493_v50 = vpop.eup %3492  ;;  %3512 = vpow2.f32 %v1361_v15  ;;  %2247 = vmatprep.mubr.f32.mxu0 %v1956_v39  ;;  %v5074_v7 = vpop.f32.mrb[32].mxu0  ;;  %v5083_v17 = vadd.f32 %v4943_v19, %v4804_v48  ;;  %v1373_v3 = vmul.f32 1.442695, %v3008_v55  ;;  %v5109_v55 = vadd.f32 %v4953_v4, %v4800_v47 }
 0x1fb   : > { %v3495_v42 = vpop.eup %3494  ;;  %3514 = vpow2.f32 %v1363_v63  ;;  %2472 = vmatprep.mubr.f32.mxu1 %v1958_v54  ;;  %2248 = vmatmul.mubr.f32.gmra.mrb[72].mxu0 %v1955_v31  ;;  %v5076_v44 = vpop.f32.mrb[32].mxu1  ;;  %v1959_v63 = vmul.f32 %v3491_v53, %v4890_v49  ;;  %v5123_v4 = vadd.f32 %v4972_v27, %v4798_v46 }
 0x1fc   : > { %v5078_v12 = vpop.f32.mrb[33].mxu0  ;;  %v3497_v41 = vpop.eup %3496  ;;  %v1960_v52 = vmul.f32 %v3495_v42, %v4902_v62  ;;  %3516 = vpow2.f32 %v1367_v9  ;;  %2473 = vmatmul.mubr.f32.gmra.mrb[72].mxu1 %v1957_v57  ;;  %v1961_v62 = vmul.f32 %v3493_v50, %v4895_v59  ;;  %v3010_v54 = vmul.f32 -1.702, %v5083_v17 }
 0x1fd   : > { %v5085_v15 = vpop.f32.mrb[33].mxu1  ;;  %v5087_v5 = vpop.eup %3498  ;;  %v1962_v26 = vmul.f32 %v3497_v41, %v4908_v6  ;;  %3518 = vpow2.f32 %v1365_v28  ;;  %v5102_v28 = vadd.f32 %v4946_v37, %v4798_v46  ;;  %v5117_v37 = vadd.f32 %v4961_v30, %v4804_v48 }
 0x1fe   : > { %v5091_v2 = vpop.eup %3500  ;;  %3520 = vpow2.f32 %v1369_v22  ;;  %2252 = vmatprep.mubr.f32.mxu0 %v1960_v52  ;;  %v5094_v9 = vpop.f32.mrb[34].mxu0  ;;  %v5113_v22 = vadd.f32 %v4955_v23, %v4802_v40 }
 0x1ff   : > { %v3503_v19 = vpop.eup %3502  ;;  %3522 = vpow2.f32 %v1371_v32  ;;  %2477 = vmatprep.mubr.f32.mxu1 %v1962_v26  ;;  %2253 = vmatmul.mubr.f32.gmra.mrb[74].mxu0 %v1959_v63  ;;  %v5096_v39 = vpop.f32.mrb[34].mxu1  ;;  %v3011_v23 = vmul.f32 -1.702, %v5102_v28 }
 0x200   : > { %v5098_v14 = vpop.f32.mrb[35].mxu0  ;;  %v3505_v49 = vpop.eup %3504  ;;  %v1580_v6 = vadd.f32 1.0, %v3503_v19  ;;  %3524 = vpow2.f32 %v1375_v34  ;;  %2478 = vmatmul.mubr.f32.gmra.mrb[74].mxu1 %v1961_v62  ;;  %v1377_v19 = vmul.f32 1.442695, %v3010_v54 }
 0x201   : > { %5988 = vst [vmem:[#allocation35_spill] sm:$0xff] %v5098_v14  ;;  %v5104_v59 = vpop.f32.mrb[35].mxu1  ;;  %v3507_v53 = vpop.eup %3506  ;;  %v1582_v31 = vadd.f32 1.0, %v3505_v49  ;;  %3526 = vpow2.f32 %v1373_v3  ;;  %v3013_v49 = vmul.f32 -1.702, %v5109_v55 }
 0x202   : > { %5989 = vst [vmem:[#allocation36_spill] sm:$0xff] %v5104_v59  ;;  %v3509_v50 = vpop.eup %3508  ;;  %3528 = vrcp.f32 %v1580_v6  ;;  %v1583_v57 = vadd.f32 1.0, %v3507_v53  ;;  %v5119_v42 = vpop.f32.mrb[36].mxu0  ;;  %v3012_v53 = vmul.f32 -1.702, %v5113_v22 }
 0x203   : > { %5990 = vst [vmem:[#allocation37_spill] sm:$0xff] %v5119_v42  ;;  %v3511_v32 = vpop.eup %3510  ;;  %3530 = vrcp.f32 %v1582_v31  ;;  %v1585_v41 = vadd.f32 1.0, %v3509_v50  ;;  %v5125_v52 = vpop.f32.mrb[36].mxu1  ;;  %v3014_v31 = vmul.f32 -1.702, %v5117_v37  ;;  %v5150_v42 = vadd.f32 %v4977_v56, %v4802_v40 }
 0x204   : > { %5991 = vst [vmem:[#allocation38_spill] sm:$0xff] %v5125_v52  ;;  %v3513_v34 = vpop.eup %3512  ;;  %3532 = vrcp.f32 %v1583_v57  ;;  %v1584_v63 = vadd.f32 1.0, %v3511_v32  ;;  %v5128_v26 = vpop.f32.mrb[37].mxu0 }
 0x205   : > { %5992 = vst [vmem:[#allocation39_spill] sm:$0xff] %v5128_v26  ;;  %v5130_v30 = vpop.f32.mrb[37].mxu1  ;;  %v3515_v3 = vpop.eup %3514  ;;  %3534 = vrcp.f32 %v1585_v41  ;;  %v1586_v62 = vadd.f32 1.0, %v3513_v34 }
 0x206   : > { %5993 = vst [vmem:[#allocation40_spill] sm:$0xff] %v5130_v30  ;;  %v3517_v6 = vpop.eup %3516  ;;  %3536 = vrcp.f32 %v1584_v63  ;;  %v1587_v27 = vadd.f32 1.0, %v3515_v3  ;;  %v5135_v50 = vpop.f32.mrb[38].mxu0  ;;  %v3015_v30 = vmul.f32 -1.702, %v5123_v4  ;;  %v5144_v3 = vadd.f32 %v4975_v8, %v4800_v47 }
 0x207   : > { %5994 = vst [vmem:[#allocation41_spill] sm:$0xff] %v5135_v50  ;;  %v3519_v57 = vpop.eup %3518  ;;  %3538 = vrcp.f32 %v1586_v62  ;;  %v1589_v32 = vadd.f32 1.0, %v3517_v6  ;;  %v5138_v26 = vpop.f32.mrb[38].mxu1  ;;  %v1379_v63 = vmul.f32 1.442695, %v3011_v23 }
 0x208   : > { %5995 = vst [vmem:[#allocation42_spill] sm:$0xff] %v5138_v26  ;;  %v5140_v41 = vpop.f32.mrb[39].mxu0  ;;  %v3521_v54 = vpop.eup %3520  ;;  %3540 = vrcp.f32 %v1587_v27  ;;  %v1588_v34 = vadd.f32 1.0, %v3519_v57  ;;  %v1383_v6 = vmul.f32 1.442695, %v3013_v49 }
 0x209   : > { %5996 = vst [vmem:[#allocation43_spill] sm:$0xff] %v5140_v41  ;;  %v5146_v52 = vpop.f32.mrb[39].mxu1  ;;  %v3523_v50 = vpop.eup %3522  ;;  %3542 = vrcp.f32 %v1589_v32  ;;  %v1590_v62 = vadd.f32 1.0, %v3521_v54  ;;  %v1381_v27 = vmul.f32 1.442695, %v3012_v53  ;;  %v5156_v32 = vadd.f32 %v4983_v1, %v4804_v48 }
 0x20a   : > { %v3525_v26 = vpop.eup %3524  ;;  %3544 = vrcp.f32 %v1588_v34  ;;  %v1591_v41 = vadd.f32 1.0, %v3523_v50  ;;  %v1385_v57 = vmul.f32 1.442695, %v3014_v31  ;;  %v5152_v23 = vpop.f32.mrb[40].mxu0  ;;  %v1387_v14 = vmul.f32 1.442695, %v3015_v30 }
 0x20b   : > { %v3527_v59 = vpop.eup %3526  ;;  %3546 = vrcp.f32 %v1590_v62  ;;  %v1593_v8 = vadd.f32 1.0, %v3525_v26  ;;  %v5158_v49 = vpop.f32.mrb[40].mxu1  ;;  %v3017_v53 = vmul.f32 -1.702, %v5144_v3  ;;  %v5165_v31 = vadd.f32 %v4987_v29, %v4798_v46 }
 0x20c   : > { %v5160_v54 = vpop.f32.mrb[41].mxu0  ;;  %v3529_v56 = vpop.eup %3528  ;;  %3548 = vrcp.f32 %v1591_v41  ;;  %v1592_v34 = vadd.f32 1.0, %v3527_v59  ;;  %v3016_v1 = vmul.f32 -1.702, %v5150_v42  ;;  %v5173_v62 = vadd.f32 %v4993_v18, %v4800_v47 }
 0x20d   : > { %5997 = vst [vmem:[#allocation44_spill] sm:$0xff] %v5160_v54  ;;  %v5167_v50 = vpop.f32.mrb[41].mxu1  ;;  %v3531_v26 = vpop.eup %3530  ;;  %v1964_v30 = vmul.f32 %v3529_v56, %v4951_v36  ;;  %3550 = vrcp.f32 %v1593_v8  ;;  %v1963_v59 = vmul.f32 %v5087_v5, %v4912_v24  ;;  %v5180_v29 = vadd.f32 %v4996_v43, %v4802_v40 }
 0x20e   : > { %5998 = vst [vmem:[#allocation45_spill] sm:$0xff] %v5167_v50  ;;  %v3533_v41 = vpop.eup %3532  ;;  %v1966_v54 = vmul.f32 %v3531_v26, %v4966_v35  ;;  %3552 = vrcp.f32 %v1592_v34  ;;  %v5182_v50 = vpop.f32.mrb[42].mxu0  ;;  %v1965_v8 = vmul.f32 %v5091_v2, %v4919_v33  ;;  %v3018_v18 = vmul.f32 -1.702, %v5156_v32 }
 0x20f   : > { %v3535_v36 = vpop.eup %3534  ;;  %3554 = vpow2.f32 %v1377_v19  ;;  %v5189_v56 = vadd.f32 %v4998_v45, %v4804_v48  ;;  %2257 = vmatprep.mubr.f32.mxu0 %v1964_v30  ;;  %v5191_v24 = vpop.f32.mrb[42].mxu1  ;;  %v1391_v5 = vmul.f32 1.442695, %v3017_v53  ;;  %v3019_v34 = vmul.f32 -1.702, %v5165_v31 }
 0x210   : > { %v5193_v35 = vpop.f32.mrb[43].mxu0  ;;  %v3537_v43 = vpop.eup %3536  ;;  %3556 = vpow2.f32 %v1379_v63  ;;  %2482 = vmatprep.mubr.f32.mxu1 %v1966_v54  ;;  %2258 = vmatmul.mubr.f32.gmra.mrb[76].mxu0 %v1963_v59  ;;  %v1389_v45 = vmul.f32 1.442695, %v3016_v1  ;;  %v3021_v26 = vmul.f32 -1.702, %v5173_v62 }
 0x211   : > { %5999 = vst [vmem:[#allocation46_spill] sm:$0xff] %v5193_v35  ;;  %v5196_v33 = vpop.f32.mrb[43].mxu1  ;;  %v3539_v2 = vpop.eup %3538  ;;  %v1968_v19 = vmul.f32 %v3537_v43, %v4991_v60  ;;  %3558 = vpow2.f32 %v1383_v6  ;;  %2483 = vmatmul.mubr.f32.gmra.mrb[76].mxu1 %v1965_v8  ;;  %v1967_v35 = vmul.f32 %v3533_v41, %v4970_v16  ;;  %v3020_v53 = vmul.f32 -1.702, %v5180_v29 }
 0x212   : > { %6000 = vst [vmem:[#allocation47_spill] sm:$0xff] %v5196_v33  ;;  %v3541_v30 = vpop.eup %3540  ;;  %v1970_v63 = vmul.f32 %v3539_v2, %v5002_v21  ;;  %3560 = vpow2.f32 %v1381_v27  ;;  %v5203_v54 = vpop.f32.mrb[44].mxu0  ;;  %v1969_v33 = vmul.f32 %v3535_v36, %v4981_v51  ;;  %v1393_v60 = vmul.f32 1.442695, %v3018_v18  ;;  %v6003_v36 = vld [vmem:[#allocation25_spill] sm:$0xff] }
 0x213   : > { %v3543_v59 = vpop.eup %3542  ;;  %3562 = vpow2.f32 %v1385_v57  ;;  %v3022_v6 = vmul.f32 -1.702, %v5189_v56  ;;  %2262 = vmatprep.mubr.f32.mxu0 %v1968_v19  ;;  %v5207_v1 = vpop.f32.mrb[44].mxu1  ;;  %v1395_v21 = vmul.f32 1.442695, %v3019_v34  ;;  %v1971_v18 = vmul.f32 %v3541_v30, %v6003_v36 }
 0x214   : > { %v5209_v8 = vpop.f32.mrb[45].mxu0  ;;  %v3545_v16 = vpop.eup %3544  ;;  %3564 = vpow2.f32 %v1387_v14  ;;  %2487 = vmatprep.mubr.f32.mxu1 %v1970_v63  ;;  %2263 = vmatmul.mubr.f32.gmra.mrb[78].mxu0 %v1967_v35  ;;  %v1399_v51 = vmul.f32 1.442695, %v3021_v26  ;;  %v1397_v19 = vmul.f32 1.442695, %v3020_v53  ;;  %v6005_v35 = vld [vmem:[#allocation27_spill] sm:$0xff] }
 0x215   : > { %6001 = vst [vmem:[#allocation48_spill] sm:$0xff] %v5209_v8  ;;  %v5211_v27 = vpop.f32.mrb[45].mxu1  ;;  %v3547_v41 = vpop.eup %3546  ;;  %v1972_v43 = vmul.f32 %v3545_v16, %v5021_v20  ;;  %3566 = vpow2.f32 %v1391_v5  ;;  %2488 = vmatmul.mubr.f32.gmra.mrb[78].mxu1 %v1969_v33  ;;  %v1973_v34 = vmul.f32 %v3543_v59, %v6005_v35  ;;  %v1401_v63 = vmul.f32 1.442695, %v3022_v6  ;;  %v6008_v26 = vld [vmem:[#allocation26_spill] sm:$0xff]  ;;  %v6010_v59 = vld [vmem:[#allocation28_spill] sm:$0xff] }
 0x216   : > { %6002 = vst [vmem:[#allocation49_spill] sm:$0xff] %v5211_v27  ;;  %v3549_v57 = vpop.eup %3548  ;;  %v1974_v2 = vmul.f32 %v3547_v41, %v5031_v25  ;;  %3568 = vpow2.f32 %v1389_v45  ;;  %v5216_v8 = vpop.f32.mrb[46].mxu0  ;;  %v5227_v25 = vadd.f32 %v6008_v26, %v4798_v46  ;;  %v6011_v41 = vld [vmem:[#allocation29_spill] sm:$0xff] }
 0x217   : > { %6004 = vst [vmem:[#allocation25_spill] sm:$0xff] %v5216_v8  ;;  %v5218_v14 = vpop.eup %3550  ;;  %3570 = vpow2.f32 %v1393_v60  ;;  %2267 = vmatprep.mubr.f32.mxu0 %v1972_v43  ;;  %v5221_v20 = vpop.f32.mrb[46].mxu1  ;;  %v5234_v60 = vadd.f32 %v6010_v59, %v4800_v47  ;;  %v1975_v16 = vmul.f32 %v3549_v57, %v5038_v38  ;;  %v5239_v43 = vadd.f32 %v6011_v41, %v4802_v40  ;;  %v6014_v38 = vld [vmem:[#allocation30_spill] sm:$0xff] }
 0x218   : > { %6006 = vst [vmem:[#allocation27_spill] sm:$0xff] %v5221_v20  ;;  %v5223_v5 = vpop.f32.mrb[47].mxu0  ;;  %v3553_v33 = vpop.eup %3552  ;;  %3572 = vpow2.f32 %v1395_v21  ;;  %2492 = vmatprep.mubr.f32.mxu1 %v1974_v2  ;;  %2268 = vmatmul.mubr.f32.gmra.mrb[80].mxu0 %v1971_v18  ;;  %v5248_v57 = vadd.f32 %v6014_v38, %v4804_v48 }
 0x219   : > { %6007 = vst [vmem:[#allocation50_spill] sm:$0xff] %v5223_v5  ;;  %v5229_v45 = vpop.f32.mrb[47].mxu1  ;;  %v3555_v30 = vpop.eup %3554  ;;  %v1976_v53 = vmul.f32 %v3553_v33, %v5055_v11  ;;  %3574 = vpow2.f32 %v1399_v51  ;;  %2493 = vmatmul.mubr.f32.gmra.mrb[80].mxu1 %v1973_v34  ;;  %v3023_v34 = vmul.f32 -1.702, %v5227_v25 }
 0x21a   : > { %6009 = vst [vmem:[#allocation26_spill] sm:$0xff] %v5229_v45  ;;  %v3557_v6 = vpop.eup %3556  ;;  %v1594_v21 = vadd.f32 1.0, %v3555_v30  ;;  %3576 = vpow2.f32 %v1397_v19  ;;  %v5241_v36 = vpop.f32.mrb[48].mxu0  ;;  %v3025_v30 = vmul.f32 -1.702, %v5234_v60 }
 0x21b   : > { %6012 = vst [vmem:[#allocation28_spill] sm:$0xff] %v5241_v36  ;;  %v3559_v18 = vpop.eup %3558  ;;  %v1595_v2 = vadd.f32 1.0, %v3557_v6  ;;  %3578 = vpow2.f32 %v1401_v63  ;;  %2272 = vmatprep.mubr.f32.mxu0 %v1976_v53  ;;  %v5243_v11 = vpop.f32.mrb[48].mxu1  ;;  %v3024_v6 = vmul.f32 -1.702, %v5239_v43  ;;  %v6022_v36 = vld [vmem:[#allocation32_spill] sm:$0xff] }
 0x21c   : > { %6013 = vst [vmem:[#allocation29_spill] sm:$0xff] %v5243_v11  ;;  %v3561_v51 = vpop.eup %3560  ;;  %3580 = vrcp.f32 %v1594_v21  ;;  %v1597_v35 = vadd.f32 1.0, %v3559_v18  ;;  %2273 = vmatmul.mubr.f32.gmra.mrb[82].mxu0 %v1975_v16  ;;  %v5250_v19 = vpop.f32.mrb[49].mxu0  ;;  %v6018_v16 = vld [vmem:[#allocation31_spill] sm:$0xff] }
 0x21d   : > { %6015 = vst [vmem:[#allocation30_spill] sm:$0xff] %v5250_v19  ;;  %v5252_v33 = vpop.f32.mrb[49].mxu1  ;;  %v3563_v26 = vpop.eup %3562  ;;  %3582 = vrcp.f32 %v1595_v2  ;;  %v1596_v63 = vadd.f32 1.0, %v3561_v51  ;;  %v5260_v38 = vadd.f32 %v6018_v16, %v4798_v46  ;;  %v5271_v16 = vadd.f32 %v6022_v36, %v4800_v47 }
 0x21e   : > { %6016 = vst [vmem:[#allocation51_spill] sm:$0xff] %v5252_v33  ;;  %v3565_v53 = vpop.eup %3564  ;;  %3584 = vrcp.f32 %v1597_v35  ;;  %v1598_v59 = vadd.f32 1.0, %v3563_v26  ;;  %v5256_v21 = vpop.f32.mrb[50].mxu0  ;;  %v1403_v35 = vmul.f32 1.442695, %v3023_v34 }
 0x21f   : > { %6017 = vst [vmem:[#allocation52_spill] sm:$0xff] %v5256_v21  ;;  %v3567_v41 = vpop.eup %3566  ;;  %3586 = vrcp.f32 %v1596_v63  ;;  %v1599_v18 = vadd.f32 1.0, %v3565_v53  ;;  %v5262_v33 = vpop.f32.mrb[50].mxu1  ;;  %v3026_v26 = vmul.f32 -1.702, %v5248_v57 }
 0x220   : > { %6019 = vst [vmem:[#allocation31_spill] sm:$0xff] %v5262_v33  ;;  %v5264_v2 = vpop.f32.mrb[51].mxu0  ;;  %v3569_v51 = vpop.eup %3568  ;;  %3588 = vrcp.f32 %v1598_v59  ;;  %v1601_v19 = vadd.f32 1.0, %v3567_v41  ;;  %v1407_v53 = vmul.f32 1.442695, %v3025_v30  ;;  %v6023_v59 = vld [vmem:[#allocation33_spill] sm:$0xff] }
 0x221   : > { %6020 = vst [vmem:[#allocation53_spill] sm:$0xff] %v5264_v2  ;;  %v5267_v11 = vpop.f32.mrb[51].mxu1  ;;  %v3571_v21 = vpop.eup %3570  ;;  %3590 = vrcp.f32 %v1599_v18  ;;  %v1600_v63 = vadd.f32 1.0, %v3569_v51  ;;  %v1405_v2 = vmul.f32 1.442695, %v3024_v6  ;;  %v5275_v41 = vadd.f32 %v6023_v59, %v4802_v40  ;;  %v6027_v6 = vld [vmem:[#allocation34_spill] sm:$0xff] }
 0x222   : > { %6021 = vst [vmem:[#allocation54_spill] sm:$0xff] %v5267_v11  ;;  %v3573_v45 = vpop.eup %3572  ;;  %3592 = vrcp.f32 %v1601_v19  ;;  %v1602_v33 = vadd.f32 1.0, %v3571_v21  ;;  %v5277_v34 = vpop.f32.mrb[52].mxu0  ;;  %v3027_v18 = vmul.f32 -1.702, %v5260_v38  ;;  %v5286_v20 = vadd.f32 %v6027_v6, %v4804_v48 }
 0x223   : > { %6024 = vst [vmem:[#allocation32_spill] sm:$0xff] %v5277_v34  ;;  %v3575_v5 = vpop.eup %3574  ;;  %3594 = vrcp.f32 %v1600_v63  ;;  %v1603_v11 = vadd.f32 1.0, %v3573_v45  ;;  %v5280_v30 = vpop.f32.mrb[52].mxu1  ;;  %v1409_v21 = vmul.f32 1.442695, %v3026_v26  ;;  %v5298_v26 = vadd.f32 %v5062_v10, %v4800_v47 }
 0x224   : > { %6025 = vst [vmem:[#allocation33_spill] sm:$0xff] %v5280_v30  ;;  %v5282_v51 = vpop.f32.mrb[53].mxu0  ;;  %v3577_v36 = vpop.eup %3576  ;;  %3596 = vrcp.f32 %v1602_v33  ;;  %v1605_v19 = vadd.f32 1.0, %v3575_v5  ;;  %v3029_v45 = vmul.f32 -1.702, %v5271_v16  ;;  %v5293_v30 = vadd.f32 %v5059_v58, %v4798_v46 }
 0x225   : > { %6026 = vst [vmem:[#allocation55_spill] sm:$0xff] %v5282_v51  ;;  %v5288_v59 = vpop.f32.mrb[53].mxu1  ;;  %v3579_v34 = vpop.eup %3578  ;;  %3598 = vrcp.f32 %v1603_v11  ;;  %v1604_v63 = vadd.f32 1.0, %v3577_v36  ;;  %v3028_v5 = vmul.f32 -1.702, %v5275_v41  ;;  %v5305_v58 = vadd.f32 %v5064_v0, %v4802_v40 }
 0x226   : > { %6028 = vst [vmem:[#allocation34_spill] sm:$0xff] %v5288_v59  ;;  %v3581_v51 = vpop.eup %3580  ;;  %3600 = vrcp.f32 %v1605_v19  ;;  %v1606_v33 = vadd.f32 1.0, %v3579_v34  ;;  %v5300_v6 = vpop.f32.mrb[54].mxu0  ;;  %v1411_v36 = vmul.f32 1.442695, %v3027_v18  ;;  %v1977_v10 = vmul.f32 %v5218_v14, %v5048_v13 }
 0x227   : > { %6029 = vst [vmem:[#allocation56_spill] sm:$0xff] %v5300_v6  ;;  %v3583_v59 = vpop.eup %3582  ;;  %v1978_v11 = vmul.f32 %v3581_v51, %v5083_v17  ;;  %3602 = vrcp.f32 %v1604_v63  ;;  %v5307_v8 = vpop.f32.mrb[54].mxu1  ;;  %v3030_v6 = vmul.f32 -1.702, %v5286_v20  ;;  %v5316_v17 = vadd.f32 %v5068_v61, %v4804_v48 }
 0x228   : > { %6030 = vst [vmem:[#allocation57_spill] sm:$0xff] %v5307_v8  ;;  %v5309_v34 = vpop.f32.mrb[55].mxu0  ;;  %v3585_v19 = vpop.eup %3584  ;;  %3604 = vrcp.f32 %v1606_v33  ;;  %v1415_v0 = vmul.f32 1.442695, %v3029_v45  ;;  %v3031_v63 = vmul.f32 -1.702, %v5293_v30 }
 0x229   : > { %6031 = vst [vmem:[#allocation58_spill] sm:$0xff] %v5309_v34  ;;  %v5318_v18 = vpop.f32.mrb[55].mxu1  ;;  %v3587_v51 = vpop.eup %3586  ;;  %3606 = vpow2.f32 %v1403_v35  ;;  %v5323_v34 = vadd.f32 %v5074_v7, %v4798_v46  ;;  %2497 = vmatprep.mubr.f32.mxu1 %v1978_v11  ;;  %v1413_v33 = vmul.f32 1.442695, %v3028_v5  ;;  %v3033_v61 = vmul.f32 -1.702, %v5298_v26 }
 0x22a   : > { %6032 = vst [vmem:[#allocation59_spill] sm:$0xff] %v5318_v18  ;;  %v3589_v13 = vpop.eup %3588  ;;  %v1980_v14 = vmul.f32 %v3587_v51, %v5113_v22  ;;  %3608 = vpow2.f32 %v1407_v53  ;;  %2498 = vmatmul.mubr.f32.gmra.mrb[82].mxu1 %v1977_v10  ;;  %v5327_v8 = vpop.f32.mrb[56].mxu0  ;;  %v1979_v35 = vmul.f32 %v3583_v59, %v5102_v28  ;;  %v3032_v7 = vmul.f32 -1.702, %v5305_v58 }
 0x22b   : > { %v3591_v18 = vpop.eup %3590  ;;  %v1982_v45 = vmul.f32 %v3589_v13, %v5117_v37  ;;  %3610 = vpow2.f32 %v1405_v2  ;;  %v5332_v27 = vpop.f32.mrb[56].mxu1  ;;  %v1981_v53 = vmul.f32 %v3585_v19, %v5109_v55  ;;  %v1417_v5 = vmul.f32 1.442695, %v3030_v6 }
 0x22c   : > { %v5334_v11 = vpop.f32.mrb[57].mxu0  ;;  %v3593_v22 = vpop.eup %3592  ;;  %3612 = vpow2.f32 %v1409_v21  ;;  %v3034_v10 = vmul.f32 -1.702, %v5316_v17  ;;  %2277 = vmatprep.mubr.f32.mxu0 %v1980_v14  ;;  %v1419_v37 = vmul.f32 1.442695, %v3031_v63  ;;  %v1983_v6 = vmul.f32 %v3591_v18, %v5123_v4 }
 0x22d   : > { %6033 = vst [vmem:[#allocation60_spill] sm:$0xff] %v5334_v11  ;;  %v5338_v51 = vpop.f32.mrb[57].mxu1  ;;  %v3595_v28 = vpop.eup %3594  ;;  %3614 = vpow2.f32 %v1411_v36  ;;  %v3035_v2 = vmul.f32 -1.702, %v5323_v34  ;;  %2502 = vmatprep.mubr.f32.mxu1 %v1982_v45  ;;  %2278 = vmatmul.mubr.f32.gmra.mrb[84].mxu0 %v1979_v35  ;;  %v1423_v11 = vmul.f32 1.442695, %v3033_v61  ;;  %v1985_v45 = vmul.f32 %v3593_v22, %v5144_v3 }
 0x22e   : > { %v3597_v59 = vpop.eup %3596  ;;  %v1984_v13 = vmul.f32 %v3595_v28, %v5150_v42  ;;  %3616 = vpow2.f32 %v1415_v0  ;;  %2503 = vmatmul.mubr.f32.gmra.mrb[84].mxu1 %v1981_v53  ;;  %v5342_v55 = vpop.f32.mrb[58].mxu0  ;;  %v1421_v36 = vmul.f32 1.442695, %v3032_v7  ;;  %v1425_v42 = vmul.f32 1.442695, %v3034_v10 }
 0x22f   : > { %v3599_v21 = vpop.eup %3598  ;;  %v1986_v19 = vmul.f32 %v3597_v59, %v5156_v32  ;;  %3618 = vpow2.f32 %v1413_v33  ;;  %v5346_v63 = vpop.f32.mrb[58].mxu1  ;;  %v1427_v53 = vmul.f32 1.442695, %v3035_v2  ;;  %v5360_v22 = vadd.f32 %v5076_v44, %v4800_v47 }
 0x230   : > { %v5348_v14 = vpop.f32.mrb[59].mxu0  ;;  %v3601_v35 = vpop.eup %3600  ;;  %3620 = vpow2.f32 %v1417_v5  ;;  %2282 = vmatprep.mubr.f32.mxu0 %v1984_v13  ;;  %v1987_v3 = vmul.f32 %v3599_v21, %v5165_v31 }
 0x231   : > { %6034 = vst [vmem:[#allocation61_spill] sm:$0xff] %v5348_v14  ;;  %v5351_v0 = vpop.f32.mrb[59].mxu1  ;;  %v3603_v61 = vpop.eup %3602  ;;  %3622 = vpow2.f32 %v1419_v37  ;;  %2507 = vmatprep.mubr.f32.mxu1 %v1986_v19  ;;  %2283 = vmatmul.mubr.f32.gmra.mrb[86].mxu0 %v1983_v6  ;;  %v5369_v37 = vadd.f32 %v5078_v12, %v4802_v40  ;;  %v3037_v12 = vmul.f32 -1.702, %v5360_v22  ;;  %v5378_v6 = vadd.f32 %v5085_v15, %v4804_v48 }
 0x232   : > { %6035 = vst [vmem:[#allocation62_spill] sm:$0xff] %v5351_v0  ;;  %v3605_v4 = vpop.eup %3604  ;;  %v1988_v32 = vmul.f32 %v3603_v61, %v5180_v29  ;;  %3624 = vpow2.f32 %v1423_v11  ;;  %2508 = vmatmul.mubr.f32.gmra.mrb[86].mxu1 %v1985_v45  ;;  %v5354_v18 = vpop.f32.mrb[60].mxu0  ;;  %v1989_v29 = vmul.f32 %v3601_v35, %v5173_v62  ;;  %v5387_v61 = vadd.f32 %v5094_v9, %v4798_v46 }
 0x233   : > { %6036 = vst [vmem:[#allocation63_spill] sm:$0xff] %v5354_v18  ;;  %v3607_v33 = vpop.eup %3606  ;;  %v1990_v7 = vmul.f32 %v3605_v4, %v5189_v56  ;;  %3626 = vpow2.f32 %v1421_v36  ;;  %v5362_v5 = vpop.f32.mrb[60].mxu1  ;;  %v5393_v15 = vadd.f32 %v5096_v39, %v4800_v47 }
 0x234   : > { %6037 = vst [vmem:[#allocation64_spill] sm:$0xff] %v5362_v5  ;;  %v5364_v10 = vpop.f32.mrb[61].mxu0  ;;  %v3609_v28 = vpop.eup %3608  ;;  %v1607_v11 = vadd.f32 1.0, %v3607_v33  ;;  %3628 = vpow2.f32 %v1425_v42  ;;  %2287 = vmatprep.mubr.f32.mxu0 %v1988_v32  ;;  %v3036_v42 = vmul.f32 -1.702, %v5369_v37 }
 0x235   : > { %6038 = vst [vmem:[#allocation65_spill] sm:$0xff] %v5364_v10  ;;  %v5371_v31 = vpop.f32.mrb[61].mxu1  ;;  %v3611_v56 = vpop.eup %3610  ;;  %v1609_v2 = vadd.f32 1.0, %v3609_v28  ;;  %3630 = vpow2.f32 %v1427_v53  ;;  %2512 = vmatprep.mubr.f32.mxu1 %v1990_v7  ;;  %2288 = vmatmul.mubr.f32.gmra.mrb[88].mxu0 %v1987_v3  ;;  %v6044_v7 = vld [vmem:[#allocation35_spill] sm:$0xff]  ;;  %v3039_v39 = vmul.f32 -1.702, %v5387_v61 }
 0x236   : > { %6039 = vst [vmem:[#allocation66_spill] sm:$0xff] %v5371_v31  ;;  %v3613_v44 = vpop.eup %3612  ;;  %3632 = vrcp.f32 %v1607_v11  ;;  %v1608_v59 = vadd.f32 1.0, %v3611_v56  ;;  %2513 = vmatmul.mubr.f32.gmra.mrb[88].mxu1 %v1989_v29  ;;  %v5373_v13 = vpop.f32.mrb[62].mxu0  ;;  %v5397_v28 = vadd.f32 %v6044_v7, %v4802_v40  ;;  %v1431_v11 = vmul.f32 1.442695, %v3037_v12 }
 0x237   : > { %6040 = vst [vmem:[#allocation67_spill] sm:$0xff] %v5373_v13  ;;  %v3615_v62 = vpop.eup %3614  ;;  %3634 = vrcp.f32 %v1609_v2  ;;  %v1610_v21 = vadd.f32 1.0, %v3613_v44  ;;  %v5380_v19 = vpop.f32.mrb[62].mxu1  ;;  %v3038_v56 = vmul.f32 -1.702, %v5378_v6 }
 0x238   : > { %6041 = vst [vmem:[#allocation68_spill] sm:$0xff] %v5380_v19  ;;  %v5382_v36 = vpop.f32.mrb[63].mxu0  ;;  %v3617_v35 = vpop.eup %3616  ;;  %3636 = vrcp.f32 %v1608_v59  ;;  %v1611_v45 = vadd.f32 1.0, %v3615_v62  ;;  %v1429_v59 = vmul.f32 1.442695, %v3036_v42 }
 0x239   : > { %6042 = vst [vmem:[#allocation69_spill] sm:$0xff] %v5382_v36  ;;  %v5389_v53 = vpop.f32.mrb[63].mxu1  ;;  %v3619_v4 = vpop.eup %3618  ;;  %3638 = vrcp.f32 %v1610_v21  ;;  %v1613_v32 = vadd.f32 1.0, %v3617_v35  ;;  %v3041_v35 = vmul.f32 -1.702, %v5393_v15 }
 0x23a   : > { %6043 = vst [vmem:[#allocation70_spill] sm:$0xff] %v5389_v53  ;;  %v3621_v33 = vpop.eup %3620  ;;  %3640 = vrcp.f32 %v1611_v45  ;;  %v1612_v3 = vadd.f32 1.0, %v3619_v4  ;;  %v6045_v45 = vld [vmem:[#allocation36_spill] sm:$0xff]  ;;  %v1435_v19 = vmul.f32 1.442695, %v3039_v39  ;;  %v6050_v39 = vld [vmem:[#allocation41_spill] sm:$0xff] }
 0x23b   : > { %v3623_v29 = vpop.eup %3622  ;;  %3642 = vrcp.f32 %v1613_v32  ;;  %v1614_v9 = vadd.f32 1.0, %v3621_v33  ;;  %v5404_v4 = vadd.f32 %v6045_v45, %v4804_v48  ;;  %v3040_v33 = vmul.f32 -1.702, %v5397_v28 }
 0x23c   : > { %v3625_v2 = vpop.eup %3624  ;;  %3644 = vrcp.f32 %v1612_v3  ;;  %v1615_v44 = vadd.f32 1.0, %v3623_v29  ;;  %v6046_v3 = vld [vmem:[#allocation37_spill] sm:$0xff] }
 0x23d   : > { %v3627_v62 = vpop.eup %3626  ;;  %3646 = vrcp.f32 %v1614_v9  ;;  %v1617_v21 = vadd.f32 1.0, %v3625_v2  ;;  %v5409_v7 = vadd.f32 %v6046_v3, %v4798_v46  ;;  %v1433_v9 = vmul.f32 1.442695, %v3038_v56  ;;  %v6047_v2 = vld [vmem:[#allocation38_spill] sm:$0xff] }
 0x23e   : > { %v3629_v32 = vpop.eup %3628  ;;  %3648 = vrcp.f32 %v1615_v44  ;;  %v1616_v12 = vadd.f32 1.0, %v3627_v62  ;;  %v5413_v53 = vadd.f32 %v6047_v2, %v4800_v47  ;;  %v6048_v44 = vld [vmem:[#allocation39_spill] sm:$0xff]  ;;  %v1439_v3 = vmul.f32 1.442695, %v3041_v35 }
 0x23f   : > { %v3631_v42 = vpop.eup %3630  ;;  %3650 = vrcp.f32 %v1617_v21  ;;  %v1618_v29 = vadd.f32 1.0, %v3629_v32  ;;  %v5417_v62 = vadd.f32 %v6048_v44, %v4802_v40  ;;  %v3042_v31 = vmul.f32 -1.702, %v5404_v4  ;;  %v6049_v21 = vld [vmem:[#allocation40_spill] sm:$0xff] }
 0x240   : > { %v3633_v36 = vpop.eup %3632  ;;  %3652 = vrcp.f32 %v1616_v12  ;;  %v1619_v45 = vadd.f32 1.0, %v3631_v42  ;;  %v5422_v56 = vadd.f32 %v6049_v21, %v4804_v48  ;;  %v1437_v2 = vmul.f32 1.442695, %v3040_v33 }
 0x241   : > { %v3635_v13 = vpop.eup %3634  ;;  %3654 = vrcp.f32 %v1618_v29  ;;  %v3043_v12 = vmul.f32 -1.702, %v5409_v7  ;;  %v5427_v42 = vadd.f32 %v6050_v39, %v4798_v46  ;;  %v3045_v35 = vmul.f32 -1.702, %v5413_v53  ;;  %v6051_v29 = vld [vmem:[#allocation42_spill] sm:$0xff] }
 0x242   : > { %v3637_v32 = vpop.eup %3636  ;;  %3656 = vrcp.f32 %v1619_v45  ;;  %v5433_v5 = vadd.f32 %v6051_v29, %v4800_v47  ;;  %v1991_v45 = vmul.f32 %v3633_v36, %v5227_v25  ;;  %v3044_v18 = vmul.f32 -1.702, %v5417_v62 }
 0x243   : > { %v3639_v44 = vpop.eup %3638  ;;  %v1992_v10 = vmul.f32 %v3637_v32, %v5239_v43  ;;  %3658 = vpow2.f32 %v1431_v11  ;;  %v1993_v0 = vmul.f32 %v3635_v13, %v5234_v60  ;;  %v1441_v43 = vmul.f32 1.442695, %v3042_v31 }
 0x244   : > { %v3641_v21 = vpop.eup %3640  ;;  %v1994_v33 = vmul.f32 %v3639_v44, %v5248_v57  ;;  %3660 = vpow2.f32 %v1429_v59  ;;  %v3046_v11 = vmul.f32 -1.702, %v5422_v56  ;;  %v1443_v29 = vmul.f32 1.442695, %v3043_v12 }
 0x245   : > { %v3643_v39 = vpop.eup %3642  ;;  %3662 = vpow2.f32 %v1433_v9  ;;  %2292 = vmatprep.mubr.f32.mxu0 %v1992_v10  ;;  %v3047_v14 = vmul.f32 -1.702, %v5427_v42  ;;  %v1447_v36 = vmul.f32 1.442695, %v3045_v35  ;;  %v3049_v59 = vmul.f32 -1.702, %v5433_v5 }
 0x246   : > { %v3645_v32 = vpop.eup %3644  ;;  %3664 = vpow2.f32 %v1435_v19  ;;  %2517 = vmatprep.mubr.f32.mxu1 %v1994_v33  ;;  %2293 = vmatmul.mubr.f32.gmra.mrb[90].mxu0 %v1991_v45  ;;  %v1995_v31 = vmul.f32 %v3641_v21, %v5260_v38  ;;  %v1445_v13 = vmul.f32 1.442695, %v3044_v18  ;;  %v1997_v9 = vmul.f32 %v3643_v39, %v5271_v16 }
 0x247   : > { %v3647_v25 = vpop.eup %3646  ;;  %v1996_v57 = vmul.f32 %v3645_v32, %v5275_v41  ;;  %3666 = vpow2.f32 %v1439_v3  ;;  %2518 = vmatmul.mubr.f32.gmra.mrb[90].mxu1 %v1993_v0  ;;  %v1449_v12 = vmul.f32 1.442695, %v3046_v11  ;;  %v1451_v41 = vmul.f32 1.442695, %v3047_v14 }
 0x248   : > { %v3649_v60 = vpop.eup %3648  ;;  %v1998_v10 = vmul.f32 %v3647_v25, %v5286_v20  ;;  %3668 = vpow2.f32 %v1437_v2  ;;  %v1455_v38 = vmul.f32 1.442695, %v3049_v59  ;;  %v6052_v2 = vld [vmem:[#allocation43_spill] sm:$0xff]  ;;  %v5458_v33 = vadd.f32 %v5146_v52, %v4804_v48  ;;  %v6053_v59 = vld [vmem:[#allocation44_spill] sm:$0xff] }
 0x249   : > { %v3651_v19 = vpop.eup %3650  ;;  %3670 = vpow2.f32 %v1441_v43  ;;  %2297 = vmatprep.mubr.f32.mxu0 %v1996_v57  ;;  %v1999_v18 = vmul.f32 %v3649_v60, %v5293_v30  ;;  %v5453_v35 = vadd.f32 %v6052_v2, %v4802_v40  ;;  %v5463_v11 = vadd.f32 %v5152_v23, %v4798_v46 }
 0x24a   : > { %v3653_v44 = vpop.eup %3652  ;;  %3672 = vpow2.f32 %v1443_v29  ;;  %2522 = vmatprep.mubr.f32.mxu1 %v1998_v10  ;;  %2298 = vmatmul.mubr.f32.gmra.mrb[92].mxu0 %v1995_v31  ;;  %v2001_v21 = vmul.f32 %v3651_v19, %v5298_v26  ;;  %v5467_v52 = vadd.f32 %v5158_v49, %v4800_v47  ;;  %v5472_v60 = vadd.f32 %v6053_v59, %v4802_v40 }
 0x24b   : > { %v3655_v3 = vpop.eup %3654  ;;  %v2000_v0 = vmul.f32 %v3653_v44, %v5305_v58  ;;  %3674 = vpow2.f32 %v1447_v36  ;;  %2523 = vmatmul.mubr.f32.gmra.mrb[92].mxu1 %v1997_v9  ;;  %v3048_v26 = vmul.f32 -1.702, %v5453_v35  ;;  %v3050_v36 = vmul.f32 -1.702, %v5458_v33 }
 0x24c   : > { %v5447_v20 = vpop.eup %3656  ;;  %v2002_v16 = vmul.f32 %v3655_v3, %v5316_v17  ;;  %3676 = vpow2.f32 %v1445_v13  ;;  %v3051_v9 = vmul.f32 -1.702, %v5463_v11  ;;  %v3053_v44 = vmul.f32 -1.702, %v5467_v52 }
 0x24d   : > { %v3659_v14 = vpop.eup %3658  ;;  %3678 = vpow2.f32 %v1449_v12  ;;  %2302 = vmatprep.mubr.f32.mxu0 %v2000_v0  ;;  %v1453_v19 = vmul.f32 1.442695, %v3048_v26 }
 0x24e   : > { %v3661_v58 = vpop.eup %3660  ;;  %v1621_v45 = vadd.f32 1.0, %v3659_v14  ;;  %3680 = vpow2.f32 %v1451_v41  ;;  %2527 = vmatprep.mubr.f32.mxu1 %v2002_v16  ;;  %2303 = vmatmul.mubr.f32.gmra.mrb[94].mxu0 %v1999_v18  ;;  %v6054_v41 = vld [vmem:[#allocation45_spill] sm:$0xff]  ;;  %v1457_v18 = vmul.f32 1.442695, %v3050_v36  ;;  %v3052_v16 = vmul.f32 -1.702, %v5472_v60 }
 0x24f   : > { %v3663_v30 = vpop.eup %3662  ;;  %v1620_v17 = vadd.f32 1.0, %v3661_v58  ;;  %3682 = vpow2.f32 %v1455_v38  ;;  %2528 = vmatmul.mubr.f32.gmra.mrb[94].mxu1 %v2001_v21  ;;  %v5478_v3 = vadd.f32 %v6054_v41, %v4804_v48  ;;  %v5483_v21 = vadd.f32 %v5182_v50, %v4798_v46 }
 0x250   : > { %v3665_v39 = vpop.eup %3664  ;;  %3684 = vrcp.f32 %v1621_v45  ;;  %v1622_v43 = vadd.f32 1.0, %v3663_v30  ;;  %v5487_v58 = vadd.f32 %v5191_v24, %v4800_v47  ;;  %v1461_v36 = vmul.f32 1.442695, %v3052_v16  ;;  %v6056_v24 = vld [vmem:[#allocation47_spill] sm:$0xff] }
 0x251   : > { %v3667_v32 = vpop.eup %3666  ;;  %3686 = vrcp.f32 %v1620_v17  ;;  %v1623_v29 = vadd.f32 1.0, %v3665_v39  ;;  %v1459_v17 = vmul.f32 1.442695, %v3051_v9  ;;  %v6055_v39 = vld [vmem:[#allocation46_spill] sm:$0xff]  ;;  %v5496_v59 = vadd.f32 %v6056_v24, %v4804_v48 }
 0x252   : > { %v3669_v25 = vpop.eup %3668  ;;  %3688 = vrcp.f32 %v1622_v43  ;;  %v1625_v57 = vadd.f32 1.0, %v3667_v32  ;;  %v5491_v43 = vadd.f32 %v6055_v39, %v4802_v40 }
 0x253   : > { %v3671_v31 = vpop.eup %3670  ;;  %3690 = vrcp.f32 %v1623_v29  ;;  %v1624_v23 = vadd.f32 1.0, %v3669_v25  ;;  %v1463_v29 = vmul.f32 1.442695, %v3053_v44  ;;  %v3054_v25 = vmul.f32 -1.702, %v5478_v3 }
 0x254   : > { %v3673_v10 = vpop.eup %3672  ;;  %3692 = vrcp.f32 %v1625_v57  ;;  %v1626_v13 = vadd.f32 1.0, %v3671_v31  ;;  %v5508_v44 = vadd.f32 %v5207_v1, %v4800_v47 }
 0x255   : > { %v3675_v49 = vpop.eup %3674  ;;  %3694 = vrcp.f32 %v1624_v23  ;;  %v1627_v12 = vadd.f32 1.0, %v3673_v10  ;;  %v3055_v23 = vmul.f32 -1.702, %v5483_v21  ;;  %v3057_v10 = vmul.f32 -1.702, %v5487_v58 }
 0x256   : > { %v3677_v0 = vpop.eup %3676  ;;  %3696 = vrcp.f32 %v1626_v13  ;;  %v1629_v38 = vadd.f32 1.0, %v3675_v49  ;;  %v5502_v13 = vadd.f32 %v5203_v54, %v4798_v46  ;;  %v6057_v54 = vld [vmem:[#allocation48_spill] sm:$0xff] }
 0x257   : > { %v3679_v2 = vpop.eup %3678  ;;  %3698 = vrcp.f32 %v1627_v12  ;;  %v1628_v14 = vadd.f32 1.0, %v3677_v0  ;;  %v3056_v12 = vmul.f32 -1.702, %v5491_v43  ;;  %v2003_v0 = vmul.f32 %v5447_v20, %v5323_v34 }
 0x258   : > { %v3681_v45 = vpop.eup %3680  ;;  %3700 = vrcp.f32 %v1629_v38  ;;  %v1630_v30 = vadd.f32 1.0, %v3679_v2  ;;  %v5515_v16 = vadd.f32 %v6057_v54, %v4802_v40  ;;  %v1471_v39 = vmul.f32 1.442695, %v3057_v10  ;;  %v6060_v54 = vld [vmem:[#allocation27_spill] sm:$0xff] }
 0x259   : > { %v3683_v26 = vpop.eup %3682  ;;  %3702 = vrcp.f32 %v1628_v14  ;;  %v1631_v32 = vadd.f32 1.0, %v3681_v45  ;;  %v1465_v14 = vmul.f32 1.442695, %v3054_v25  ;;  %v3058_v45 = vmul.f32 -1.702, %v5496_v59 }
 0x25a   : > { %v3685_v50 = vpop.eup %3684  ;;  %3704 = vrcp.f32 %v1630_v30  ;;  %v1633_v57 = vadd.f32 1.0, %v3683_v26  ;;  %v1467_v30 = vmul.f32 1.442695, %v3055_v23  ;;  %v3059_v34 = vmul.f32 -1.702, %v5502_v13 }
 0x25b   : > { %v3687_v31 = vpop.eup %3686  ;;  %3706 = vrcp.f32 %v1631_v32 }
 0x25c   : > { %v3689_v9 = vpop.eup %3688  ;;  %v2004_v49 = vmul.f32 %v3687_v31, %v5369_v37  ;;  %3708 = vrcp.f32 %v1633_v57  ;;  %v2005_v37 = vmul.f32 %v3685_v50, %v5360_v22  ;;  %v3061_v22 = vmul.f32 -1.702, %v5508_v44 }
 0x25d   : > { %v3691_v41 = vpop.eup %3690  ;;  %v2006_v38 = vmul.f32 %v3689_v9, %v5378_v6  ;;  %3710 = vpow2.f32 %v1453_v19  ;;  %v1469_v19 = vmul.f32 1.442695, %v3056_v12  ;;  %v1473_v57 = vmul.f32 1.442695, %v3058_v45  ;;  %v6061_v45 = vld [vmem:[#allocation50_spill] sm:$0xff] }
 0x25e   : > { %v3693_v2 = vpop.eup %3692  ;;  %3712 = vpow2.f32 %v1457_v18  ;;  %2307 = vmatprep.mubr.f32.mxu0 %v2004_v49  ;;  %v2007_v26 = vmul.f32 %v3691_v41, %v5387_v61  ;;  %v1479_v61 = vmul.f32 1.442695, %v3061_v22 }
 0x25f   : > { %v3695_v1 = vpop.eup %3694  ;;  %3714 = vpow2.f32 %v1459_v17  ;;  %2532 = vmatprep.mubr.f32.mxu1 %v2006_v38  ;;  %2308 = vmatmul.mubr.f32.gmra.mrb[96].mxu0 %v2003_v0  ;;  %v3060_v17 = vmul.f32 -1.702, %v5515_v16  ;;  %v2009_v50 = vmul.f32 %v3693_v2, %v5393_v15  ;;  %v5544_v2 = vadd.f32 %v6060_v54, %v4800_v47 }
 0x260   : > { %v3697_v6 = vpop.eup %3696  ;;  %v2008_v20 = vmul.f32 %v3695_v1, %v5397_v28  ;;  %3716 = vpow2.f32 %v1463_v29  ;;  %2533 = vmatmul.mubr.f32.gmra.mrb[96].mxu1 %v2005_v37  ;;  %v1475_v29 = vmul.f32 1.442695, %v3059_v34  ;;  %v5548_v1 = vadd.f32 %v6061_v45, %v4802_v40 }
 0x261   : > { %v3699_v18 = vpop.eup %3698  ;;  %v2010_v32 = vmul.f32 %v3697_v6, %v5404_v4  ;;  %3718 = vpow2.f32 %v1461_v36  ;;  %v1477_v23 = vmul.f32 1.442695, %v3060_v17  ;;  %v6062_v6 = vld [vmem:[#allocation26_spill] sm:$0xff]  ;;  %v3065_v17 = vmul.f32 -1.702, %v5544_v2 }
 0x262   : > { %v3701_v25 = vpop.eup %3700  ;;  %3720 = vpow2.f32 %v1465_v14  ;;  %2312 = vmatprep.mubr.f32.mxu0 %v2008_v20  ;;  %v2011_v36 = vmul.f32 %v3699_v18, %v5409_v7  ;;  %v5553_v20 = vadd.f32 %v6062_v6, %v4804_v48  ;;  %v6066_v6 = vld [vmem:[#allocation51_spill] sm:$0xff] }
 0x263   : > { %v3703_v28 = vpop.eup %3702  ;;  %3722 = vpow2.f32 %v1467_v30  ;;  %2537 = vmatprep.mubr.f32.mxu1 %v2010_v32  ;;  %2313 = vmatmul.mubr.f32.gmra.mrb[98].mxu0 %v2007_v26  ;;  %v2013_v9 = vmul.f32 %v3701_v25, %v5413_v53 }
 0x264   : > { %v3705_v24 = vpop.eup %3704  ;;  %v2012_v31 = vmul.f32 %v3703_v28, %v5417_v62  ;;  %3724 = vpow2.f32 %v1471_v39  ;;  %2538 = vmatmul.mubr.f32.gmra.mrb[98].mxu1 %v2009_v50  ;;  %v6058_v62 = vld [vmem:[#allocation49_spill] sm:$0xff]  ;;  %v6063_v28 = vld [vmem:[#allocation28_spill] sm:$0xff] }
 0x265   : > { %v5527_v4 = vpop.eup %3706  ;;  %v2014_v15 = vmul.f32 %v3705_v24, %v5422_v56  ;;  %3726 = vpow2.f32 %v1469_v19  ;;  %v5536_v12 = vadd.f32 %v6058_v62, %v4804_v48  ;;  %v6059_v56 = vld [vmem:[#allocation25_spill] sm:$0xff] }
 0x266   : > { %v5531_v10 = vpop.eup %3708  ;;  %3728 = vpow2.f32 %v1473_v57  ;;  %2317 = vmatprep.mubr.f32.mxu0 %v2012_v31  ;;  %v5540_v0 = vadd.f32 %v6059_v56, %v4798_v46  ;;  %v3064_v57 = vmul.f32 -1.702, %v5548_v1  ;;  %v1487_v56 = vmul.f32 1.442695, %v3065_v17 }
 0x267   : > { %v3711_v49 = vpop.eup %3710  ;;  %3730 = vpow2.f32 %v1475_v29  ;;  %2542 = vmatprep.mubr.f32.mxu1 %v2014_v15  ;;  %2318 = vmatmul.mubr.f32.gmra.mrb[100].mxu0 %v2011_v36  ;;  %v3062_v34 = vmul.f32 -1.702, %v5536_v12  ;;  %v5560_v29 = vadd.f32 %v6063_v28, %v4798_v46  ;;  %v3066_v36 = vmul.f32 -1.702, %v5553_v20  ;;  %v6068_v28 = vld [vmem:[#allocation31_spill] sm:$0xff] }
 0x268   : > { %v3713_v41 = vpop.eup %3712  ;;  %v1632_v7 = vadd.f32 1.0, %v3711_v49  ;;  %3732 = vpow2.f32 %v1479_v61  ;;  %2543 = vmatmul.mubr.f32.gmra.mrb[100].mxu1 %v2013_v9  ;;  %v3063_v18 = vmul.f32 -1.702, %v5540_v0  ;;  %v6064_v49 = vld [vmem:[#allocation29_spill] sm:$0xff] }
 0x269   : > { %v3715_v38 = vpop.eup %3714  ;;  %v1634_v53 = vadd.f32 1.0, %v3713_v41  ;;  %3734 = vpow2.f32 %v1477_v23  ;;  %v1481_v61 = vmul.f32 1.442695, %v3062_v34  ;;  %v5565_v62 = vadd.f32 %v6064_v49, %v4800_v47 }
 0x26a   : > { %v3717_v37 = vpop.eup %3716  ;;  %3736 = vrcp.f32 %v1632_v7  ;;  %v1635_v14 = vadd.f32 1.0, %v3715_v38  ;;  %v1483_v9 = vmul.f32 1.442695, %v3063_v18  ;;  %v6065_v38 = vld [vmem:[#allocation30_spill] sm:$0xff]  ;;  %v3067_v45 = vmul.f32 -1.702, %v5560_v29 }
 0x26b   : > { %v3719_v30 = vpop.eup %3718  ;;  %3738 = vrcp.f32 %v1634_v53  ;;  %v1637_v39 = vadd.f32 1.0, %v3717_v37  ;;  %v5569_v53 = vadd.f32 %v6065_v38, %v4802_v40  ;;  %v1489_v34 = vmul.f32 1.442695, %v3066_v36  ;;  %v6070_v38 = vld [vmem:[#allocation54_spill] sm:$0xff] }
 0x26c   : > { %v3721_v19 = vpop.eup %3720  ;;  %3740 = vrcp.f32 %v1635_v14  ;;  %v1636_v22 = vadd.f32 1.0, %v3719_v30  ;;  %v1485_v14 = vmul.f32 1.442695, %v3064_v57  ;;  %v2015_v36 = vmul.f32 %v5527_v4, %v5427_v42 }
 0x26d   : > { %v3723_v26 = vpop.eup %3722  ;;  %3742 = vrcp.f32 %v1637_v39  ;;  %v1638_v32 = vadd.f32 1.0, %v3721_v19  ;;  %v5574_v19 = vadd.f32 %v6066_v6, %v4804_v48  ;;  %v3068_v57 = vmul.f32 -1.702, %v5569_v53 }
 0x26e   : > { %v3725_v25 = vpop.eup %3724  ;;  %3744 = vrcp.f32 %v1636_v22  ;;  %v1639_v50 = vadd.f32 1.0, %v3723_v26  ;;  %v3069_v26 = vmul.f32 -1.702, %v5565_v62 }
 0x26f   : > { %v3727_v24 = vpop.eup %3726  ;;  %3746 = vrcp.f32 %v1638_v32  ;;  %v1641_v31 = vadd.f32 1.0, %v3725_v25  ;;  %v6067_v32 = vld [vmem:[#allocation52_spill] sm:$0xff] }
 0x270   : > { %v3729_v15 = vpop.eup %3728  ;;  %3748 = vrcp.f32 %v1639_v50  ;;  %v1640_v23 = vadd.f32 1.0, %v3727_v24  ;;  %v5579_v17 = vadd.f32 %v6067_v32, %v4798_v46  ;;  %v5585_v24 = vadd.f32 %v6068_v28, %v4800_v47 }
 0x271   : > { %v3731_v41 = vpop.eup %3730  ;;  %3750 = vrcp.f32 %v1641_v31  ;;  %v1642_v7 = vadd.f32 1.0, %v3729_v15  ;;  %v1495_v4 = vmul.f32 1.442695, %v3069_v26 }
 0x272   : > { %v3733_v54 = vpop.eup %3732  ;;  %3752 = vrcp.f32 %v1640_v23  ;;  %v1643_v37 = vadd.f32 1.0, %v3731_v41  ;;  %v6069_v23 = vld [vmem:[#allocation53_spill] sm:$0xff] }
 0x273   : > { %v3735_v30 = vpop.eup %3734  ;;  %3754 = vrcp.f32 %v1642_v7  ;;  %v1645_v39 = vadd.f32 1.0, %v3733_v54  ;;  %v5592_v49 = vadd.f32 %v6069_v23, %v4802_v40  ;;  %v3070_v7 = vmul.f32 -1.702, %v5574_v19 }
 0x274   : > { %v3737_v22 = vpop.eup %3736  ;;  %3756 = vrcp.f32 %v1643_v37  ;;  %v1644_v18 = vadd.f32 1.0, %v3735_v30  ;;  %v5599_v54 = vadd.f32 %v6070_v38, %v4804_v48  ;;  %v3071_v37 = vmul.f32 -1.702, %v5579_v17 }
 0x275   : > { %v3739_v25 = vpop.eup %3738  ;;  %v2016_v50 = vmul.f32 %v3737_v22, %v5453_v35  ;;  %3758 = vrcp.f32 %v1645_v39  ;;  %v2017_v35 = vmul.f32 %v5531_v10, %v5433_v5  ;;  %v1493_v5 = vmul.f32 1.442695, %v3068_v57 }
 0x276   : > { %v3741_v31 = vpop.eup %3740  ;;  %v2018_v15 = vmul.f32 %v3739_v25, %v5458_v33  ;;  %3760 = vrcp.f32 %v1644_v18  ;;  %v1491_v33 = vmul.f32 1.442695, %v3067_v45  ;;  %v3073_v10 = vmul.f32 -1.702, %v5585_v24 }
 0x277   : > { %v3743_v41 = vpop.eup %3742  ;;  %3762 = vpow2.f32 %v1481_v61  ;;  %2322 = vmatprep.mubr.f32.mxu0 %v2016_v50  ;;  %v2019_v6 = vmul.f32 %v3741_v31, %v5463_v11  ;;  %v1497_v26 = vmul.f32 1.442695, %v3070_v7  ;;  %v1499_v32 = vmul.f32 1.442695, %v3071_v37 }
 0x278   : > { %v3745_v42 = vpop.eup %3744  ;;  %3764 = vpow2.f32 %v1483_v9  ;;  %2547 = vmatprep.mubr.f32.mxu1 %v2018_v15  ;;  %2323 = vmatmul.mubr.f32.gmra.mrb[102].mxu0 %v2015_v36  ;;  %v3072_v9 = vmul.f32 -1.702, %v5592_v49  ;;  %v2021_v18 = vmul.f32 %v3743_v41, %v5467_v52 }
 0x279   : > { %v3747_v30 = vpop.eup %3746  ;;  %v2020_v39 = vmul.f32 %v3745_v42, %v5472_v60  ;;  %3766 = vpow2.f32 %v1487_v56  ;;  %2548 = vmatmul.mubr.f32.gmra.mrb[102].mxu1 %v2017_v35  ;;  %v3074_v60 = vmul.f32 -1.702, %v5599_v54  ;;  %v6072_v35 = vld [vmem:[#allocation33_spill] sm:$0xff] }
 0x27a   : > { %v3749_v61 = vpop.eup %3748  ;;  %v2022_v22 = vmul.f32 %v3747_v30, %v5478_v3  ;;  %3768 = vpow2.f32 %v1485_v14  ;;  %v1503_v3 = vmul.f32 1.442695, %v3073_v10  ;;  %v5623_v7 = vadd.f32 %v6072_v35, %v4800_v47  ;;  %v6074_v30 = vld [vmem:[#allocation34_spill] sm:$0xff] }
 0x27b   : > { %v3751_v45 = vpop.eup %3750  ;;  %3770 = vpow2.f32 %v1489_v34  ;;  %2327 = vmatprep.mubr.f32.mxu0 %v2020_v39  ;;  %v2023_v50 = vmul.f32 %v3749_v61, %v5483_v21  ;;  %v1501_v34 = vmul.f32 1.442695, %v3072_v9  ;;  %v1505_v31 = vmul.f32 1.442695, %v3074_v60  ;;  %v6071_v21 = vld [vmem:[#allocation32_spill] sm:$0xff] }
 0x27c   : > { %v3753_v56 = vpop.eup %3752  ;;  %3772 = vpow2.f32 %v1491_v33  ;;  %2552 = vmatprep.mubr.f32.mxu1 %v2022_v22  ;;  %2328 = vmatmul.mubr.f32.gmra.mrb[104].mxu0 %v2019_v6  ;;  %v2025_v28 = vmul.f32 %v3751_v45, %v5487_v58  ;;  %v3077_v22 = vmul.f32 -1.702, %v5623_v7 }
 0x27d   : > { %v3755_v25 = vpop.eup %3754  ;;  %v2024_v11 = vmul.f32 %v3753_v56, %v5491_v43  ;;  %3774 = vpow2.f32 %v1495_v4  ;;  %2553 = vmatmul.mubr.f32.gmra.mrb[104].mxu1 %v2021_v18 }
 0x27e   : > { %v3757_v14 = vpop.eup %3756  ;;  %v2026_v52 = vmul.f32 %v3755_v25, %v5496_v59  ;;  %3776 = vpow2.f32 %v1493_v5  ;;  %v5618_v59 = vadd.f32 %v6071_v21, %v4798_v46 }
 0x27f   : > { %v5612_v57 = vpop.eup %3758  ;;  %3778 = vpow2.f32 %v1497_v26  ;;  %2332 = vmatprep.mubr.f32.mxu0 %v2024_v11  ;;  %v2027_v41 = vmul.f32 %v3757_v14, %v5502_v13  ;;  %v5631_v13 = vadd.f32 %v6074_v30, %v4804_v48  ;;  %v6075_v26 = vld [vmem:[#allocation56_spill] sm:$0xff] }
 0x280   : > { %v3761_v36 = vpop.eup %3760  ;;  %3780 = vpow2.f32 %v1499_v32  ;;  %2557 = vmatprep.mubr.f32.mxu1 %v2026_v52  ;;  %2333 = vmatmul.mubr.f32.gmra.mrb[106].mxu0 %v2023_v50  ;;  %v3075_v10 = vmul.f32 -1.702, %v5618_v59  ;;  %v5638_v60 = vadd.f32 %v6075_v26, %v4798_v46  ;;  %v6076_v50 = vld [vmem:[#allocation57_spill] sm:$0xff] }
 0x281   : > { %v3763_v43 = vpop.eup %3762  ;;  %v2028_v15 = vmul.f32 %v3761_v36, %v5515_v16  ;;  %3782 = vpow2.f32 %v1503_v3  ;;  %2558 = vmatmul.mubr.f32.gmra.mrb[106].mxu1 %v2025_v28  ;;  %v6073_v16 = vld [vmem:[#allocation55_spill] sm:$0xff]  ;;  %v3078_v25 = vmul.f32 -1.702, %v5631_v13  ;;  %v5643_v52 = vadd.f32 %v6076_v50, %v4800_v47  ;;  %v6077_v36 = vld [vmem:[#allocation58_spill] sm:$0xff] }
 0x282   : > { %v3765_v23 = vpop.eup %3764  ;;  %v1646_v58 = vadd.f32 1.0, %v3763_v43  ;;  %3784 = vpow2.f32 %v1501_v34  ;;  %v5627_v33 = vadd.f32 %v6073_v16, %v4802_v40  ;;  %v1507_v14 = vmul.f32 1.442695, %v3075_v10 }
 0x283   : > { %v3767_v38 = vpop.eup %3766  ;;  %v1647_v42 = vadd.f32 1.0, %v3765_v23  ;;  %3786 = vpow2.f32 %v1505_v31  ;;  %2337 = vmatprep.mubr.f32.mxu0 %v2028_v15  ;;  %v1511_v31 = vmul.f32 1.442695, %v3077_v22  ;;  %v5647_v43 = vadd.f32 %v6077_v36, %v4802_v40 }
 0x284   : > { %v3769_v4 = vpop.eup %3768  ;;  %3788 = vrcp.f32 %v1646_v58  ;;  %v1649_v37 = vadd.f32 1.0, %v3767_v38  ;;  %2338 = vmatmul.mubr.f32.gmra.mrb[108].mxu0 %v2027_v41  ;;  %v3076_v18 = vmul.f32 -1.702, %v5627_v33  ;;  %v3079_v41 = vmul.f32 -1.702, %v5638_v60 }
 0x285   : > { %v3771_v39 = vpop.eup %3770  ;;  %3790 = vrcp.f32 %v1647_v42  ;;  %v1648_v5 = vadd.f32 1.0, %v3769_v4  ;;  %v1513_v38 = vmul.f32 1.442695, %v3078_v25  ;;  %v6078_v42 = vld [vmem:[#allocation59_spill] sm:$0xff]  ;;  %v3081_v30 = vmul.f32 -1.702, %v5643_v52 }
 0x286   : > { %v3773_v61 = vpop.eup %3772  ;;  %3792 = vrcp.f32 %v1649_v37  ;;  %v1650_v6 = vadd.f32 1.0, %v3771_v39  ;;  %v1509_v23 = vmul.f32 1.442695, %v3076_v18  ;;  %v5652_v16 = vadd.f32 %v6078_v42, %v4804_v48  ;;  %v6079_v18 = vld [vmem:[#allocation60_spill] sm:$0xff] }
 0x287   : > { %v3775_v9 = vpop.eup %3774  ;;  %3794 = vrcp.f32 %v1648_v5  ;;  %v1651_v45 = vadd.f32 1.0, %v3773_v61  ;;  %v5657_v39 = vadd.f32 %v5327_v8, %v4798_v46  ;;  %v3080_v61 = vmul.f32 -1.702, %v5647_v43 }
 0x288   : > { %v3777_v56 = vpop.eup %3776  ;;  %3796 = vrcp.f32 %v1650_v6  ;;  %v1653_v32 = vadd.f32 1.0, %v3775_v9  ;;  %v5662_v6 = vadd.f32 %v5332_v27, %v4800_v47  ;;  %v5667_v26 = vadd.f32 %v6079_v18, %v4802_v40 }
 0x289   : > { %v3779_v11 = vpop.eup %3778  ;;  %3798 = vrcp.f32 %v1651_v45  ;;  %v1652_v3 = vadd.f32 1.0, %v3777_v56  ;;  %v1515_v45 = vmul.f32 1.442695, %v3079_v41  ;;  %v2029_v56 = vmul.f32 %v5612_v57, %v5508_v44 }
 0x28a   : > { %v3781_v34 = vpop.eup %3780  ;;  %3800 = vrcp.f32 %v1653_v32  ;;  %v1654_v28 = vadd.f32 1.0, %v3779_v11  ;;  %v3082_v32 = vmul.f32 -1.702, %v5652_v16  ;;  %v5674_v27 = vadd.f32 %v5338_v51, %v4804_v48 }
 0x28b   : > { %v3783_v15 = vpop.eup %3782  ;;  %3802 = vrcp.f32 %v1652_v3  ;;  %v1655_v21 = vadd.f32 1.0, %v3781_v34  ;;  %v3083_v11 = vmul.f32 -1.702, %v5657_v39  ;;  %v5679_v3 = vadd.f32 %v5342_v55, %v4798_v46 }
 0x28c   : > { %v3785_v58 = vpop.eup %3784  ;;  %3804 = vrcp.f32 %v1654_v28  ;;  %v1657_v35 = vadd.f32 1.0, %v3783_v15  ;;  %v1517_v57 = vmul.f32 1.442695, %v3080_v61  ;;  %v3085_v34 = vmul.f32 -1.702, %v5662_v6 }
 0x28d   : > { %v3787_v4 = vpop.eup %3786  ;;  %3806 = vrcp.f32 %v1655_v21  ;;  %v1656_v37 = vadd.f32 1.0, %v3785_v58  ;;  %v3084_v36 = vmul.f32 -1.702, %v5667_v26  ;;  %v1521_v21 = vmul.f32 1.442695, %v3082_v32 }
 0x28e   : > { %v3789_v5 = vpop.eup %3788  ;;  %3808 = vrcp.f32 %v1657_v35  ;;  %v1658_v10 = vadd.f32 1.0, %v3787_v4  ;;  %v1523_v41 = vmul.f32 1.442695, %v3083_v11  ;;  %v3087_v58 = vmul.f32 -1.702, %v5679_v3 }
 0x28f   : > { %v3791_v22 = vpop.eup %3790  ;;  %v2030_v9 = vmul.f32 %v3789_v5, %v5536_v12  ;;  %3810 = vrcp.f32 %v1656_v37  ;;  %v1519_v12 = vmul.f32 1.442695, %v3081_v30  ;;  %v1525_v42 = vmul.f32 1.442695, %v3084_v36 }
 0x290   : > { %v3793_v8 = vpop.eup %3792  ;;  %3812 = vrcp.f32 %v1658_v10  ;;  %v2031_v28 = vmul.f32 %v3791_v22, %v5540_v0  ;;  %v1531_v10 = vmul.f32 1.442695, %v3087_v58  ;;  %v5699_v18 = vadd.f32 %v5346_v63, %v4800_v47 }
 0x291   : > { %v3795_v25 = vpop.eup %3794  ;;  %3814 = vpow2.f32 %v1507_v14  ;;  %2562 = vmatprep.mubr.f32.mxu1 %v2030_v9  ;;  %v2033_v55 = vmul.f32 %v3793_v8, %v5544_v2 }
 0x292   : > { %v3797_v50 = vpop.eup %3796  ;;  %v2032_v44 = vmul.f32 %v3795_v25, %v5548_v1  ;;  %3816 = vpow2.f32 %v1511_v31  ;;  %2563 = vmatmul.mubr.f32.gmra.mrb[108].mxu1 %v2029_v56  ;;  %v3086_v1 = vmul.f32 -1.702, %v5674_v27  ;;  %v3089_v11 = vmul.f32 -1.702, %v5699_v18 }
 0x293   : > { %v3799_v51 = vpop.eup %3798  ;;  %v2034_v14 = vmul.f32 %v3797_v50, %v5553_v20  ;;  %3818 = vpow2.f32 %v1509_v23  ;;  %v1527_v23 = vmul.f32 1.442695, %v3085_v34  ;;  %v6081_v50 = vld [vmem:[#allocation62_spill] sm:$0xff] }
 0x294   : > { %v3801_v15 = vpop.eup %3800  ;;  %3820 = vpow2.f32 %v1513_v38  ;;  %2342 = vmatprep.mubr.f32.mxu0 %v2032_v44  ;;  %v2035_v2 = vmul.f32 %v3799_v51, %v5560_v29  ;;  %v1529_v30 = vmul.f32 1.442695, %v3086_v1  ;;  %v5708_v44 = vadd.f32 %v6081_v50, %v4804_v48  ;;  %v6082_v51 = vld [vmem:[#allocation63_spill] sm:$0xff] }
 0x295   : > { %v3803_v31 = vpop.eup %3802  ;;  %3822 = vpow2.f32 %v1515_v45  ;;  %2567 = vmatprep.mubr.f32.mxu1 %v2034_v14  ;;  %2343 = vmatmul.mubr.f32.gmra.mrb[110].mxu0 %v2031_v28  ;;  %v2037_v37 = vmul.f32 %v3801_v15, %v5565_v62  ;;  %v5712_v28 = vadd.f32 %v6082_v51, %v4798_v46  ;;  %v6083_v15 = vld [vmem:[#allocation64_spill] sm:$0xff] }
 0x296   : > { %v3805_v0 = vpop.eup %3804  ;;  %v2036_v20 = vmul.f32 %v3803_v31, %v5569_v53  ;;  %3824 = vpow2.f32 %v1519_v12  ;;  %2568 = vmatmul.mubr.f32.gmra.mrb[110].mxu1 %v2033_v55  ;;  %v5716_v55 = vadd.f32 %v6083_v15, %v4800_v47 }
 0x297   : > { %v3807_v35 = vpop.eup %3806  ;;  %v2038_v38 = vmul.f32 %v3805_v0, %v5574_v19  ;;  %3826 = vpow2.f32 %v1517_v57 }
 0x298   : > { %v3809_v4 = vpop.eup %3808  ;;  %3828 = vpow2.f32 %v1521_v21  ;;  %2347 = vmatprep.mubr.f32.mxu0 %v2036_v20  ;;  %v2039_v19 = vmul.f32 %v3807_v35, %v5579_v17  ;;  %v3090_v35 = vmul.f32 -1.702, %v5708_v44 }
 0x299   : > { %v3811_v5 = vpop.eup %3810  ;;  %3830 = vpow2.f32 %v1523_v41  ;;  %2572 = vmatprep.mubr.f32.mxu1 %v2038_v38  ;;  %2348 = vmatmul.mubr.f32.gmra.mrb[112].mxu0 %v2035_v2  ;;  %v2041_v9 = vmul.f32 %v3809_v4, %v5585_v24  ;;  %v6080_v24 = vld [vmem:[#allocation61_spill] sm:$0xff]  ;;  %v6085_v4 = vld [vmem:[#allocation66_spill] sm:$0xff] }
 0x29a   : > { %v3813_v53 = vpop.eup %3812  ;;  %v2040_v61 = vmul.f32 %v3811_v5, %v5592_v49  ;;  %3832 = vpow2.f32 %v1527_v23  ;;  %2573 = vmatmul.mubr.f32.gmra.mrb[112].mxu1 %v2037_v37  ;;  %v5703_v25 = vadd.f32 %v6080_v24, %v4802_v40  ;;  %v6084_v41 = vld [vmem:[#allocation65_spill] sm:$0xff]  ;;  %v1535_v23 = vmul.f32 1.442695, %v3089_v11 }
 0x29b   : > { %v3815_v29 = vpop.eup %3814  ;;  %v2042_v22 = vmul.f32 %v3813_v53, %v5599_v54  ;;  %3834 = vpow2.f32 %v1525_v42  ;;  %v5721_v58 = vadd.f32 %v6084_v41, %v4802_v40  ;;  %v3091_v42 = vmul.f32 -1.702, %v5712_v28  ;;  %v6086_v53 = vld [vmem:[#allocation67_spill] sm:$0xff] }
 0x29c   : > { %v3817_v62 = vpop.eup %3816  ;;  %v1659_v45 = vadd.f32 1.0, %v3815_v29  ;;  %3836 = vpow2.f32 %v1529_v30  ;;  %2352 = vmatprep.mubr.f32.mxu0 %v2040_v61  ;;  %v3088_v31 = vmul.f32 -1.702, %v5703_v25  ;;  %v5727_v37 = vadd.f32 %v6085_v4, %v4804_v48 }
 0x29d   : > { %v3819_v8 = vpop.eup %3818  ;;  %v1661_v49 = vadd.f32 1.0, %v3817_v62  ;;  %3838 = vpow2.f32 %v1531_v10  ;;  %2577 = vmatprep.mubr.f32.mxu1 %v2042_v22  ;;  %2353 = vmatmul.mubr.f32.gmra.mrb[114].mxu0 %v2039_v19  ;;  %v3093_v10 = vmul.f32 -1.702, %v5716_v55  ;;  %v5732_v61 = vadd.f32 %v6086_v53, %v4798_v46  ;;  %v6087_v62 = vld [vmem:[#allocation68_spill] sm:$0xff] }
 0x29e   : > { %v3821_v56 = vpop.eup %3820  ;;  %3840 = vrcp.f32 %v1659_v45  ;;  %v1660_v17 = vadd.f32 1.0, %v3819_v8  ;;  %2578 = vmatmul.mubr.f32.gmra.mrb[114].mxu1 %v2041_v9  ;;  %v3092_v22 = vmul.f32 -1.702, %v5721_v58  ;;  %v5739_v9 = vadd.f32 %v6087_v62, %v4800_v47 }
 0x29f   : > { %v3823_v54 = vpop.eup %3822  ;;  %3842 = vrcp.f32 %v1661_v49  ;;  %v1662_v32 = vadd.f32 1.0, %v3821_v56  ;;  %v1533_v8 = vmul.f32 1.442695, %v3088_v31  ;;  %v6088_v49 = vld [vmem:[#allocation69_spill] sm:$0xff]  ;;  %v1537_v46 = vmul.f32 1.442695, %v3090_v35 }
 0x2a0   : > { %v3825_v12 = vpop.eup %3824  ;;  %3844 = vrcp.f32 %v1660_v17  ;;  %v1663_v63 = vadd.f32 1.0, %v3823_v54  ;;  %v5743_v56 = vadd.f32 %v6088_v49, %v4802_v40  ;;  %v3094_v54 = vmul.f32 -1.702, %v5727_v37 }
 0x2a1   : > { %v3827_v57 = vpop.eup %3826  ;;  %3846 = vrcp.f32 %v1662_v32  ;;  %v1665_v34 = vadd.f32 1.0, %v3825_v12  ;;  %v6089_v32 = vld [vmem:[#allocation70_spill] sm:$0xff]  ;;  %v1543_v47 = vmul.f32 1.442695, %v3093_v10  ;;  %v3095_v11 = vmul.f32 -1.702, %v5732_v61 }
 0x2a2   : > { %v3829_v14 = vpop.eup %3828  ;;  %3848 = vrcp.f32 %v1663_v63  ;;  %v1664_v36 = vadd.f32 1.0, %v3827_v57  ;;  %v5748_v24 = vadd.f32 %v6089_v32, %v4804_v48  ;;  %v1539_v63 = vmul.f32 1.442695, %v3091_v42 }
 0x2a3   : > { %v3831_v21 = vpop.eup %3830  ;;  %3850 = vrcp.f32 %v1665_v34  ;;  %v1666_v1 = vadd.f32 1.0, %v3829_v14  ;;  %v1541_v40 = vmul.f32 1.442695, %v3092_v22  ;;  %v3097_v34 = vmul.f32 -1.702, %v5739_v9 }
 0x2a4   : > { %v3833_v0 = vpop.eup %3832  ;;  %3852 = vrcp.f32 %v1664_v36  ;;  %v1667_v20 = vadd.f32 1.0, %v3831_v21  ;;  %v3096_v48 = vmul.f32 -1.702, %v5743_v56  ;;  %v3098_v31 = vmul.f32 -1.702, %v5748_v24 }
 0x2a5   : > { %v3835_v2 = vpop.eup %3834  ;;  %3854 = vrcp.f32 %v1666_v1  ;;  %v1669_v38 = vadd.f32 1.0, %v3833_v0  ;;  %v1545_v1 = vmul.f32 1.442695, %v3094_v54  ;;  %v1547_v41 = vmul.f32 1.442695, %v3095_v11 }
 0x2a6   : > { %v3837_v30 = vpop.eup %3836  ;;  %3856 = vrcp.f32 %v1667_v20  ;;  %v1668_v5 = vadd.f32 1.0, %v3835_v2  ;;  %v1549_v35 = vmul.f32 1.442695, %v3096_v48  ;;  %v1553_v42 = vmul.f32 1.442695, %v3098_v31 }
 0x2a7   : > { %v5734_v29 = vpop.eup %3838  ;;  %3858 = vrcp.f32 %v1669_v38  ;;  %v1670_v19 = vadd.f32 1.0, %v3837_v30 }
 0x2a8   : > { %v3841_v45 = vpop.eup %3840  ;;  %3860 = vrcp.f32 %v1668_v5 }
 0x2a9   : > { %v3843_v17 = vpop.eup %3842  ;;  %3862 = vrcp.f32 %v1670_v19  ;;  %v2043_v14 = vmul.f32 %v3841_v45, %v5618_v59 }
 0x2aa   : > { %v3845_v12 = vpop.eup %3844  ;;  %3864 = vpow2.f32 %v1535_v23  ;;  %v2045_v21 = vmul.f32 %v3843_v17, %v5623_v7 }
 0x2ab   : > { %v3847_v50 = vpop.eup %3846  ;;  %v2044_v57 = vmul.f32 %v3845_v12, %v5627_v33  ;;  %3866 = vpow2.f32 %v1533_v8 }
 0x2ac   : > { %v3849_v51 = vpop.eup %3848  ;;  %v2046_v36 = vmul.f32 %v3847_v50, %v5631_v13  ;;  %3868 = vpow2.f32 %v1537_v46  ;;  %v1551_v13 = vmul.f32 1.442695, %v3097_v34 }
 0x2ad   : > { %v3851_v15 = vpop.eup %3850  ;;  %2357 = vmatprep.mubr.f32.mxu0 %v2044_v57  ;;  %3870 = vpow2.f32 %v1539_v63  ;;  %v2047_v23 = vmul.f32 %v3849_v51, %v5638_v60 }
 0x2ae   : > { %v3853_v33 = vpop.eup %3852  ;;  %2582 = vmatprep.mubr.f32.mxu1 %v2046_v36  ;;  %2358 = vmatmul.mubr.f32.gmra.mrb[116].mxu0 %v2043_v14  ;;  %3872 = vpow2.f32 %v1543_v47  ;;  %v2049_v38 = vmul.f32 %v3851_v15, %v5643_v52  ;;  %v2069_v14 = vld [vmem:[#allocation2 + $0x10] sm:$0xff] }
 0x2af   : > { %v3855_v0 = vpop.eup %3854  ;;  %v2048_v59 = vmul.f32 %v3853_v33, %v5647_v43  ;;  %2583 = vmatmul.mubr.f32.gmra.mrb[116].mxu1 %v2045_v21  ;;  %3874 = vpow2.f32 %v1541_v40  ;;  %v2067_v43 = vld [vmem:[#allocation2] sm:$0xff] }
 0x2b0   : > { %v3857_v20 = vpop.eup %3856  ;;  %v2050_v7 = vmul.f32 %v3855_v0, %v5652_v16  ;;  %3876 = vpow2.f32 %v1545_v1  ;;  %v1671_v16 = vadd.f32 1.0, %v5734_v29  ;;  %v2068_v29 = vld [vmem:[#allocation2 + $0x8] sm:$0xff] }
 0x2b1   : > { %v3859_v2 = vpop.eup %3858  ;;  %2362 = vmatprep.mubr.f32.mxu0 %v2048_v59  ;;  %v2229_v4 = vpop.f32.mrb[64].mxu0  ;;  %3878 = vpow2.f32 %v1547_v41  ;;  %v2051_v22 = vmul.f32 %v3857_v20, %v5657_v39 }
 0x2b2   : > { %v3861_v30 = vpop.eup %3860  ;;  %2587 = vmatprep.mubr.f32.mxu1 %v2050_v7  ;;  %2363 = vmatmul.mubr.f32.gmra.mrb[118].mxu0 %v2047_v23  ;;  %v2454_v5 = vpop.f32.mrb[64].mxu1  ;;  %3880 = vpow2.f32 %v1551_v13  ;;  %v2053_v8 = vmul.f32 %v3859_v2, %v5662_v6 }
 0x2b3   : > { %v2231_v10 = vpop.f32.mrb[65].mxu0  ;;  %v3863_v53 = vpop.eup %3862  ;;  %v2052_v60 = vmul.f32 %v3861_v30, %v5667_v26  ;;  %2588 = vmatmul.mubr.f32.gmra.mrb[118].mxu1 %v2049_v38  ;;  %v2455_v19 = vadd.f32 %v2454_v5, %v2229_v4  ;;  %3882 = vpow2.f32 %v1549_v35 }
 0x2b4   : > { %v2456_v52 = vpop.f32.mrb[65].mxu1  ;;  %v2054_v62 = vmul.f32 %v3863_v53, %v5674_v27  ;;  %v3865_v45 = vpop.eup %3864  ;;  %3884 = vpow2.f32 %v1553_v42 }
 0x2b5   : > { %2367 = vmatprep.mubr.f32.mxu0 %v2052_v60  ;;  %v2613_v49 = vadd.f32 %v2455_v19, %v2067_v43  ;;  %v2234_v17 = vpop.f32.mrb[66].mxu0  ;;  %v3867_v46 = vpop.eup %3866  ;;  %v1673_v26 = vadd.f32 1.0, %v3865_v45  ;;  %3886 = vrcp.f32 %v1671_v16 }
 0x2b6   : > { %2592 = vmatprep.mubr.f32.mxu1 %v2054_v62  ;;  %2368 = vmatmul.mubr.f32.gmra.mrb[120].mxu0 %v2051_v22  ;;  %v2459_v54 = vpop.f32.mrb[66].mxu1  ;;  %v2236_v32 = vpop.f32.mrb[67].mxu0  ;;  %v1672_v39 = vadd.f32 1.0, %v3867_v46 }
 0x2b7   : > { %v3869_v12 = vpop.eup %3868  ;;  %2593 = vmatmul.mubr.f32.gmra.mrb[120].mxu1 %v2053_v8  ;;  %2645 = vst [vmem:[#allocation2] sm:$0xff] %v2613_v49  ;;  %v2460_v27 = vadd.f32 %v2459_v54, %v2234_v17  ;;  %v2461_v63 = vpop.f32.mrb[67].mxu1  ;;  %3888 = vrcp.f32 %v1673_v26 }
 0x2b8   : > { %v3871_v47 = vpop.eup %3870  ;;  %v1674_v6 = vadd.f32 1.0, %v3869_v12  ;;  %3890 = vrcp.f32 %v1672_v39  ;;  %v2071_v39 = vld [vmem:[#allocation2 + $0x20] sm:$0xff] }
 0x2b9   : > { %v3873_v11 = vpop.eup %3872  ;;  %v1675_v50 = vadd.f32 1.0, %v3871_v47  ;;  %v2614_v57 = vadd.f32 %v2460_v27, %v2068_v29  ;;  %v2239_v40 = vpop.f32.mrb[68].mxu0 }
 0x2ba   : > { %v3875_v34 = vpop.eup %3874  ;;  %3892 = vrcp.f32 %v1674_v6  ;;  %v1677_v51 = vadd.f32 1.0, %v3873_v11  ;;  %v2464_v36 = vpop.f32.mrb[68].mxu1 }
 0x2bb   : > { %v2241_v48 = vpop.f32.mrb[69].mxu0  ;;  %v3877_v15 = vpop.eup %3876  ;;  %3894 = vrcp.f32 %v1675_v50  ;;  %v1676_v21 = vadd.f32 1.0, %v3875_v34  ;;  %2646 = vst [vmem:[#allocation2 + $0x8] sm:$0xff] %v2614_v57  ;;  %v2465_v1 = vadd.f32 %v2464_v36, %v2239_v40  ;;  %v2072_v50 = vld [vmem:[#allocation2 + $0x28] sm:$0xff] }
 0x2bc   : > { %v2466_v31 = vpop.f32.mrb[69].mxu1  ;;  %v3879_v33 = vpop.eup %3878  ;;  %3896 = vrcp.f32 %v1677_v51  ;;  %v1678_v41 = vadd.f32 1.0, %v3877_v15  ;;  %v2073_v51 = vld [vmem:[#allocation2 + $0x30] sm:$0xff] }
 0x2bd   : > { %v3881_v0 = vpop.eup %3880  ;;  %3898 = vrcp.f32 %v1676_v21  ;;  %v1679_v59 = vadd.f32 1.0, %v3879_v33  ;;  %v2615_v13 = vadd.f32 %v2465_v1, %v2069_v14  ;;  %v2074_v31 = vld [vmem:[#allocation2 + $0x38] sm:$0xff] }
 0x2be   : > { %v3883_v20 = vpop.eup %3882  ;;  %3900 = vrcp.f32 %v1678_v41  ;;  %v1681_v23 = vadd.f32 1.0, %v3881_v0 }
 0x2bf   : > { %v3885_v7 = vpop.eup %3884  ;;  %3902 = vrcp.f32 %v1679_v59  ;;  %v1680_v35 = vadd.f32 1.0, %v3883_v20  ;;  %2647 = vst [vmem:[#allocation2 + $0x10] sm:$0xff] %v2615_v13 }
 0x2c0   : > { %3904 = vrcp.f32 %v1681_v23  ;;  %v1682_v2 = vadd.f32 1.0, %v3885_v7  ;;  %v3887_v38 = vpop.eup %3886  ;;  %v2075_v23 = vld [vmem:[#allocation2 + $0x40] sm:$0xff] }
 0x2c1   : > { %3906 = vrcp.f32 %v1680_v35  ;;  %v3889_v42 = vpop.eup %3888  ;;  %v2055_v10 = vmul.f32 %v3887_v38, %v5679_v3 }
 0x2c2   : > { %3908 = vrcp.f32 %v1682_v2  ;;  %v3891_v4 = vpop.eup %3890  ;;  %v2057_v16 = vmul.f32 %v3889_v42, %v5699_v18  ;;  %v2070_v18 = vld [vmem:[#allocation2 + $0x18] sm:$0xff] }
 0x2c3   : > { %v2056_v43 = vmul.f32 %v3891_v4, %v5703_v25 }
 0x2c4   : > { %v3893_v30 = vpop.eup %3892 }
 0x2c5   : > { %v3895_v5 = vpop.eup %3894  ;;  %v2058_v53 = vmul.f32 %v3893_v30, %v5708_v44  ;;  %2372 = vmatprep.mubr.f32.mxu0 %v2056_v43  ;;  %v2076_v43 = vld [vmem:[#allocation2 + $0x48] sm:$0xff] }
 0x2c6   : > { %v3897_v60 = vpop.eup %3896  ;;  %2373 = vmatmul.mubr.f32.gmra.mrb[122].mxu0 %v2055_v10  ;;  %v2059_v45 = vmul.f32 %v3895_v5, %v5712_v28 }
 0x2c7   : > { %v3899_v19 = vpop.eup %3898  ;;  %2597 = vmatprep.mubr.f32.mxu1 %v2058_v53  ;;  %v2061_v3 = vmul.f32 %v3897_v60, %v5716_v55 }
 0x2c8   : > { %v3901_v52 = vpop.eup %3900  ;;  %v2060_v22 = vmul.f32 %v3899_v19, %v5721_v58  ;;  %2598 = vmatmul.mubr.f32.gmra.mrb[122].mxu1 %v2057_v16  ;;  %v2077_v19 = vld [vmem:[#allocation2 + $0x50] sm:$0xff] }
 0x2c9   : > { %v3903_v62 = vpop.eup %3902  ;;  %v2062_v25 = vmul.f32 %v3901_v52, %v5727_v37 }
 0x2ca   : > { %v3905_v8 = vpop.eup %3904  ;;  %2377 = vmatprep.mubr.f32.mxu0 %v2060_v22  ;;  %v2244_v44 = vpop.f32.mrb[70].mxu0  ;;  %v2063_v28 = vmul.f32 %v3903_v62, %v5732_v61 }
 0x2cb   : > { %v3907_v49 = vpop.eup %3906  ;;  %2602 = vmatprep.mubr.f32.mxu1 %v2062_v25  ;;  %2378 = vmatmul.mubr.f32.gmra.mrb[124].mxu0 %v2059_v45  ;;  %v2469_v17 = vpop.f32.mrb[70].mxu1  ;;  %v2065_v55 = vmul.f32 %v3905_v8, %v5739_v9 }
 0x2cc   : > { %v2246_v46 = vpop.f32.mrb[71].mxu0  ;;  %v3909_v26 = vpop.eup %3908  ;;  %v2064_v58 = vmul.f32 %v3907_v49, %v5743_v56  ;;  %2603 = vmatmul.mubr.f32.gmra.mrb[124].mxu1 %v2061_v3  ;;  %v2470_v29 = vadd.f32 %v2469_v17, %v2244_v44  ;;  %v2078_v3 = vld [vmem:[#allocation2 + $0x58] sm:$0xff] }
 0x2cd   : > { %v2471_v54 = vpop.f32.mrb[71].mxu1  ;;  %v2066_v37 = vmul.f32 %v3909_v26, %v5748_v24 }
 0x2ce   : > { %2382 = vmatprep.mubr.f32.mxu0 %v2064_v58  ;;  %v2616_v32 = vadd.f32 %v2470_v29, %v2070_v18  ;;  %v2249_v12 = vpop.f32.mrb[72].mxu0  ;;  %v2079_v58 = vld [vmem:[#allocation2 + $0x60] sm:$0xff] }
 0x2cf   : > { %2607 = vmatprep.mubr.f32.mxu1 %v2066_v37  ;;  %2383 = vmatmul.mubr.f32.gmra.mrb[126].mxu0 %v2063_v28  ;;  %v2474_v27 = vpop.f32.mrb[72].mxu1  ;;  %v2251_v63 = vpop.f32.mrb[73].mxu0 }
 0x2d0   : > { %2608 = vmatmul.mubr.f32.gmra.mrb[126].mxu1 %v2065_v55  ;;  %2648 = vst [vmem:[#allocation2 + $0x18] sm:$0xff] %v2616_v32  ;;  %v2475_v56 = vadd.f32 %v2474_v27, %v2249_v12  ;;  %v2476_v47 = vpop.f32.mrb[73].mxu1  ;;  %v2080_v12 = vld [vmem:[#allocation2 + $0x68] sm:$0xff] }
 0x2d2   : > { %v2617_v6 = vadd.f32 %v2475_v56, %v2071_v39  ;;  %v2254_v11 = vpop.f32.mrb[74].mxu0 }
 0x2d3   : > { %v2479_v61 = vpop.f32.mrb[74].mxu1  ;;  %v2256_v57 = vpop.f32.mrb[75].mxu0 }
 0x2d4   : > { %2649 = vst [vmem:[#allocation2 + $0x20] sm:$0xff] %v2617_v6  ;;  %v2480_v24 = vadd.f32 %v2479_v61, %v2254_v11  ;;  %v2481_v9 = vpop.f32.mrb[75].mxu1  ;;  %v2081_v11 = vld [vmem:[#allocation2 + $0x70] sm:$0xff] }
 0x2d6   : > { %v2618_v40 = vadd.f32 %v2480_v24, %v2072_v50 }
 0x2d8   : > { %2650 = vst [vmem:[#allocation2 + $0x28] sm:$0xff] %v2618_v40 }
 0x2e3   : > { %v2259_v34 = vpop.f32.mrb[76].mxu0 }
 0x2e4   : > { %v2484_v14 = vpop.f32.mrb[76].mxu1  ;;  %v2261_v36 = vpop.f32.mrb[77].mxu0 }
 0x2e5   : > { %v2485_v48 = vadd.f32 %v2484_v14, %v2259_v34  ;;  %v2486_v15 = vpop.f32.mrb[77].mxu1  ;;  %v2082_v34 = vld [vmem:[#allocation2 + $0x78] sm:$0xff] }
 0x2e7   : > { %v2619_v21 = vadd.f32 %v2485_v48, %v2073_v51  ;;  %v2264_v1 = vpop.f32.mrb[78].mxu0 }
 0x2e8   : > { %v2489_v33 = vpop.f32.mrb[78].mxu1  ;;  %v2266_v41 = vpop.f32.mrb[79].mxu0 }
 0x2e9   : > { %2651 = vst [vmem:[#allocation2 + $0x30] sm:$0xff] %v2619_v21  ;;  %v2490_v0 = vadd.f32 %v2489_v33, %v2264_v1  ;;  %v2491_v59 = vpop.f32.mrb[79].mxu1  ;;  %v2083_v1 = vld [vmem:[#allocation2 + $0x80] sm:$0xff] }
 0x2eb   : > { %v2620_v13 = vadd.f32 %v2490_v0, %v2074_v31  ;;  %v2269_v20 = vpop.f32.mrb[80].mxu0 }
 0x2ec   : > { %v2494_v7 = vpop.f32.mrb[80].mxu1  ;;  %v2271_v35 = vpop.f32.mrb[81].mxu0 }
 0x2ed   : > { %2652 = vst [vmem:[#allocation2 + $0x38] sm:$0xff] %v2620_v13  ;;  %v2495_v2 = vadd.f32 %v2494_v7, %v2269_v20  ;;  %v2496_v38 = vpop.f32.mrb[81].mxu1  ;;  %v2084_v20 = vld [vmem:[#allocation2 + $0x88] sm:$0xff] }
 0x2ef   : > { %v2621_v42 = vadd.f32 %v2495_v2, %v2075_v23  ;;  %v2274_v4 = vpop.f32.mrb[82].mxu0 }
 0x2f0   : > { %v2276_v30 = vpop.f32.mrb[83].mxu0 }
 0x2f1   : > { %2653 = vst [vmem:[#allocation2 + $0x40] sm:$0xff] %v2621_v42 }
 0x2fd   : > { %v2499_v5 = vpop.f32.mrb[82].mxu1 }
 0x2fe   : > { %v2500_v10 = vadd.f32 %v2499_v5, %v2274_v4  ;;  %v2501_v53 = vpop.f32.mrb[83].mxu1  ;;  %v2085_v4 = vld [vmem:[#allocation2 + $0x90] sm:$0xff] }
 0x300   : > { %v2622_v60 = vadd.f32 %v2500_v10, %v2076_v43  ;;  %v2279_v16 = vpop.f32.mrb[84].mxu0 }
 0x301   : > { %v2504_v52 = vpop.f32.mrb[84].mxu1  ;;  %v2281_v22 = vpop.f32.mrb[85].mxu0 }
 0x302   : > { %2654 = vst [vmem:[#allocation2 + $0x48] sm:$0xff] %v2622_v60  ;;  %v2505_v62 = vadd.f32 %v2504_v52, %v2279_v16  ;;  %v2506_v45 = vpop.f32.mrb[85].mxu1  ;;  %v2086_v16 = vld [vmem:[#allocation2 + $0x98] sm:$0xff] }
 0x304   : > { %v2623_v25 = vadd.f32 %v2505_v62, %v2077_v19  ;;  %v2284_v8 = vpop.f32.mrb[86].mxu0 }
 0x305   : > { %v2509_v44 = vpop.f32.mrb[86].mxu1  ;;  %v2286_v49 = vpop.f32.mrb[87].mxu0 }
 0x306   : > { %2655 = vst [vmem:[#allocation2 + $0x50] sm:$0xff] %v2623_v25  ;;  %v2510_v18 = vadd.f32 %v2509_v44, %v2284_v8  ;;  %v2511_v17 = vpop.f32.mrb[87].mxu1  ;;  %v2087_v8 = vld [vmem:[#allocation2 + $0xa0] sm:$0xff] }
 0x308   : > { %v2624_v46 = vadd.f32 %v2510_v18, %v2078_v3  ;;  %v2289_v26 = vpop.f32.mrb[88].mxu0 }
 0x309   : > { %v2514_v29 = vpop.f32.mrb[88].mxu1  ;;  %v2291_v54 = vpop.f32.mrb[89].mxu0 }
 0x30a   : > { %2656 = vst [vmem:[#allocation2 + $0x58] sm:$0xff] %v2624_v46  ;;  %v2515_v28 = vadd.f32 %v2514_v29, %v2289_v26  ;;  %v2516_v37 = vpop.f32.mrb[89].mxu1  ;;  %v2088_v26 = vld [vmem:[#allocation2 + $0xa8] sm:$0xff] }
 0x30c   : > { %v2625_v55 = vadd.f32 %v2515_v28, %v2079_v58 }
 0x30e   : > { %2657 = vst [vmem:[#allocation2 + $0x60] sm:$0xff] %v2625_v55 }
 0x319   : > { %v2294_v32 = vpop.f32.mrb[90].mxu0 }
 0x31a   : > { %v2519_v39 = vpop.f32.mrb[90].mxu1  ;;  %v2296_v27 = vpop.f32.mrb[91].mxu0 }
 0x31b   : > { %v2520_v63 = vadd.f32 %v2519_v39, %v2294_v32  ;;  %v2521_v56 = vpop.f32.mrb[91].mxu1 }
 0x31d   : > { %v2626_v47 = vadd.f32 %v2520_v63, %v2080_v12  ;;  %v2299_v6 = vpop.f32.mrb[92].mxu0  ;;  %v2089_v12 = vld [vmem:[#allocation2 + $0xb0] sm:$0xff] }
 0x31e   : > { %v2524_v50 = vpop.f32.mrb[92].mxu1  ;;  %v2301_v61 = vpop.f32.mrb[93].mxu0 }
 0x31f   : > { %2658 = vst [vmem:[#allocation2 + $0x68] sm:$0xff] %v2626_v47  ;;  %v2525_v57 = vadd.f32 %v2524_v50, %v2299_v6  ;;  %v2526_v24 = vpop.f32.mrb[93].mxu1  ;;  %v2090_v6 = vld [vmem:[#allocation2 + $0xb8] sm:$0xff] }
 0x321   : > { %v2627_v9 = vadd.f32 %v2525_v57, %v2081_v11  ;;  %v2304_v40 = vpop.f32.mrb[94].mxu0 }
 0x322   : > { %v2529_v51 = vpop.f32.mrb[94].mxu1  ;;  %v2306_v14 = vpop.f32.mrb[95].mxu0 }
 0x323   : > { %2659 = vst [vmem:[#allocation2 + $0x70] sm:$0xff] %v2627_v9  ;;  %v2530_v36 = vadd.f32 %v2529_v51, %v2304_v40  ;;  %v2531_v48 = vpop.f32.mrb[95].mxu1  ;;  %v2091_v40 = vld [vmem:[#allocation2 + $0xc0] sm:$0xff] }
 0x325   : > { %v2628_v15 = vadd.f32 %v2530_v36, %v2082_v34 }
 0x327   : > { %2660 = vst [vmem:[#allocation2 + $0x78] sm:$0xff] %v2628_v15 }
 0x332   : > { %v2309_v21 = vpop.f32.mrb[96].mxu0 }
 0x333   : > { %v2534_v31 = vpop.f32.mrb[96].mxu1  ;;  %v2311_v33 = vpop.f32.mrb[97].mxu0 }
 0x334   : > { %v2535_v41 = vadd.f32 %v2534_v31, %v2309_v21  ;;  %v2536_v0 = vpop.f32.mrb[97].mxu1  ;;  %v2092_v21 = vld [vmem:[#allocation2 + $0xc8] sm:$0xff] }
 0x336   : > { %v2629_v59 = vadd.f32 %v2535_v41, %v2083_v1  ;;  %v2314_v13 = vpop.f32.mrb[98].mxu0 }
 0x337   : > { %v2539_v23 = vpop.f32.mrb[98].mxu1  ;;  %v2316_v7 = vpop.f32.mrb[99].mxu0 }
 0x338   : > { %2661 = vst [vmem:[#allocation2 + $0x80] sm:$0xff] %v2629_v59  ;;  %v2540_v35 = vadd.f32 %v2539_v23, %v2314_v13  ;;  %v2541_v2 = vpop.f32.mrb[99].mxu1  ;;  %v2093_v13 = vld [vmem:[#allocation2 + $0xd0] sm:$0xff] }
 0x33a   : > { %v2630_v38 = vadd.f32 %v2540_v35, %v2084_v20  ;;  %v2319_v42 = vpop.f32.mrb[100].mxu0 }
 0x33b   : > { %v2544_v30 = vpop.f32.mrb[100].mxu1  ;;  %v2321_v43 = vpop.f32.mrb[101].mxu0 }
 0x33c   : > { %2662 = vst [vmem:[#allocation2 + $0x88] sm:$0xff] %v2630_v38  ;;  %v2545_v5 = vadd.f32 %v2544_v30, %v2319_v42  ;;  %v2546_v10 = vpop.f32.mrb[101].mxu1  ;;  %v2094_v42 = vld [vmem:[#allocation2 + $0xd8] sm:$0xff] }
 0x33e   : > { %v2631_v53 = vadd.f32 %v2545_v5, %v2085_v4 }
 0x340   : > { %2663 = vst [vmem:[#allocation2 + $0x90] sm:$0xff] %v2631_v53 }
 0x34b   : > { %v2324_v60 = vpop.f32.mrb[102].mxu0 }
 0x34c   : > { %v2549_v19 = vpop.f32.mrb[102].mxu1  ;;  %v2326_v52 = vpop.f32.mrb[103].mxu0 }
 0x34d   : > { %v2550_v22 = vadd.f32 %v2549_v19, %v2324_v60  ;;  %v2551_v62 = vpop.f32.mrb[103].mxu1  ;;  %v2095_v60 = vld [vmem:[#allocation2 + $0xe0] sm:$0xff] }
 0x34f   : > { %v2632_v45 = vadd.f32 %v2550_v22, %v2086_v16  ;;  %v2329_v25 = vpop.f32.mrb[104].mxu0 }
 0x350   : > { %v2554_v3 = vpop.f32.mrb[104].mxu1  ;;  %v2331_v44 = vpop.f32.mrb[105].mxu0 }
 0x351   : > { %2664 = vst [vmem:[#allocation2 + $0x98] sm:$0xff] %v2632_v45  ;;  %v2555_v49 = vadd.f32 %v2554_v3, %v2329_v25  ;;  %v2556_v18 = vpop.f32.mrb[105].mxu1  ;;  %v2096_v25 = vld [vmem:[#allocation2 + $0xe8] sm:$0xff] }
 0x353   : > { %v2633_v17 = vadd.f32 %v2555_v49, %v2087_v8  ;;  %v2334_v46 = vpop.f32.mrb[106].mxu0 }
 0x354   : > { %v2559_v58 = vpop.f32.mrb[106].mxu1  ;;  %v2336_v29 = vpop.f32.mrb[107].mxu0 }
 0x355   : > { %2665 = vst [vmem:[#allocation2 + $0xa0] sm:$0xff] %v2633_v17  ;;  %v2560_v54 = vadd.f32 %v2559_v58, %v2334_v46  ;;  %v2561_v28 = vpop.f32.mrb[107].mxu1  ;;  %v2097_v46 = vld [vmem:[#allocation2 + $0xf0] sm:$0xff] }
 0x357   : > { %v2634_v37 = vadd.f32 %v2560_v54, %v2088_v26  ;;  %v2339_v55 = vpop.f32.mrb[108].mxu0 }
 0x358   : > { %v2341_v32 = vpop.f32.mrb[109].mxu0 }
 0x359   : > { %2666 = vst [vmem:[#allocation2 + $0xa8] sm:$0xff] %v2634_v37 }
 0x365   : > { %v2564_v39 = vpop.f32.mrb[108].mxu1 }
 0x366   : > { %v2565_v27 = vadd.f32 %v2564_v39, %v2339_v55  ;;  %v2566_v63 = vpop.f32.mrb[109].mxu1  ;;  %v2098_v55 = vld [vmem:[#allocation2 + $0xf8] sm:$0xff] }
 0x368   : > { %v2635_v56 = vadd.f32 %v2565_v27, %v2089_v12  ;;  %v2344_v47 = vpop.f32.mrb[110].mxu0 }
 0x369   : > { %v2569_v11 = vpop.f32.mrb[110].mxu1  ;;  %v2346_v50 = vpop.f32.mrb[111].mxu0 }
 0x36a   : > { %2667 = vst [vmem:[#allocation2 + $0xb0] sm:$0xff] %v2635_v56  ;;  %v2570_v61 = vadd.f32 %v2569_v11, %v2344_v47  ;;  %v2571_v57 = vpop.f32.mrb[111].mxu1  ;;  %v2681_v56 = vld [vmem:[#allocation2] sm:$0xff] (!%p3099_p4) }
 0x36b   : > { %v5783_v47 = vld [vmem:[%s6090_s23] ss:$0 sm:$0xff] (!%p3099_p4)  ;;  %v2684_v57 = vld [vmem:[#allocation2 + $0x18] sm:$0xff] (!%p3099_p4) }
 0x36c   : > { %v2636_v24 = vadd.f32 %v2570_v61, %v2090_v6  ;;  %v2349_v9 = vpop.f32.mrb[112].mxu0  ;;  %v2682_v6 = vld [vmem:[#allocation2 + $0x8] sm:$0xff] (!%p3099_p4)  ;;  %v2720_v11 = vadd.f32 (!%p3099_p4), %v5783_v47, %v2681_v56  ;;  %v2683_v61 = vld [vmem:[#allocation2 + $0x10] sm:$0xff] (!%p3099_p4) }
 0x36d   : > { %v2574_v34 = vpop.f32.mrb[112].mxu1  ;;  %v2351_v51 = vpop.f32.mrb[113].mxu0  ;;  %v2721_v50 = vadd.f32 (!%p3099_p4), %v5783_v47, %v2682_v6 }
 0x36e   : > { %2668 = vst [vmem:[#allocation2 + $0xb8] sm:$0xff] %v2636_v24  ;;  %v2575_v14 = vadd.f32 %v2574_v34, %v2349_v9  ;;  %v2576_v36 = vpop.f32.mrb[113].mxu1  ;;  %v2685_v24 = vld [vmem:[#allocation2 + $0x20] sm:$0xff] (!%p3099_p4)  ;;  %v2722_v9 = vadd.f32 (!%p3099_p4), %v5783_v47, %v2683_v61  ;;  %v2686_v51 = vld [vmem:[#allocation2 + $0x28] sm:$0xff] (!%p3099_p4)  ;;  %2752 = vst [vmem:[%s4538_s8] sm:$0xff] (!%p3099_p4), %v2720_v11 }
 0x36f   : > { %v2724_v34 = vadd.f32 (!%p3099_p4), %v5783_v47, %v2685_v24  ;;  %v2688_v36 = vld [vmem:[#allocation2 + $0x38] sm:$0xff] (!%p3099_p4)  ;;  %2753 = vst [vmem:[%s4538_s8 + $0x8] sm:$0xff] (!%p3099_p4), %v2721_v50 }
 0x370   : > { %v2637_v48 = vadd.f32 %v2575_v14, %v2091_v40  ;;  %v2354_v15 = vpop.f32.mrb[114].mxu0  ;;  %v2723_v40 = vadd.f32 (!%p3099_p4), %v5783_v47, %v2684_v57  ;;  %v2687_v14 = vld [vmem:[#allocation2 + $0x30] sm:$0xff] (!%p3099_p4)  ;;  %2754 = vst [vmem:[%s4538_s8 + $0x10] sm:$0xff] (!%p3099_p4), %v2722_v9 }
 0x371   : > { %v2579_v1 = vpop.f32.mrb[114].mxu1  ;;  %v2356_v31 = vpop.f32.mrb[115].mxu0  ;;  %2756 = vst [vmem:[%s4538_s8 + $0x20] sm:$0xff] (!%p3099_p4), %v2724_v34 }
 0x372   : > { %2669 = vst [vmem:[#allocation2 + $0xc0] sm:$0xff] %v2637_v48  ;;  %v2580_v33 = vadd.f32 %v2579_v1, %v2354_v15  ;;  %v2581_v41 = vpop.f32.mrb[115].mxu1  ;;  %v2725_v48 = vadd.f32 (!%p3099_p4), %v5783_v47, %v2686_v51  ;;  %v2726_v15 = vadd.f32 (!%p3099_p4), %v5783_v47, %v2687_v14  ;;  %v2689_v1 = vld [vmem:[#allocation2 + $0x40] sm:$0xff] (!%p3099_p4)  ;;  %v2690_v31 = vld [vmem:[#allocation2 + $0x48] sm:$0xff] (!%p3099_p4)  ;;  %2755 = vst [vmem:[%s4538_s8 + $0x18] sm:$0xff] (!%p3099_p4), %v2723_v40 }
 0x373   : > { %v2728_v41 = vadd.f32 (!%p3099_p4), %v5783_v47, %v2689_v1 }
 0x374   : > { %v2638_v0 = vadd.f32 %v2580_v33, %v2092_v21  ;;  %v2727_v21 = vadd.f32 (!%p3099_p4), %v5783_v47, %v2688_v36  ;;  %v2691_v33 = vld [vmem:[#allocation2 + $0x50] sm:$0xff] (!%p3099_p4)  ;;  %2757 = vst [vmem:[%s4538_s8 + $0x28] sm:$0xff] (!%p3099_p4), %v2725_v48  ;;  %2758 = vst [vmem:[%s4538_s8 + $0x30] sm:$0xff] (!%p3099_p4), %v2726_v15 }
 0x375   : > { %2760 = vst [vmem:[%s4538_s8 + $0x40] sm:$0xff] (!%p3099_p4), %v2728_v41 }
 0x376   : > { %2670 = vst [vmem:[#allocation2 + $0xc8] sm:$0xff] %v2638_v0  ;;  %v2729_v0 = vadd.f32 (!%p3099_p4), %v5783_v47, %v2690_v31  ;;  %2759 = vst [vmem:[%s4538_s8 + $0x38] sm:$0xff] (!%p3099_p4), %v2727_v21 }
 0x378   : > { %2761 = vst [vmem:[%s4538_s8 + $0x48] sm:$0xff] (!%p3099_p4), %v2729_v0 }
 0x381   : > { %v2359_v59 = vpop.f32.mrb[116].mxu0 }
 0x382   : > { %v2584_v20 = vpop.f32.mrb[116].mxu1  ;;  %v2361_v23 = vpop.f32.mrb[117].mxu0 }
 0x383   : > { %v2585_v7 = vadd.f32 %v2584_v20, %v2359_v59  ;;  %v2586_v35 = vpop.f32.mrb[117].mxu1  ;;  %v2730_v59 = vadd.f32 (!%p3099_p4), %v5783_v47, %v2691_v33  ;;  %v2693_v20 = vld [vmem:[#allocation2 + $0x60] sm:$0xff] (!%p3099_p4)  ;;  %v2694_v23 = vld [vmem:[#allocation2 + $0x68] sm:$0xff] (!%p3099_p4) }
 0x384   : > { %v2732_v35 = vadd.f32 (!%p3099_p4), %v5783_v47, %v2693_v20 }
 0x385   : > { %v2639_v2 = vadd.f32 %v2585_v7, %v2093_v13  ;;  %v2364_v38 = vpop.f32.mrb[118].mxu0  ;;  %v2692_v13 = vld [vmem:[#allocation2 + $0x58] sm:$0xff] (!%p3099_p4)  ;;  %2762 = vst [vmem:[%s4538_s8 + $0x50] sm:$0xff] (!%p3099_p4), %v2730_v59 }
 0x386   : > { %v2589_v4 = vpop.f32.mrb[118].mxu1  ;;  %v2366_v30 = vpop.f32.mrb[119].mxu0  ;;  %v2731_v7 = vadd.f32 (!%p3099_p4), %v5783_v47, %v2692_v13  ;;  %2764 = vst [vmem:[%s4538_s8 + $0x60] sm:$0xff] (!%p3099_p4), %v2732_v35 }
 0x387   : > { %2671 = vst [vmem:[#allocation2 + $0xd0] sm:$0xff] %v2639_v2  ;;  %v2590_v43 = vadd.f32 %v2589_v4, %v2364_v38  ;;  %v2591_v5 = vpop.f32.mrb[119].mxu1  ;;  %v2733_v2 = vadd.f32 (!%p3099_p4), %v5783_v47, %v2694_v23  ;;  %v2695_v38 = vld [vmem:[#allocation2 + $0x70] sm:$0xff] (!%p3099_p4)  ;;  %v2697_v4 = vld [vmem:[#allocation2 + $0x80] sm:$0xff] (!%p3099_p4) }
 0x388   : > { %v2734_v30 = vadd.f32 (!%p3099_p4), %v5783_v47, %v2695_v38  ;;  %v2736_v5 = vadd.f32 (!%p3099_p4), %v5783_v47, %v2697_v4  ;;  %2763 = vst [vmem:[%s4538_s8 + $0x58] sm:$0xff] (!%p3099_p4), %v2731_v7 }
 0x389   : > { %v2640_v10 = vadd.f32 %v2590_v43, %v2094_v42  ;;  %v2369_v53 = vpop.f32.mrb[120].mxu0  ;;  %v2696_v42 = vld [vmem:[#allocation2 + $0x78] sm:$0xff] (!%p3099_p4)  ;;  %2765 = vst [vmem:[%s4538_s8 + $0x68] sm:$0xff] (!%p3099_p4), %v2733_v2 }
 0x38a   : > { %v2594_v16 = vpop.f32.mrb[120].mxu1  ;;  %v2371_v19 = vpop.f32.mrb[121].mxu0  ;;  %v2735_v43 = vadd.f32 (!%p3099_p4), %v5783_v47, %v2696_v42  ;;  %2766 = vst [vmem:[%s4538_s8 + $0x70] sm:$0xff] (!%p3099_p4), %v2734_v30  ;;  %2768 = vst [vmem:[%s4538_s8 + $0x80] sm:$0xff] (!%p3099_p4), %v2736_v5 }
 0x38b   : > { %2672 = vst [vmem:[#allocation2 + $0xd8] sm:$0xff] %v2640_v10  ;;  %v2595_v52 = vadd.f32 %v2594_v16, %v2369_v53  ;;  %v2596_v22 = vpop.f32.mrb[121].mxu1  ;;  %v2698_v10 = vld [vmem:[#allocation2 + $0x88] sm:$0xff] (!%p3099_p4)  ;;  %v2699_v53 = vld [vmem:[#allocation2 + $0x90] sm:$0xff] (!%p3099_p4) }
 0x38c   : > { %v2737_v16 = vadd.f32 (!%p3099_p4), %v5783_v47, %v2698_v10  ;;  %v2738_v19 = vadd.f32 (!%p3099_p4), %v5783_v47, %v2699_v53  ;;  %v2701_v22 = vld [vmem:[#allocation2 + $0xa0] sm:$0xff] (!%p3099_p4)  ;;  %2767 = vst [vmem:[%s4538_s8 + $0x78] sm:$0xff] (!%p3099_p4), %v2735_v43 }
 0x38d   : > { %v2641_v62 = vadd.f32 %v2595_v52, %v2095_v60  ;;  %v2700_v60 = vld [vmem:[#allocation2 + $0x98] sm:$0xff] (!%p3099_p4) }
 0x38e   : > { %v2739_v52 = vadd.f32 (!%p3099_p4), %v5783_v47, %v2700_v60  ;;  %2769 = vst [vmem:[%s4538_s8 + $0x88] sm:$0xff] (!%p3099_p4), %v2737_v16  ;;  %2770 = vst [vmem:[%s4538_s8 + $0x90] sm:$0xff] (!%p3099_p4), %v2738_v19 }
 0x38f   : > { %2673 = vst [vmem:[#allocation2 + $0xe0] sm:$0xff] %v2641_v62  ;;  %v2702_v62 = vld [vmem:[#allocation2 + $0xa8] sm:$0xff] (!%p3099_p4) }
 0x390   : > { %2771 = vst [vmem:[%s4538_s8 + $0x98] sm:$0xff] (!%p3099_p4), %v2739_v52 }
 0x399   : > { %v2374_v45 = vpop.f32.mrb[122].mxu0 }
 0x39a   : > { %v2376_v3 = vpop.f32.mrb[123].mxu0 }
 0x39b   : > { %v2599_v8 = vpop.f32.mrb[122].mxu1 }
 0x39c   : > { %v2600_v44 = vadd.f32 %v2599_v8, %v2374_v45  ;;  %v2601_v49 = vpop.f32.mrb[123].mxu1  ;;  %v2703_v45 = vld [vmem:[#allocation2 + $0xb0] sm:$0xff] (!%p3099_p4)  ;;  %v2741_v8 = vadd.f32 (!%p3099_p4), %v5783_v47, %v2702_v62 }
 0x39d   : > { %v2742_v3 = vadd.f32 (!%p3099_p4), %v5783_v47, %v2703_v45  ;;  %v2705_v49 = vld [vmem:[#allocation2 + $0xc0] sm:$0xff] (!%p3099_p4) }
 0x39e   : > { %v2642_v18 = vadd.f32 %v2600_v44, %v2096_v25  ;;  %v2379_v17 = vpop.f32.mrb[124].mxu0  ;;  %v2740_v25 = vadd.f32 (!%p3099_p4), %v5783_v47, %v2701_v22  ;;  %v2704_v44 = vld [vmem:[#allocation2 + $0xb8] sm:$0xff] (!%p3099_p4)  ;;  %2773 = vst [vmem:[%s4538_s8 + $0xa8] sm:$0xff] (!%p3099_p4), %v2741_v8 }
 0x39f   : > { %v2604_v26 = vpop.f32.mrb[124].mxu1  ;;  %v2381_v58 = vpop.f32.mrb[125].mxu0  ;;  %2774 = vst [vmem:[%s4538_s8 + $0xb0] sm:$0xff] (!%p3099_p4), %v2742_v3 }
 0x3a0   : > { %2674 = vst [vmem:[#allocation2 + $0xe8] sm:$0xff] %v2642_v18  ;;  %v2605_v29 = vadd.f32 %v2604_v26, %v2379_v17  ;;  %v2606_v54 = vpop.f32.mrb[125].mxu1  ;;  %v2706_v18 = vld [vmem:[#allocation2 + $0xc8] sm:$0xff] (!%p3099_p4)  ;;  %v2743_v17 = vadd.f32 (!%p3099_p4), %v5783_v47, %v2704_v44  ;;  %v2707_v58 = vld [vmem:[#allocation2 + $0xd0] sm:$0xff] (!%p3099_p4)  ;;  %2772 = vst [vmem:[%s4538_s8 + $0xa0] sm:$0xff] (!%p3099_p4), %v2740_v25 }
 0x3a1   : > { %v2745_v26 = vadd.f32 (!%p3099_p4), %v5783_v47, %v2706_v18  ;;  %v2709_v54 = vld [vmem:[#allocation2 + $0xe0] sm:$0xff] (!%p3099_p4) }
 0x3a2   : > { %v2643_v28 = vadd.f32 %v2605_v29, %v2097_v46  ;;  %v2384_v37 = vpop.f32.mrb[126].mxu0  ;;  %2680 = sbr.rel (%p3099_p4) target bundleno = 947 (0x3b3), region = 64  ;;  %v2744_v46 = vadd.f32 (!%p3099_p4), %v5783_v47, %v2705_v49  ;;  %v2708_v29 = vld [vmem:[#allocation2 + $0xd8] sm:$0xff] (!%p3099_p4)  ;;  %2775 = vst [vmem:[%s4538_s8 + $0xb8] sm:$0xff] (!%p3099_p4), %v2743_v17 }
 0x3a3   : > { %v2609_v32 = vpop.f32.mrb[126].mxu1  ;;  %v2386_v12 = vpop.f32.mrb[127].mxu0  ;;  %2777 = vst [vmem:[%s4538_s8 + $0xc8] sm:$0xff] (!%p3099_p4), %v2745_v26 }
 0x3a4   : > { %2675 = vst [vmem:[#allocation2 + $0xf0] sm:$0xff] %v2643_v28  ;;  %v2610_v39 = vadd.f32 %v2609_v32, %v2384_v37  ;;  %v2611_v27 = vpop.f32.mrb[127].mxu1  ;;  %v2746_v28 = vadd.f32 (!%p3099_p4), %v5783_v47, %v2707_v58  ;;  %v2747_v37 = vadd.f32 (!%p3099_p4), %v5783_v47, %v2708_v29  ;;  %2776 = vst [vmem:[%s4538_s8 + $0xc0] sm:$0xff] (!%p3099_p4), %v2744_v46 }
 0x3a6   : > { %v2644_v63 = vadd.f32 %v2610_v39, %v2098_v55  ;;  %v2748_v55 = vadd.f32 (!%p3099_p4), %v5783_v47, %v2709_v54  ;;  %2778 = vst [vmem:[%s4538_s8 + $0xd0] sm:$0xff] (!%p3099_p4), %v2746_v28  ;;  %2779 = vst [vmem:[%s4538_s8 + $0xd8] sm:$0xff] (!%p3099_p4), %v2747_v37 }
 0x3a7   : > { %v2710_v32 = vld [vmem:[#allocation2 + $0xe8] sm:$0xff] (!%p3099_p4) }
 0x3a8   : > { %2676 = vst [vmem:[#allocation2 + $0xf8] sm:$0xff] %v2644_v63  ;;  %v2749_v27 = vadd.f32 (!%p3099_p4), %v5783_v47, %v2710_v32  ;;  %2780 = vst [vmem:[%s4538_s8 + $0xe0] sm:$0xff] (!%p3099_p4), %v2748_v55 }
 0x3aa   : > { %2781 = vst [vmem:[%s4538_s8 + $0xe8] sm:$0xff] %v2749_v27 }
 0x3ab   : > { %v2711_v12 = vld [vmem:[#allocation2 + $0xf0] sm:$0xff] }
 0x3ac   : > { %v2750_v63 = vadd.f32 %v5783_v47, %v2711_v12 }
 0x3ae   : > { %2782 = vst [vmem:[%s4538_s8 + $0xf0] sm:$0xff] %v2750_v63 }
 0x3af   : > { %v2712_v39 = vld [vmem:[#allocation2 + $0xf8] sm:$0xff] }
 0x3b0   : > { %v2751_v56 = vadd.f32 %v5783_v47, %v2712_v39 }
 0x3b2   : > { %2783 = vst [vmem:[%s4538_s8 + $0xf8] sm:$0xff] %v2751_v56 }
 0x3b3 PF: > { %s6091_s24 = sld [smem:[#allocation18_spill]]  ;;  %s2798_s7 = sshll.u32 %s4538_s8, 4  ;;  %s5856_s7 = int_to_ptr.vmem [resolvable:$true] %s2798_s7 }
 0x3b4   : > { %s6092_s1 = sld [smem:[#allocation74_spill]]  ;;  %s2785_s0 = scalar_lea.sflag [#allocation5], %s4512_s17 }
 0x3b5   : > { %s4030_s14 = scalar_lea.vmem %s5856_s7, 4096  ;;  %p6093_p11 = scmp.ne.s32.totalorder %s5966_s4, 0 }
 0x3b6   : > { %p4031_p12 = scmp.ne.s32.totalorder %s5856_s7, %s4030_s14  ;;  %s4174_s6 = smov [#allocation11]  }
 0x3b7   : > { %s4034_s30 = sshll.u32 %s4174_s6, 4  ;;  %s4035_s30 = int_to_ptr.vmem [resolvable:$false] %s4034_s30 }
 0x3b8   : > { %p4032_p5 = pnand %p4031_p12, %p6093_p11  ;;  %s4036_s20 = scalar_lea.vmem %s4035_s30, 8192 }
 0x3b9   : > { %s3110_s12 = sshll.u32 %s6091_s24, 12  ;;  %p4037_p9 = scmp.lt.s32.totalorder %s5856_s7, %s4035_s30 }
 0x3ba   : > { %s5853_s9 = scalar_lea.hbm %s6092_s1, %s3110_s12  ;;  %p4033_p3 = pneg %p4032_p5 }
 0x3bb   : > { %p4038_p2 = scmp.lt.s32.totalorder %s4036_s20, %s4030_s14 }
 0x3bd   : > { %p4039_p0 = por %p4038_p2, %p4037_p9 }
 0x3bf   : > { %p4040_p10 = pnand %p4039_p0, %p4033_p3 }
 0x3c1   : > { %4043 = shalt.err (!%p4040_p10)
}
 0x3c2   : > { %s4044_s18 = scalar_lea.hbm %s5853_s9, 4096  ;;  %s4048_s29 = scalar_lea.hbm %s6092_s1, 8192 }
 0x3c3   : > { %p4045_p7 = scmp.ne.s32.totalorder %s5853_s9, %s4044_s18  ;;  %p4049_p13 = scmp.lt.u32.totalorder %s5853_s9, %s6092_s1 }
 0x3c4   : > { %p4050_p6 = scmp.lt.u32.totalorder %s4048_s29, %s4044_s18  ;;  %p4052_p12 = scmp.lt.u32.totalorder %s4044_s18, %s5853_s9 }
 0x3c5   : > { %p4046_p8 = pnand %p4045_p7, %p6093_p11 }
 0x3c6   : > { %p4051_p4 = por %p4050_p6, %p4049_p13 }
 0x3c7   : > { %p4047_p1 = pneg %p4046_p8 }
 0x3c8   : > { %p4053_p5 = por %p4052_p12, %p4051_p4 }
 0x3ca   : > { %p4054_p3 = pnand %p4053_p5, %p4047_p1 }
 0x3cc   : > { %4057 = shalt.err (!%p4054_p3)
}
 0x3cd   : > { %s4175_s8 = smov 128   ;;  %s4176_s25 = smov 8  }
 0x3ce   : > { %3279 = dma.vmem_to_hbm [thread:$0]  (%p6093_p11), %s5856_s7, 4096, %s5853_s9, %s2785_s0, %s4175_s8, %s4175_s8, %s4176_s25  }
 0x3cf PF: > { %s6094_s13 = sld [smem:[#allocation24_spill]]  ;;  %p3299_p9 = scmp.ge.s32.totalorder %s4160_s28, 2 }
 0x3d0   : > { %s2813_s23 = sand.u32 1, %s4132_s21  }
 0x3d1   : > { %s2814_s24 = scalar_lea.sflag [#allocation5], %s2813_s23 }
 0x3d5   : > { %p6095_p2 = scmp.ne.s32.totalorder %s6094_s13, 0 }
 0x3d7   : > { %p3295_p0 = pnand %p3299_p9, %p6095_p2 }
 0x3d9   : > { %4115 = dma.done.wait (!%p3295_p0), %s2814_s24, 4096  }
 0x3da   : > { %4117 = vsyncadd (!%p3295_p0), %s2814_s24, 4294963200  ;;  %s27_s28 = sadd.s32 1, %s4160_s28   ;;  %s6096_s12 = sld [smem:[#allocation16_spill]] }
 0x3db   : > { %p24_p10 = scmp.ge.s32.totalorder %s27_s28, 6   ;;  %s6097_s20 = sld [smem:[#allocation22_spill]] }
 0x3dc   : > { %s6098_s4 = sld [smem:[#allocation17_spill]]  ;;  %s6099_s23 = sld [smem:[#allocation23_spill]] }
 0x3dd   : > { %s6100_s25 = sld [smem:[#allocation19_spill]]  ;;  %s6101_s17 = sld [smem:[#allocation20_spill]] }
 0x3de   : > { %s6102_s27 = sld [smem:[#allocation21_spill]]  ;;  %s6103_s18 = smov %s4124_s19 }
 0x3df   : > { %s6105_s21 = smov %s4136_s22  ;;  %s6107_s24 = smov %s4152_s26 }
 0x3e0   : > { %s6104_s19 = smov %s6096_s12  ;;  %26 = sbr.rel (!%p24_p10) target bundleno = 18 (0x12), region = 130 }
 0x3e2   : > { %s6106_s22 = smov %s6098_s4 }
 0x3e3   : > { %s6108_s26 = smov %s6101_s17 }
 0x3e7   :  { %2819 = vsyncpa [#allocation4], 1 }
 0x3e8   :  { %2821 = vsyncpa [#allocation4 + $0x1], 1 }
 0x3e9   :  { %2822 = vsyncpa [#allocation7], 1 }
 0x3ea   :  { %2824 = vsyncpa [#allocation7 + $0x1], 1 }
 0x3eb   :  { %2825 = vsyncpa [#allocation10], 1 }
 0x3ec   :  { %2827 = vsyncpa [#allocation10 + $0x1], 1 }
 0x3ed   :  { %2828 = vsyncpa [#allocation5], 1 }
 0x3ee   :  { %2830 = vsyncpa [#allocation5 + $0x1], 1 }

</bundles_post_ra>
